<compile_context>
chip_gen: v7x
topology: tpu7x:2x2x1
jax: 0.10.0
libtpu: 0.0.40
codegen_flags: <defaults>
</compile_context>

<pallas_src>
import functools

import jax
import jax.numpy as jnp
from jax.experimental import pallas as pl
from jax.experimental.pallas import tpu as pltpu


def _basic_block_kernel(x_ref, w1_ref, b1_ref, w2_ref, b2_ref, out_ref,
                        xpad_ref, midpad_ref, patch_ref,
                        *, H, W, TH, Cin, Cmid, Cout, has_projection):
    """One grid step = one TH-row output strip of one batch element (NHWC).

    x_ref    : (1, H, W, Cin)     full image (resident across the strip axis)
    w1_ref   : (9*Cin, Cmid)      conv1 weights, im2col (dy,dx,ci) layout, BN1 scale folded
    w2_ref   : (9*Cmid[+Cin], Cout) conv2 [+ 1x1 shortcut] weights, BN scales folded
    b1/b2    : (1, C)             folded BatchNorm biases (f32)
    out_ref  : (1, TH, W, Cout)   output strip
    xpad_ref : (TH+4, W+2, Cin)   zero-padded x strip (2-row H halo, 1-col W halo)
    midpad_ref:(TH+2, W+2, Cmid)  zero-padded intermediate strip (1-row halo each side)
    patch_ref: ((TH+2)*W, Kmax)   shared im2col patch scratch
    """
    s = pl.program_id(1)
    S = pl.num_programs(1)
    r0 = s * TH
    cdtype = xpad_ref.dtype
    R1 = TH + 2                      # mid rows computed per strip (incl. halo rows)

    # ---- zero only the never-written W-halo columns (not the whole scratch) ----
    xpad_ref[:, 0:1, :] = jnp.zeros((TH + 4, 1, Cin), cdtype)
    xpad_ref[:, W + 1:W + 2, :] = jnp.zeros((TH + 4, 1, Cin), cdtype)
    midpad_ref[:, 0:1, :] = jnp.zeros((R1, 1, Cmid), cdtype)
    midpad_ref[:, W + 1:W + 2, :] = jnp.zeros((R1, 1, Cmid), cdtype)

    # ---- stage the x strip (+2-row halo each side) into the padded scratch ----
    xpad_ref[2:TH + 2, 1:W + 1, :] = x_ref[0, pl.ds(r0, TH), :, :]

    @pl.when(s == 0)                 # conv1 zero-padding above the image
    def _():
        xpad_ref[0:2, :, :] = jnp.zeros((2, W + 2, Cin), cdtype)

    @pl.when(s > 0)
    def _():
        xpad_ref[0:2, 1:W + 1, :] = x_ref[0, pl.ds(r0 - 2, 2), :, :]

    @pl.when(s == S - 1)             # conv1 zero-padding below the image
    def _():
        xpad_ref[TH + 2:TH + 4, :, :] = jnp.zeros((2, W + 2, Cin), cdtype)

    @pl.when(s < S - 1)
    def _():
        xpad_ref[TH + 2:TH + 4, 1:W + 1, :] = x_ref[0, pl.ds(r0 + TH, 2), :, :]

    # ---- conv1 3x3 -> bias -> ReLU : ONE (R1*W, 9Cin) @ (9Cin, Cmid) MXU matmul ----
    for t in range(9):               # im2col into the shared patch scratch
        dy, dx = divmod(t, 3)
        patch_ref[0:R1 * W, t * Cin:(t + 1) * Cin] = (
            xpad_ref[dy:dy + R1, dx:dx + W, :].reshape(R1 * W, Cin))

    h1 = jnp.dot(patch_ref[0:R1 * W, 0:9 * Cin], w1_ref[...],
                 preferred_element_type=jnp.float32)
    h1 = jnp.maximum(h1 + b1_ref[...], 0.0)        # BN1 scale already in w1

    # intermediate activation never leaves VMEM; re-padded for conv2
    midpad_ref[:, 1:W + 1, :] = h1.reshape(R1, W, Cmid).astype(cdtype)

    @pl.when(s == 0)                 # conv2 zero-padding row above the image
    def _():
        midpad_ref[0:1, :, :] = jnp.zeros((1, W + 2, Cmid), cdtype)

    @pl.when(s == S - 1)             # conv2 zero-padding row below the image
    def _():
        midpad_ref[R1 - 1:R1, :, :] = jnp.zeros((1, W + 2, Cmid), cdtype)

    # ---- conv2 3x3 (+ fused 1x1 projection shortcut) : ONE MXU matmul ----
    for t in range(9):
        dy, dx = divmod(t, 3)
        patch_ref[0:TH * W, t * Cmid:(t + 1) * Cmid] = (
            midpad_ref[dy:dy + TH, dx:dx + W, :].reshape(TH * W, Cmid))

    x_strip = x_ref[0, pl.ds(r0, TH), :, :].reshape(TH * W, Cin)
    k2 = 9 * Cmid
    if has_projection:               # shortcut 1x1 conv folded into the same matmul
        patch_ref[0:TH * W, k2:k2 + Cin] = x_strip
        k2 += Cin

    h2 = jnp.dot(patch_ref[0:TH * W, 0:k2], w2_ref[...],
                 preferred_element_type=jnp.float32)
    h2 = h2 + b2_ref[...]

    if not has_projection:           # identity shortcut: plain f32 add, no eye() matmul
        h2 = h2 + x_strip.astype(jnp.float32)

    out_ref[0] = jnp.maximum(h2, 0.0).reshape(TH, W, Cout).astype(out_ref.dtype)


def fold_bn(gamma, beta, mean, var, eps=1e-5):
    """Fold inference BatchNorm2d into per-channel (scale, bias); convs have no bias."""
    scale = gamma / jnp.sqrt(var + eps)
    return scale, beta - mean * scale


def _pick_strip(H, target):
    """Largest divisor of H that is <= target (and >= 2), else H."""
    if H <= target:
        return H
    for th in range(min(target, H), 1, -1):
        if H % th == 0:
            return th
    return H


def basic_block_forward_nhwc(x_nhwc, params, *, compute_dtype=jnp.float32,
                             out_dtype=jnp.float32, strip_rows=8):
    """BasicBlock forward, NHWC in / NHWC out, stride=1, inference BN semantics.

    Use this entry point when chaining blocks (no NCHW<->NHWC transposes per block).
    On v6e/v7x pass compute_dtype=jnp.bfloat16; accumulation stays f32.
    strip_rows controls the H-strip tile (pick larger for real shapes, bounded by VMEM).
    """
    N, H, W, Cin = x_nhwc.shape
    w1, w2 = params["w1"], params["w2"]              # OIHW
    Cmid, Cout = w1.shape[0], w2.shape[0]

    TH = _pick_strip(H, strip_rows)
    assert H % TH == 0 and (TH >= 2 or TH == H)

    s1, b1 = fold_bn(**params["bn1"])
    s2, b2 = fold_bn(**params["bn2"])

    # OIHW -> HWIO -> (9*Ci, Co); K ordering (dy, dx, ci) matches the in-kernel im2col.
    # BN scales folded into the weight columns (host-side, one-time).
    w1m = (jnp.transpose(w1, (2, 3, 1, 0)).reshape(9 * Cin, Cmid)
           * s1[None, :]).astype(jnp.float32)
    w2m = (jnp.transpose(w2, (2, 3, 1, 0)).reshape(9 * Cmid, Cout)
           * s2[None, :]).astype(jnp.float32)

    has_projection = params["wsc"] is not None
    if has_projection:                               # 1x1 conv + BN shortcut, fused into conv2
        ssc, bsc = fold_bn(**params["bnsc"])
        wscm = (params["wsc"].reshape(Cout, Cin).T * ssc[None, :]).astype(jnp.float32)
        w2cat = jnp.concatenate([w2m, wscm], axis=0)  # (9*Cmid + Cin, Cout)
        b2cat = b2 + bsc
    else:                                            # identity shortcut (Cin == Cout)
        assert Cin == Cout, "identity shortcut requires in_channels == out_channels"
        w2cat, b2cat = w2m, b2
    K2 = w2cat.shape[0]
    Kmax = max(9 * Cin, K2)

    x_c = x_nhwc.astype(compute_dtype)
    w1c = w1m.astype(compute_dtype)
    w2c = w2cat.astype(compute_dtype)
    b1r = b1.reshape(1, Cmid).astype(jnp.float32)
    b2r = b2cat.reshape(1, Cout).astype(jnp.float32)

    kernel = functools.partial(_basic_block_kernel, H=H, W=W, TH=TH,
                               Cin=Cin, Cmid=Cmid, Cout=Cout,
                               has_projection=has_projection)

    out = pl.pallas_call(
        kernel,
        out_shape=jax.ShapeDtypeStruct((N, H, W, Cout), out_dtype),
        grid_spec=pltpu.PrefetchScalarGridSpec(
            num_scalar_prefetch=0,
            grid=(N, H // TH),
            in_specs=[
                # full image per batch elem; index map constant in the strip axis
                pl.BlockSpec((1, H, W, Cin), lambda n, s: (n, 0, 0, 0)),
                pl.BlockSpec((9 * Cin, Cmid), lambda n, s: (0, 0)),
                pl.BlockSpec((1, Cmid), lambda n, s: (0, 0)),
                pl.BlockSpec((K2, Cout), lambda n, s: (0, 0)),
                pl.BlockSpec((1, Cout), lambda n, s: (0, 0)),
            ],
            out_specs=pl.BlockSpec((1, TH, W, Cout), lambda n, s: (n, s, 0, 0)),
            scratch_shapes=[
                pltpu.VMEM((TH + 4, W + 2, Cin), compute_dtype),   # padded x strip
                pltpu.VMEM((TH + 2, W + 2, Cmid), compute_dtype),  # padded mid strip
                pltpu.VMEM(((TH + 2) * W, Kmax), compute_dtype),   # shared im2col patch
            ],
        ),
        compiler_params=pltpu.CompilerParams(
            dimension_semantics=("parallel", "parallel")),
    )(x_c, w1c, b1r, w2c, b2r)
    return out


def basic_block_forward(x_nchw, params, **kwargs):
    """PyTorch-compatible wrapper: NCHW in / NCHW out (transposes only at the boundary)."""
    x_nhwc = jnp.transpose(x_nchw, (0, 2, 3, 1))
    out = basic_block_forward_nhwc(x_nhwc, params, **kwargs)
    return jnp.transpose(out, (0, 3, 1, 2))


def init_basic_block_params(key, in_channels, out_channels):
    ks = jax.random.split(key, 6)

    def conv_init(k, co, ci, kh, kw):
        fan = ci * kh * kw
        return jax.random.uniform(k, (co, ci, kh, kw), jnp.float32,
                                  -1.0, 1.0) / jnp.sqrt(fan)

    def bn_init(k, c):
        k1, k2, k3, k4 = jax.random.split(k, 4)
        return dict(gamma=jax.random.uniform(k1, (c,), jnp.float32, 0.5, 1.5),
                    beta=0.1 * jax.random.normal(k2, (c,), jnp.float32),
                    mean=0.1 * jax.random.normal(k3, (c,), jnp.float32),
                    var=jax.random.uniform(k4, (c,), jnp.float32, 0.5, 1.5))

    p = dict(
        w1=conv_init(ks[0], out_channels, in_channels, 3, 3),
        bn1=bn_init(ks[1], out_channels),
        w2=conv_init(ks[2], out_channels, out_channels, 3, 3),
        bn2=bn_init(ks[3], out_channels),
    )
    if in_channels != out_channels:        # projection shortcut (stride=1 assumed)
        p["wsc"] = conv_init(ks[4], out_channels, in_channels, 1, 1)
        p["bnsc"] = bn_init(ks[5], out_channels)
    else:                                   # identity shortcut
        p["wsc"] = None
        p["bnsc"] = None
    return p


def _reference(x, params):
    """Pure-JAX reference (lax conv, inference BN) for validation."""
    def bn(y, p):
        inv = 1.0 / jnp.sqrt(p["var"] + 1e-5)
        return ((y - p["mean"][None, :, None, None]) * (p["gamma"] * inv)[None, :, None, None]
                + p["beta"][None, :, None, None])

    def conv(y, w):
        return jax.lax.conv_general_dilated(
            y, w, window_strides=(1, 1), padding="SAME",
            dimension_numbers=("NCHW", "OIHW", "NCHW"))

    x = x.astype(jnp.float32)
    r = jnp.maximum(bn(conv(x, params["w1"]), params["bn1"]), 0.0)
    r = bn(conv(r, params["w2"]), params["bn2"])
    if params["wsc"] is not None:
        s = bn(conv(x, params["wsc"]), params["bnsc"])
    else:
        s = x
    return jnp.maximum(r + s, 0.0)


if __name__ == "__main__":
    key = jax.random.PRNGKey(0)
    kx, kp1, kp2 = jax.random.split(key, 3)

    N, H, W = 2, 16, 16

    # Case 1: in != out channels -> projection (1x1 conv + BN) shortcut, 2 strips of 8 rows.
    Cin, Cout = 4, 8
    x = jax.random.normal(kx, (N, Cin, H, W), dtype=jnp.float32)
    params = init_basic_block_params(kp1, Cin, Cout)
    out = jax.block_until_ready(basic_block_forward(x, params))
    ref = jax.block_until_ready(_reference(x, params))
    assert out.shape == (N, Cout, H, W), out.shape
    assert jnp.allclose(out, ref, atol=1e-4, rtol=1e-4), float(jnp.max(jnp.abs(out - ref)))

    # Case 1b: single strip (TH == H) path.
    out1b = jax.block_until_ready(basic_block_forward(x, params, strip_rows=16))
    assert jnp.allclose(out1b, ref, atol=1e-4, rtol=1e-4), float(jnp.max(jnp.abs(out1b - ref)))

    # Case 2: in == out channels -> identity shortcut; 4-row strips exercise interior strips.
    x2 = jax.random.normal(kx, (N, Cout, H, W), dtype=jnp.float32)
    params2 = init_basic_block_params(kp2, Cout, Cout)
    out2 = jax.block_until_ready(basic_block_forward(x2, params2, strip_rows=4))
    ref2 = jax.block_until_ready(_reference(x2, params2))
    assert jnp.allclose(out2, ref2, atol=1e-4, rtol=1e-4), float(jnp.max(jnp.abs(out2 - ref2)))

    # Case 3: bf16 weights/activations (v6e/v7x MXU path), f32 accumulation.
    # Loose smoke tolerance: catches wrong math (O(1) errors) while tolerating bf16 rounding.
    out3 = jax.block_until_ready(
        basic_block_forward(x, params, compute_dtype=jnp.bfloat16))
    assert out3.shape == (N, Cout, H, W)
    assert float(jnp.max(jnp.abs(out3 - ref))) < 0.35, float(jnp.max(jnp.abs(out3 - ref)))

    print("KERNEL_OK")
</pallas_src>

<mosaic_0001>
module attributes {stable_mosaic.version = 11 : i64} {
  func.func @_basic_block_kernel(%arg0: i32, %arg1: i32, %arg2: memref<1x16x16x4xf32, #tpu.memory_space<vmem>>, %arg3: memref<36x8xf32, #tpu.memory_space<vmem>>, %arg4: memref<1x8xf32, #tpu.memory_space<vmem>>, %arg5: memref<76x8xf32, #tpu.memory_space<vmem>>, %arg6: memref<1x8xf32, #tpu.memory_space<vmem>>, %arg7: memref<1x8x16x8xf32, #tpu.memory_space<vmem>>, %arg8: memref<12x18x4xf32, #tpu.memory_space<vmem>>, %arg9: memref<10x18x8xf32, #tpu.memory_space<vmem>>, %arg10: memref<160x76xf32, #tpu.memory_space<vmem>>) attributes {dimension_semantics = [#tpu.dimension_semantics<parallel>, #tpu.dimension_semantics<parallel>], iteration_bounds = array<i64: 2, 2>, scalar_prefetch = 0 : i64, scratch_operands = 3 : i64, tpu.core_type = #tpu.core_type<tc>, window_params = [{transform_indices = @transform_0, window_bounds = array<i64: 1, 16, 16, 4>}, {pipeline_mode = #tpu.pipeline_mode<synchronous>, transform_indices = @transform_1, window_bounds = array<i64: 36, 8>}, {pipeline_mode = #tpu.pipeline_mode<synchronous>, transform_indices = @transform_2, window_bounds = array<i64: 1, 8>}, {pipeline_mode = #tpu.pipeline_mode<synchronous>, transform_indices = @transform_3, window_bounds = array<i64: 76, 8>}, {pipeline_mode = #tpu.pipeline_mode<synchronous>, transform_indices = @transform_4, window_bounds = array<i64: 1, 8>}, {transform_indices = @transform_5, window_bounds = array<i64: 1, 8, 16, 8>}]} {
    %c8_i32 = arith.constant 8 : i32
    %0 = arith.muli %arg1, %c8_i32 : i32
    %cst = arith.constant 0.000000e+00 : f32
    %1 = vector.broadcast %cst : f32 to vector<12x1x4xf32>
    %c0 = arith.constant 0 : index
    %c0_0 = arith.constant 0 : index
    %c0_1 = arith.constant 0 : index
    %2 = vector.load %arg8[%c0, %c0_0, %c0_1] : memref<12x18x4xf32, #tpu.memory_space<vmem>>, vector<12x1x4xf32>
    tpu.vector_store %arg8[%c0, %c0_0, %c0_1], %1 {strides = array<i32>} : memref<12x18x4xf32, #tpu.memory_space<vmem>>, vector<12x1x4xf32>,
    %cst_2 = arith.constant 0.000000e+00 : f32
    %3 = vector.broadcast %cst_2 : f32 to vector<12x1x4xf32>
    %c0_3 = arith.constant 0 : index
    %c17 = arith.constant 17 : index
    %c0_4 = arith.constant 0 : index
    %4 = vector.load %arg8[%c0_3, %c17, %c0_4] : memref<12x18x4xf32, #tpu.memory_space<vmem>>, vector<12x1x4xf32>
    tpu.vector_store %arg8[%c0_3, %c17, %c0_4], %3 {strides = array<i32>} : memref<12x18x4xf32, #tpu.memory_space<vmem>>, vector<12x1x4xf32>,
    %cst_5 = arith.constant 0.000000e+00 : f32
    %5 = vector.broadcast %cst_5 : f32 to vector<10x1x8xf32>
    %c0_6 = arith.constant 0 : index
    %c0_7 = arith.constant 0 : index
    %c0_8 = arith.constant 0 : index
    %6 = vector.load %arg9[%c0_6, %c0_7, %c0_8] : memref<10x18x8xf32, #tpu.memory_space<vmem>>, vector<10x1x8xf32>
    tpu.vector_store %arg9[%c0_6, %c0_7, %c0_8], %5 {strides = array<i32>} : memref<10x18x8xf32, #tpu.memory_space<vmem>>, vector<10x1x8xf32>,
    %cst_9 = arith.constant 0.000000e+00 : f32
    %7 = vector.broadcast %cst_9 : f32 to vector<10x1x8xf32>
    %c0_10 = arith.constant 0 : index
    %c17_11 = arith.constant 17 : index
    %c0_12 = arith.constant 0 : index
    %8 = vector.load %arg9[%c0_10, %c17_11, %c0_12] : memref<10x18x8xf32, #tpu.memory_space<vmem>>, vector<10x1x8xf32>
    tpu.vector_store %arg9[%c0_10, %c17_11, %c0_12], %7 {strides = array<i32>} : memref<10x18x8xf32, #tpu.memory_space<vmem>>, vector<10x1x8xf32>,
    %c0_13 = arith.constant 0 : index
    %9 = arith.index_cast %0 : i32 to index
    %c0_14 = arith.constant 0 : index
    %c0_15 = arith.constant 0 : index
    %10 = vector.load %arg2[%c0_13, %9, %c0_14, %c0_15] : memref<1x16x16x4xf32, #tpu.memory_space<vmem>>, vector<1x8x16x4xf32>
    %11 = vector.shape_cast %10 : vector<1x8x16x4xf32> to vector<8x16x4xf32>
    %c2 = arith.constant 2 : index
    %c1 = arith.constant 1 : index
    %c0_16 = arith.constant 0 : index
    %12 = vector.load %arg8[%c2, %c1, %c0_16] : memref<12x18x4xf32, #tpu.memory_space<vmem>>, vector<8x16x4xf32>
    tpu.vector_store %arg8[%c2, %c1, %c0_16], %11 {strides = array<i32>} : memref<12x18x4xf32, #tpu.memory_space<vmem>>, vector<8x16x4xf32>,
    %c0_i32 = arith.constant 0 : i32
    %13 = arith.cmpi eq, %arg1, %c0_i32 : i32
    %14 = arith.extui %13 : i1 to i32
    %c0_i32_17 = arith.constant 0 : i32
    %15 = arith.cmpi ne, %14, %c0_i32_17 : i32
    scf.if %15 {
      %cst_132 = arith.constant 0.000000e+00 : f32
      %112 = vector.broadcast %cst_132 : f32 to vector<2x18x4xf32>
      %c0_133 = arith.constant 0 : index
      %c0_134 = arith.constant 0 : index
      %c0_135 = arith.constant 0 : index
      %113 = vector.load %arg8[%c0_133, %c0_134, %c0_135] : memref<12x18x4xf32, #tpu.memory_space<vmem>>, vector<2x18x4xf32>
      tpu.vector_store %arg8[%c0_133, %c0_134, %c0_135], %112 {strides = array<i32>} : memref<12x18x4xf32, #tpu.memory_space<vmem>>, vector<2x18x4xf32>,
    } else {
    }
    %c0_i32_18 = arith.constant 0 : i32
    %16 = arith.cmpi sgt, %arg1, %c0_i32_18 : i32
    %17 = arith.extui %16 : i1 to i32
    %c0_i32_19 = arith.constant 0 : i32
    %18 = arith.cmpi ne, %17, %c0_i32_19 : i32
    scf.if %18 {
      %c2_i32 = arith.constant 2 : i32
      %112 = arith.subi %0, %c2_i32 : i32
      %c0_132 = arith.constant 0 : index
      %113 = arith.index_cast %112 : i32 to index
      %c0_133 = arith.constant 0 : index
      %c0_134 = arith.constant 0 : index
      %114 = vector.load %arg2[%c0_132, %113, %c0_133, %c0_134] : memref<1x16x16x4xf32, #tpu.memory_space<vmem>>, vector<1x2x16x4xf32>
      %115 = vector.shape_cast %114 : vector<1x2x16x4xf32> to vector<2x16x4xf32>
      %c0_135 = arith.constant 0 : index
      %c1_136 = arith.constant 1 : index
      %c0_137 = arith.constant 0 : index
      %116 = vector.load %arg8[%c0_135, %c1_136, %c0_137] : memref<12x18x4xf32, #tpu.memory_space<vmem>>, vector<2x16x4xf32>
      tpu.vector_store %arg8[%c0_135, %c1_136, %c0_137], %115 {strides = array<i32>} : memref<12x18x4xf32, #tpu.memory_space<vmem>>, vector<2x16x4xf32>,
    } else {
    }
    %c1_i32 = arith.constant 1 : i32
    %19 = arith.cmpi eq, %arg1, %c1_i32 : i32
    %20 = arith.extui %19 : i1 to i32
    %c0_i32_20 = arith.constant 0 : i32
    %21 = arith.cmpi ne, %20, %c0_i32_20 : i32
    scf.if %21 {
      %cst_132 = arith.constant 0.000000e+00 : f32
      %112 = vector.broadcast %cst_132 : f32 to vector<2x18x4xf32>
      %c10 = arith.constant 10 : index
      %c0_133 = arith.constant 0 : index
      %c0_134 = arith.constant 0 : index
      %113 = vector.load %arg8[%c10, %c0_133, %c0_134] : memref<12x18x4xf32, #tpu.memory_space<vmem>>, vector<2x18x4xf32>
      tpu.vector_store %arg8[%c10, %c0_133, %c0_134], %112 {strides = array<i32>} : memref<12x18x4xf32, #tpu.memory_space<vmem>>, vector<2x18x4xf32>,
    } else {
    }
    %c1_i32_21 = arith.constant 1 : i32
    %22 = arith.cmpi slt, %arg1, %c1_i32_21 : i32
    %23 = arith.extui %22 : i1 to i32
    %c0_i32_22 = arith.constant 0 : i32
    %24 = arith.cmpi ne, %23, %c0_i32_22 : i32
    scf.if %24 {
      %c8_i32_132 = arith.constant 8 : i32
      %112 = arith.addi %0, %c8_i32_132 : i32
      %c0_133 = arith.constant 0 : index
      %113 = arith.index_cast %112 : i32 to index
      %c0_134 = arith.constant 0 : index
      %c0_135 = arith.constant 0 : index
      %114 = vector.load %arg2[%c0_133, %113, %c0_134, %c0_135] : memref<1x16x16x4xf32, #tpu.memory_space<vmem>>, vector<1x2x16x4xf32>
      %115 = vector.shape_cast %114 : vector<1x2x16x4xf32> to vector<2x16x4xf32>
      %c10 = arith.constant 10 : index
      %c1_136 = arith.constant 1 : index
      %c0_137 = arith.constant 0 : index
      %116 = vector.load %arg8[%c10, %c1_136, %c0_137] : memref<12x18x4xf32, #tpu.memory_space<vmem>>, vector<2x16x4xf32>
      tpu.vector_store %arg8[%c10, %c1_136, %c0_137], %115 {strides = array<i32>} : memref<12x18x4xf32, #tpu.memory_space<vmem>>, vector<2x16x4xf32>,
    } else {
    }
    %c0_23 = arith.constant 0 : index
    %c0_24 = arith.constant 0 : index
    %c0_25 = arith.constant 0 : index
    %25 = vector.load %arg8[%c0_23, %c0_24, %c0_25] : memref<12x18x4xf32, #tpu.memory_space<vmem>>, vector<10x16x4xf32>
    %26 = vector.shape_cast %25 : vector<10x16x4xf32> to vector<160x4xf32>
    %c0_26 = arith.constant 0 : index
    %c0_27 = arith.constant 0 : index
    %27 = vector.load %arg10[%c0_26, %c0_27] : memref<160x76xf32, #tpu.memory_space<vmem>>, vector<160x4xf32>
    tpu.vector_store %arg10[%c0_26, %c0_27], %26 {strides = array<i32>} : memref<160x76xf32, #tpu.memory_space<vmem>>, vector<160x4xf32>,
    %c0_28 = arith.constant 0 : index
    %c1_29 = arith.constant 1 : index
    %c0_30 = arith.constant 0 : index
    %28 = vector.load %arg8[%c0_28, %c1_29, %c0_30] : memref<12x18x4xf32, #tpu.memory_space<vmem>>, vector<10x16x4xf32>
    %29 = vector.shape_cast %28 : vector<10x16x4xf32> to vector<160x4xf32>
    %c0_31 = arith.constant 0 : index
    %c4 = arith.constant 4 : index
    %30 = vector.load %arg10[%c0_31, %c4] : memref<160x76xf32, #tpu.memory_space<vmem>>, vector<160x4xf32>
    tpu.vector_store %arg10[%c0_31, %c4], %29 {strides = array<i32>} : memref<160x76xf32, #tpu.memory_space<vmem>>, vector<160x4xf32>,
    %c0_32 = arith.constant 0 : index
    %c2_33 = arith.constant 2 : index
    %c0_34 = arith.constant 0 : index
    %31 = vector.load %arg8[%c0_32, %c2_33, %c0_34] : memref<12x18x4xf32, #tpu.memory_space<vmem>>, vector<10x16x4xf32>
    %32 = vector.shape_cast %31 : vector<10x16x4xf32> to vector<160x4xf32>
    %c0_35 = arith.constant 0 : index
    %c8 = arith.constant 8 : index
    %33 = vector.load %arg10[%c0_35, %c8] : memref<160x76xf32, #tpu.memory_space<vmem>>, vector<160x4xf32>
    tpu.vector_store %arg10[%c0_35, %c8], %32 {strides = array<i32>} : memref<160x76xf32, #tpu.memory_space<vmem>>, vector<160x4xf32>,
    %c1_36 = arith.constant 1 : index
    %c0_37 = arith.constant 0 : index
    %c0_38 = arith.constant 0 : index
    %34 = vector.load %arg8[%c1_36, %c0_37, %c0_38] : memref<12x18x4xf32, #tpu.memory_space<vmem>>, vector<10x16x4xf32>
    %35 = vector.shape_cast %34 : vector<10x16x4xf32> to vector<160x4xf32>
    %c0_39 = arith.constant 0 : index
    %c12 = arith.constant 12 : index
    %36 = vector.load %arg10[%c0_39, %c12] : memref<160x76xf32, #tpu.memory_space<vmem>>, vector<160x4xf32>
    tpu.vector_store %arg10[%c0_39, %c12], %35 {strides = array<i32>} : memref<160x76xf32, #tpu.memory_space<vmem>>, vector<160x4xf32>,
    %c1_40 = arith.constant 1 : index
    %c1_41 = arith.constant 1 : index
    %c0_42 = arith.constant 0 : index
    %37 = vector.load %arg8[%c1_40, %c1_41, %c0_42] : memref<12x18x4xf32, #tpu.memory_space<vmem>>, vector<10x16x4xf32>
    %38 = vector.shape_cast %37 : vector<10x16x4xf32> to vector<160x4xf32>
    %c0_43 = arith.constant 0 : index
    %c16 = arith.constant 16 : index
    %39 = vector.load %arg10[%c0_43, %c16] : memref<160x76xf32, #tpu.memory_space<vmem>>, vector<160x4xf32>
    tpu.vector_store %arg10[%c0_43, %c16], %38 {strides = array<i32>} : memref<160x76xf32, #tpu.memory_space<vmem>>, vector<160x4xf32>,
    %c1_44 = arith.constant 1 : index
    %c2_45 = arith.constant 2 : index
    %c0_46 = arith.constant 0 : index
    %40 = vector.load %arg8[%c1_44, %c2_45, %c0_46] : memref<12x18x4xf32, #tpu.memory_space<vmem>>, vector<10x16x4xf32>
    %41 = vector.shape_cast %40 : vector<10x16x4xf32> to vector<160x4xf32>
    %c0_47 = arith.constant 0 : index
    %c20 = arith.constant 20 : index
    %42 = vector.load %arg10[%c0_47, %c20] : memref<160x76xf32, #tpu.memory_space<vmem>>, vector<160x4xf32>
    tpu.vector_store %arg10[%c0_47, %c20], %41 {strides = array<i32>} : memref<160x76xf32, #tpu.memory_space<vmem>>, vector<160x4xf32>,
    %c2_48 = arith.constant 2 : index
    %c0_49 = arith.constant 0 : index
    %c0_50 = arith.constant 0 : index
    %43 = vector.load %arg8[%c2_48, %c0_49, %c0_50] : memref<12x18x4xf32, #tpu.memory_space<vmem>>, vector<10x16x4xf32>
    %44 = vector.shape_cast %43 : vector<10x16x4xf32> to vector<160x4xf32>
    %c0_51 = arith.constant 0 : index
    %c24 = arith.constant 24 : index
    %45 = vector.load %arg10[%c0_51, %c24] : memref<160x76xf32, #tpu.memory_space<vmem>>, vector<160x4xf32>
    tpu.vector_store %arg10[%c0_51, %c24], %44 {strides = array<i32>} : memref<160x76xf32, #tpu.memory_space<vmem>>, vector<160x4xf32>,
    %c2_52 = arith.constant 2 : index
    %c1_53 = arith.constant 1 : index
    %c0_54 = arith.constant 0 : index
    %46 = vector.load %arg8[%c2_52, %c1_53, %c0_54] : memref<12x18x4xf32, #tpu.memory_space<vmem>>, vector<10x16x4xf32>
    %47 = vector.shape_cast %46 : vector<10x16x4xf32> to vector<160x4xf32>
    %c0_55 = arith.constant 0 : index
    %c28 = arith.constant 28 : index
    %48 = vector.load %arg10[%c0_55, %c28] : memref<160x76xf32, #tpu.memory_space<vmem>>, vector<160x4xf32>
    tpu.vector_store %arg10[%c0_55, %c28], %47 {strides = array<i32>} : memref<160x76xf32, #tpu.memory_space<vmem>>, vector<160x4xf32>,
    %c2_56 = arith.constant 2 : index
    %c2_57 = arith.constant 2 : index
    %c0_58 = arith.constant 0 : index
    %49 = vector.load %arg8[%c2_56, %c2_57, %c0_58] : memref<12x18x4xf32, #tpu.memory_space<vmem>>, vector<10x16x4xf32>
    %50 = vector.shape_cast %49 : vector<10x16x4xf32> to vector<160x4xf32>
    %c0_59 = arith.constant 0 : index
    %c32 = arith.constant 32 : index
    %51 = vector.load %arg10[%c0_59, %c32] : memref<160x76xf32, #tpu.memory_space<vmem>>, vector<160x4xf32>
    tpu.vector_store %arg10[%c0_59, %c32], %50 {strides = array<i32>} : memref<160x76xf32, #tpu.memory_space<vmem>>, vector<160x4xf32>,
    %c0_60 = arith.constant 0 : index
    %c0_61 = arith.constant 0 : index
    %52 = vector.load %arg10[%c0_60, %c0_61] : memref<160x76xf32, #tpu.memory_space<vmem>>, vector<160x36xf32>
    %c0_62 = arith.constant 0 : index
    %c0_63 = arith.constant 0 : index
    %53 = vector.load %arg3[%c0_62, %c0_63] : memref<36x8xf32, #tpu.memory_space<vmem>>, vector<36x8xf32>
    %cst_64 = arith.constant dense<0.000000e+00> : vector<160x8xf32>
    %54 = tpu.matmul %52, %53, %cst_64 {dimension_numbers = #tpu.dot_dimension_numbers<[1], [0], [0], [1], [0, 0, 1, 1], [], []>} : vector<160x36xf32>, vector<36x8xf32>, vector<160x8xf32> -> vector<160x8xf32>
    %c0_65 = arith.constant 0 : index
    %c0_66 = arith.constant 0 : index
    %55 = vector.load %arg4[%c0_65, %c0_66] : memref<1x8xf32, #tpu.memory_space<vmem>>, vector<1x8xf32>
    %56 = vector.broadcast %55 : vector<1x8xf32> to vector<160x8xf32>
    %57 = arith.addf %54, %56 : vector<160x8xf32>
    %cst_67 = arith.constant 0.000000e+00 : f32
    %58 = vector.broadcast %cst_67 : f32 to vector<160x8xf32>
    %59 = arith.maximumf %57, %58 : vector<160x8xf32>
    %60 = vector.shape_cast %59 : vector<160x8xf32> to vector<10x16x8xf32>
    %c0_68 = arith.constant 0 : index
    %c1_69 = arith.constant 1 : index
    %c0_70 = arith.constant 0 : index
    %61 = vector.load %arg9[%c0_68, %c1_69, %c0_70] : memref<10x18x8xf32, #tpu.memory_space<vmem>>, vector<10x16x8xf32>
    tpu.vector_store %arg9[%c0_68, %c1_69, %c0_70], %60 {strides = array<i32>} : memref<10x18x8xf32, #tpu.memory_space<vmem>>, vector<10x16x8xf32>,
    %c0_i32_71 = arith.constant 0 : i32
    %62 = arith.cmpi eq, %arg1, %c0_i32_71 : i32
    %63 = arith.extui %62 : i1 to i32
    %c0_i32_72 = arith.constant 0 : i32
    %64 = arith.cmpi ne, %63, %c0_i32_72 : i32
    scf.if %64 {
      %cst_132 = arith.constant 0.000000e+00 : f32
      %112 = vector.broadcast %cst_132 : f32 to vector<1x18x8xf32>
      %c0_133 = arith.constant 0 : index
      %c0_134 = arith.constant 0 : index
      %c0_135 = arith.constant 0 : index
      %113 = vector.load %arg9[%c0_133, %c0_134, %c0_135] : memref<10x18x8xf32, #tpu.memory_space<vmem>>, vector<1x18x8xf32>
      tpu.vector_store %arg9[%c0_133, %c0_134, %c0_135], %112 {strides = array<i32>} : memref<10x18x8xf32, #tpu.memory_space<vmem>>, vector<1x18x8xf32>,
    } else {
    }
    %c1_i32_73 = arith.constant 1 : i32
    %65 = arith.cmpi eq, %arg1, %c1_i32_73 : i32
    %66 = arith.extui %65 : i1 to i32
    %c0_i32_74 = arith.constant 0 : i32
    %67 = arith.cmpi ne, %66, %c0_i32_74 : i32
    scf.if %67 {
      %cst_132 = arith.constant 0.000000e+00 : f32
      %112 = vector.broadcast %cst_132 : f32 to vector<1x18x8xf32>
      %c9 = arith.constant 9 : index
      %c0_133 = arith.constant 0 : index
      %c0_134 = arith.constant 0 : index
      %113 = vector.load %arg9[%c9, %c0_133, %c0_134] : memref<10x18x8xf32, #tpu.memory_space<vmem>>, vector<1x18x8xf32>
      tpu.vector_store %arg9[%c9, %c0_133, %c0_134], %112 {strides = array<i32>} : memref<10x18x8xf32, #tpu.memory_space<vmem>>, vector<1x18x8xf32>,
    } else {
    }
    %c0_75 = arith.constant 0 : index
    %c0_76 = arith.constant 0 : index
    %c0_77 = arith.constant 0 : index
    %68 = vector.load %arg9[%c0_75, %c0_76, %c0_77] : memref<10x18x8xf32, #tpu.memory_space<vmem>>, vector<8x16x8xf32>
    %69 = vector.shape_cast %68 : vector<8x16x8xf32> to vector<128x8xf32>
    %c0_78 = arith.constant 0 : index
    %c0_79 = arith.constant 0 : index
    %70 = vector.load %arg10[%c0_78, %c0_79] : memref<160x76xf32, #tpu.memory_space<vmem>>, vector<128x8xf32>
    tpu.vector_store %arg10[%c0_78, %c0_79], %69 {strides = array<i32>} : memref<160x76xf32, #tpu.memory_space<vmem>>, vector<128x8xf32>,
    %c0_80 = arith.constant 0 : index
    %c1_81 = arith.constant 1 : index
    %c0_82 = arith.constant 0 : index
    %71 = vector.load %arg9[%c0_80, %c1_81, %c0_82] : memref<10x18x8xf32, #tpu.memory_space<vmem>>, vector<8x16x8xf32>
    %72 = vector.shape_cast %71 : vector<8x16x8xf32> to vector<128x8xf32>
    %c0_83 = arith.constant 0 : index
    %c8_84 = arith.constant 8 : index
    %73 = vector.load %arg10[%c0_83, %c8_84] : memref<160x76xf32, #tpu.memory_space<vmem>>, vector<128x8xf32>
    tpu.vector_store %arg10[%c0_83, %c8_84], %72 {strides = array<i32>} : memref<160x76xf32, #tpu.memory_space<vmem>>, vector<128x8xf32>,
    %c0_85 = arith.constant 0 : index
    %c2_86 = arith.constant 2 : index
    %c0_87 = arith.constant 0 : index
    %74 = vector.load %arg9[%c0_85, %c2_86, %c0_87] : memref<10x18x8xf32, #tpu.memory_space<vmem>>, vector<8x16x8xf32>
    %75 = vector.shape_cast %74 : vector<8x16x8xf32> to vector<128x8xf32>
    %c0_88 = arith.constant 0 : index
    %c16_89 = arith.constant 16 : index
    %76 = vector.load %arg10[%c0_88, %c16_89] : memref<160x76xf32, #tpu.memory_space<vmem>>, vector<128x8xf32>
    tpu.vector_store %arg10[%c0_88, %c16_89], %75 {strides = array<i32>} : memref<160x76xf32, #tpu.memory_space<vmem>>, vector<128x8xf32>,
    %c1_90 = arith.constant 1 : index
    %c0_91 = arith.constant 0 : index
    %c0_92 = arith.constant 0 : index
    %77 = vector.load %arg9[%c1_90, %c0_91, %c0_92] : memref<10x18x8xf32, #tpu.memory_space<vmem>>, vector<8x16x8xf32>
    %78 = vector.shape_cast %77 : vector<8x16x8xf32> to vector<128x8xf32>
    %c0_93 = arith.constant 0 : index
    %c24_94 = arith.constant 24 : index
    %79 = vector.load %arg10[%c0_93, %c24_94] : memref<160x76xf32, #tpu.memory_space<vmem>>, vector<128x8xf32>
    tpu.vector_store %arg10[%c0_93, %c24_94], %78 {strides = array<i32>} : memref<160x76xf32, #tpu.memory_space<vmem>>, vector<128x8xf32>,
    %c1_95 = arith.constant 1 : index
    %c1_96 = arith.constant 1 : index
    %c0_97 = arith.constant 0 : index
    %80 = vector.load %arg9[%c1_95, %c1_96, %c0_97] : memref<10x18x8xf32, #tpu.memory_space<vmem>>, vector<8x16x8xf32>
    %81 = vector.shape_cast %80 : vector<8x16x8xf32> to vector<128x8xf32>
    %c0_98 = arith.constant 0 : index
    %c32_99 = arith.constant 32 : index
    %82 = vector.load %arg10[%c0_98, %c32_99] : memref<160x76xf32, #tpu.memory_space<vmem>>, vector<128x8xf32>
    tpu.vector_store %arg10[%c0_98, %c32_99], %81 {strides = array<i32>} : memref<160x76xf32, #tpu.memory_space<vmem>>, vector<128x8xf32>,
    %c1_100 = arith.constant 1 : index
    %c2_101 = arith.constant 2 : index
    %c0_102 = arith.constant 0 : index
    %83 = vector.load %arg9[%c1_100, %c2_101, %c0_102] : memref<10x18x8xf32, #tpu.memory_space<vmem>>, vector<8x16x8xf32>
    %84 = vector.shape_cast %83 : vector<8x16x8xf32> to vector<128x8xf32>
    %c0_103 = arith.constant 0 : index
    %c40 = arith.constant 40 : index
    %85 = vector.load %arg10[%c0_103, %c40] : memref<160x76xf32, #tpu.memory_space<vmem>>, vector<128x8xf32>
    tpu.vector_store %arg10[%c0_103, %c40], %84 {strides = array<i32>} : memref<160x76xf32, #tpu.memory_space<vmem>>, vector<128x8xf32>,
    %c2_104 = arith.constant 2 : index
    %c0_105 = arith.constant 0 : index
    %c0_106 = arith.constant 0 : index
    %86 = vector.load %arg9[%c2_104, %c0_105, %c0_106] : memref<10x18x8xf32, #tpu.memory_space<vmem>>, vector<8x16x8xf32>
    %87 = vector.shape_cast %86 : vector<8x16x8xf32> to vector<128x8xf32>
    %c0_107 = arith.constant 0 : index
    %c48 = arith.constant 48 : index
    %88 = vector.load %arg10[%c0_107, %c48] : memref<160x76xf32, #tpu.memory_space<vmem>>, vector<128x8xf32>
    tpu.vector_store %arg10[%c0_107, %c48], %87 {strides = array<i32>} : memref<160x76xf32, #tpu.memory_space<vmem>>, vector<128x8xf32>,
    %c2_108 = arith.constant 2 : index
    %c1_109 = arith.constant 1 : index
    %c0_110 = arith.constant 0 : index
    %89 = vector.load %arg9[%c2_108, %c1_109, %c0_110] : memref<10x18x8xf32, #tpu.memory_space<vmem>>, vector<8x16x8xf32>
    %90 = vector.shape_cast %89 : vector<8x16x8xf32> to vector<128x8xf32>
    %c0_111 = arith.constant 0 : index
    %c56 = arith.constant 56 : index
    %91 = vector.load %arg10[%c0_111, %c56] : memref<160x76xf32, #tpu.memory_space<vmem>>, vector<128x8xf32>
    tpu.vector_store %arg10[%c0_111, %c56], %90 {strides = array<i32>} : memref<160x76xf32, #tpu.memory_space<vmem>>, vector<128x8xf32>,
    %c2_112 = arith.constant 2 : index
    %c2_113 = arith.constant 2 : index
    %c0_114 = arith.constant 0 : index
    %92 = vector.load %arg9[%c2_112, %c2_113, %c0_114] : memref<10x18x8xf32, #tpu.memory_space<vmem>>, vector<8x16x8xf32>
    %93 = vector.shape_cast %92 : vector<8x16x8xf32> to vector<128x8xf32>
    %c0_115 = arith.constant 0 : index
    %c64 = arith.constant 64 : index
    %94 = vector.load %arg10[%c0_115, %c64] : memref<160x76xf32, #tpu.memory_space<vmem>>, vector<128x8xf32>
    tpu.vector_store %arg10[%c0_115, %c64], %93 {strides = array<i32>} : memref<160x76xf32, #tpu.memory_space<vmem>>, vector<128x8xf32>,
    %c0_116 = arith.constant 0 : index
    %95 = arith.index_cast %0 : i32 to index
    %c0_117 = arith.constant 0 : index
    %c0_118 = arith.constant 0 : index
    %96 = vector.load %arg2[%c0_116, %95, %c0_117, %c0_118] : memref<1x16x16x4xf32, #tpu.memory_space<vmem>>, vector<1x8x16x4xf32>
    %97 = vector.shape_cast %96 : vector<1x8x16x4xf32> to vector<8x16x4xf32>
    %98 = vector.shape_cast %97 : vector<8x16x4xf32> to vector<128x4xf32>
    %c0_119 = arith.constant 0 : index
    %c72 = arith.constant 72 : index
    %99 = vector.load %arg10[%c0_119, %c72] : memref<160x76xf32, #tpu.memory_space<vmem>>, vector<128x4xf32>
    tpu.vector_store %arg10[%c0_119, %c72], %98 {strides = array<i32>} : memref<160x76xf32, #tpu.memory_space<vmem>>, vector<128x4xf32>,
    %c0_120 = arith.constant 0 : index
    %c0_121 = arith.constant 0 : index
    %100 = vector.load %arg10[%c0_120, %c0_121] : memref<160x76xf32, #tpu.memory_space<vmem>>, vector<128x76xf32>
    %c0_122 = arith.constant 0 : index
    %c0_123 = arith.constant 0 : index
    %101 = vector.load %arg5[%c0_122, %c0_123] : memref<76x8xf32, #tpu.memory_space<vmem>>, vector<76x8xf32>
    %cst_124 = arith.constant dense<0.000000e+00> : vector<128x8xf32>
    %102 = tpu.matmul %100, %101, %cst_124 {dimension_numbers = #tpu.dot_dimension_numbers<[1], [0], [0], [1], [0, 0, 1, 1], [], []>} : vector<128x76xf32>, vector<76x8xf32>, vector<128x8xf32> -> vector<128x8xf32>
    %c0_125 = arith.constant 0 : index
    %c0_126 = arith.constant 0 : index
    %103 = vector.load %arg6[%c0_125, %c0_126] : memref<1x8xf32, #tpu.memory_space<vmem>>, vector<1x8xf32>
    %104 = vector.broadcast %103 : vector<1x8xf32> to vector<128x8xf32>
    %105 = arith.addf %102, %104 : vector<128x8xf32>
    %cst_127 = arith.constant 0.000000e+00 : f32
    %106 = vector.broadcast %cst_127 : f32 to vector<128x8xf32>
    %107 = arith.maximumf %105, %106 : vector<128x8xf32>
    %108 = vector.shape_cast %107 : vector<128x8xf32> to vector<8x16x8xf32>
    %c0_128 = arith.constant 0 : index
    %c0_129 = arith.constant 0 : index
    %c0_130 = arith.constant 0 : index
    %c0_131 = arith.constant 0 : index
    %109 = vector.load %arg7[%c0_128, %c0_129, %c0_130, %c0_131] : memref<1x8x16x8xf32, #tpu.memory_space<vmem>>, vector<1x8x16x8xf32>
    %110 = vector.shape_cast %109 : vector<1x8x16x8xf32> to vector<8x16x8xf32>
    %111 = vector.shape_cast %108 : vector<8x16x8xf32> to vector<1x8x16x8xf32>
    tpu.vector_store %arg7[%c0_128, %c0_129, %c0_130, %c0_131], %111 {strides = array<i32>} : memref<1x8x16x8xf32, #tpu.memory_space<vmem>>, vector<1x8x16x8xf32>,
    return
  }
  func.func @transform_0(%arg0: i32, %arg1: i32) -> (i32, i32, i32, i32) {
    %c0_i32 = arith.constant 0 : i32
    %c0_i32_0 = arith.constant 0 : i32
    %c0_i32_1 = arith.constant 0 : i32
    %c0_i32_2 = arith.constant 0 : i32
    return %arg0, %c0_i32, %c0_i32_0, %c0_i32_1 : i32, i32, i32, i32
  }
  func.func @transform_1(%arg0: i32, %arg1: i32) -> (i32, i32) {
    %c0_i32 = arith.constant 0 : i32
    %c0_i32_0 = arith.constant 0 : i32
    %c0_i32_1 = arith.constant 0 : i32
    return %c0_i32, %c0_i32_0 : i32, i32
  }
  func.func @transform_2(%arg0: i32, %arg1: i32) -> (i32, i32) {
    %c0_i32 = arith.constant 0 : i32
    %c0_i32_0 = arith.constant 0 : i32
    %c0_i32_1 = arith.constant 0 : i32
    return %c0_i32, %c0_i32_0 : i32, i32
  }
  func.func @transform_3(%arg0: i32, %arg1: i32) -> (i32, i32) {
    %c0_i32 = arith.constant 0 : i32
    %c0_i32_0 = arith.constant 0 : i32
    %c0_i32_1 = arith.constant 0 : i32
    return %c0_i32, %c0_i32_0 : i32, i32
  }
  func.func @transform_4(%arg0: i32, %arg1: i32) -> (i32, i32) {
    %c0_i32 = arith.constant 0 : i32
    %c0_i32_0 = arith.constant 0 : i32
    %c0_i32_1 = arith.constant 0 : i32
    return %c0_i32, %c0_i32_0 : i32, i32
  }
  func.func @transform_5(%arg0: i32, %arg1: i32) -> (i32, i32, i32, i32) {
    %c0_i32 = arith.constant 0 : i32
    %c0_i32_0 = arith.constant 0 : i32
    %c0_i32_1 = arith.constant 0 : i32
    return %arg0, %arg1, %c0_i32, %c0_i32_0 : i32, i32, i32, i32
  }
}

</mosaic_0001>

<bundles_post_ra>
// kernel: tpu_custom_call.1
= control target key start
LH: loop header
LB: loop body
LE: loop exit
PB: predicated region body
PF: predicated region fallthrough
CT: control target
= control target key end

     0   :  { %s3366_s18 = smov 0   ;;  %s3368_s19 = smov 0   ;;  %s4514_s0 = inlined_call_operand.vmem [shape: f32[2,16,16,4], index: 0, kind: input, shape index: {}]   ;;  %s4515_s1 = inlined_call_operand.vmem [shape: f32[36,8], index: 1, kind: input, shape index: {}]   ;;  %s4516_s2 = inlined_call_operand.vmem [shape: f32[1,8], index: 2, kind: input, shape index: {}]   ;;  %s4517_s3 = inlined_call_operand.vmem [shape: f32[76,8], index: 3, kind: input, shape index: {}]   ;;  %s4518_s4 = inlined_call_operand.vmem [shape: f32[1,8], index: 4, kind: input, shape index: {}]   ;;  %s4519_s5 = inlined_call_operand.vmem [shape: f32[2,16,16,8], index: 5, kind: output, shape index: {}]  }
   0x1   :  { %s3370_s20 = smov 0   ;;  %s3372_s21 = smov 0  }
   0x2   :  { %s3374_s22 = smov 0  }
   0x3 LB: > { %s24_s23 = sadd.s32 1, %s3307_s20  ;;  %s27_s24 = sadd.s32 1, %s3311_s21  ;;  %s3315_s22 = sphi %s3374_s22, %s15_s22   ;;  %s3311_s21 = sphi %s3372_s21, %s4523_s21   ;;  %s3307_s20 = sphi %s3370_s20, %s4522_s20   ;;  %s3303_s19 = sphi %s3368_s19, %s4521_s19   ;;  %s3299_s18 = sphi %s3366_s18, %s4520_s18  }
   0x4   : > { %p25_p0 = scmp.ge.s32.totalorder %s24_s23, 2  ;;  %p2985_p1 = scmp.ge.s32.totalorder %s3315_s22, 1 }
   0x5   : > { %p201_p2 = scmp.lt.s32.totalorder %s3315_s22, 5 }
   0x6   : > { %s4525_s23 = smov (%p25_p0, %s24_s23), 0  ;;  %s4527_s24 = smov (!%p25_p0, %s27_s24), %s3311_s21 }
   0x7   : > { %p202_p3 = pnand %p2985_p1, %p201_p2  ;;  %p29_p4 = scmp.ge.s32.totalorder %s4527_s24, 2 }
   0x8   : > { %vm251_vm0 = vcmask (!%p202_p3), 24576   ;;  %vm276_vm1 = vcmask (!%p202_p3), 57344   ;;  %p234_p5 = scmp.lt.s32.totalorder (!%p202_p3), %s3303_s19, 1  ;;  %s3402_s25 = sshll.u32 (!%p202_p3), %s3299_s18, 3  ;;  %v3317_v0 = vmov (!%p202_p3), 0.0   ;;  %vm316_vm2 = vcmask (!%p202_p3), 31744  }
   0x9   : > { %s4529_s24 = smov (%p29_p4, %s4527_s24), 0  ;;  %205 = sbr.rel (%p202_p3) target bundleno = 1365 (0x555), region = 40 }
   0xa   : > { %252 = vst.msk [vmem:[#allocation2] sm:$0x1] (!%p202_p3), %vm251_vm0, %v3317_v0  ;;  %253 = vst.msk [vmem:[#allocation2 + $0x18] sm:$0x1] (!%p202_p3), %vm251_vm0, %v3317_v0  ;;  %p242_p6 = scmp.lt.s32.totalorder (!%p202_p3), %s3402_s25, 15  ;;  %s3051_s26 = sshll.u32 (!%p202_p3), %s3299_s18, 7 }
   0xb   : > { %254 = vst.msk [vmem:[#allocation2 + $0x30] sm:$0x1] (!%p202_p3), %vm251_vm0, %v3317_v0  ;;  %255 = vst.msk [vmem:[#allocation2 + $0x48] sm:$0x1] (!%p202_p3), %vm251_vm0, %v3317_v0  ;;  %p2994_p7 = scmp.ne.s32.totalorder (!%p202_p3), %s3299_s18, 0 }
   0xc   : > { %256 = vst.msk [vmem:[#allocation2 + $0x60] sm:$0x1] (!%p202_p3), %vm251_vm0, %v3317_v0  ;;  %257 = vst.msk [vmem:[#allocation2 + $0x78] sm:$0x1] (!%p202_p3), %vm251_vm0, %v3317_v0 }
   0xd   : > { %258 = vst.msk [vmem:[#allocation2 + $0x90] sm:$0x1] (!%p202_p3), %vm251_vm0, %v3317_v0  ;;  %259 = vst.msk [vmem:[#allocation2 + $0xa8] sm:$0x1] (!%p202_p3), %vm251_vm0, %v3317_v0 }
   0xe   : > { %260 = vst.msk [vmem:[#allocation2 + $0xc0] sm:$0x1] (!%p202_p3), %vm251_vm0, %v3317_v0  ;;  %261 = vst.msk [vmem:[#allocation2 + $0xd8] sm:$0x1] (!%p202_p3), %vm251_vm0, %v3317_v0 }
   0xf   : > { %262 = vst.msk [vmem:[#allocation2 + $0xf0] sm:$0x1] (!%p202_p3), %vm251_vm0, %v3317_v0  ;;  %263 = vst.msk [vmem:[#allocation2 + $0x108] sm:$0x1] (!%p202_p3), %vm251_vm0, %v3317_v0 }
  0x10   : > { %264 = vst.msk [vmem:[#allocation2 + $0x11] sm:$0x1] %vm251_vm0, %v3317_v0  ;;  %265 = vst.msk [vmem:[#allocation2 + $0x29] sm:$0x1] %vm251_vm0, %v3317_v0  ;;  %s4531_s19 = smov (!%p234_p5, %s3303_s19), 1  ;;  %vm339_vm3 = vcmask (!%p2994_p7), 25600  }
  0x11   : > { %266 = vst.msk [vmem:[#allocation2 + $0x41] sm:$0x1] %vm251_vm0, %v3317_v0  ;;  %267 = vst.msk [vmem:[#allocation2 + $0x59] sm:$0x1] %vm251_vm0, %v3317_v0  ;;  %s243_s27 = scalar_select %p242_p6, %s3402_s25, 15 }
  0x12   : > { %268 = vst.msk [vmem:[#allocation2 + $0x71] sm:$0x1] %vm251_vm0, %v3317_v0  ;;  %269 = vst.msk [vmem:[#allocation2 + $0x89] sm:$0x1] %vm251_vm0, %v3317_v0  ;;  %s3050_s28 = sshll.u32 %s4531_s19, 8  ;;  %s2990_s29 = sshll.u32 %s4531_s19, 5 }
  0x13   : > { %270 = vst.msk [vmem:[#allocation2 + $0xa1] sm:$0x1] %vm251_vm0, %v3317_v0  ;;  %271 = vst.msk [vmem:[#allocation2 + $0xb9] sm:$0x1] %vm251_vm0, %v3317_v0  ;;  %s3457_s7 = scalar_lea.vmem %s4514_s0, %s3050_s28  ;;  %s2989_s8 = sshll.u32 %s243_s27, 1  ;;  %v3318_v17 = vmov (!%p2994_p7), 0.0  }
  0x14   : > { %272 = vst.msk [vmem:[#allocation2 + $0xd1] sm:$0x1] %vm251_vm0, %v3317_v0  ;;  %273 = vst.msk [vmem:[#allocation2 + $0xe9] sm:$0x1] %vm251_vm0, %v3317_v0  ;;  %s246_s9 = sadd.s32 %s2990_s29, %s2989_s8  ;;  %s3460_s10 = scalar_lea.vmem %s3457_s7, %s3051_s26 }
  0x15   : > { %274 = vst.msk [vmem:[#allocation2 + $0x101] sm:$0x1] %vm251_vm0, %v3317_v0  ;;  %275 = vst.msk [vmem:[#allocation2 + $0x119] sm:$0x1] %vm251_vm0, %v3317_v0  ;;  %s2991_s11 = sshll.u32 %s246_s9, 3  ;;  %v299_v1 = vld [vmem:[%s3460_s10] sm:$0xff] }
  0x16   : > { %277 = vst.msk [vmem:[#allocation3] sm:$0x1] %vm276_vm1, %v3317_v0  ;;  %278 = vst.msk [vmem:[#allocation3 + $0x18] sm:$0x1] %vm276_vm1, %v3317_v0  ;;  %v300_v2 = vld [vmem:[%s3460_s10 + $0x8] sm:$0xff]  ;;  %v301_v3 = vld [vmem:[%s3460_s10 + $0x10] sm:$0xff]  ;;  %s3468_s14 = scalar_lea.vmem %s4519_s5, %s2991_s11 }
  0x17   : > { %279 = vst.msk [vmem:[#allocation3 + $0x30] sm:$0x1] %vm276_vm1, %v3317_v0  ;;  %280 = vst.msk [vmem:[#allocation3 + $0x48] sm:$0x1] %vm276_vm1, %v3317_v0  ;;  %v302_v4 = vld [vmem:[%s3460_s10 + $0x18] sm:$0xff]  ;;  %v303_v5 = vld [vmem:[%s3460_s10 + $0x20] sm:$0xff] }
  0x18   : > { %281 = vst.msk [vmem:[#allocation3 + $0x60] sm:$0x1] %vm276_vm1, %v3317_v0  ;;  %282 = vst.msk [vmem:[#allocation3 + $0x78] sm:$0x1] %vm276_vm1, %v3317_v0  ;;  %v304_v6 = vld [vmem:[%s3460_s10 + $0x28] sm:$0xff]  ;;  %v305_v7 = vld [vmem:[%s3460_s10 + $0x30] sm:$0xff] }
  0x19   : > { %283 = vst.msk [vmem:[#allocation3 + $0x90] sm:$0x1] %vm276_vm1, %v3317_v0  ;;  %284 = vst.msk [vmem:[#allocation3 + $0xa8] sm:$0x1] %vm276_vm1, %v3317_v0  ;;  %v306_v8 = vld [vmem:[%s3460_s10 + $0x38] sm:$0xff]  ;;  %v307_v9 = vld [vmem:[%s3460_s10 + $0x40] sm:$0xff] }
  0x1a   : > { %285 = vst.msk [vmem:[#allocation3 + $0xc0] sm:$0x1] %vm276_vm1, %v3317_v0  ;;  %286 = vst.msk [vmem:[#allocation3 + $0xd8] sm:$0x1] %vm276_vm1, %v3317_v0  ;;  %v308_v10 = vld [vmem:[%s3460_s10 + $0x48] sm:$0xff]  ;;  %v309_v11 = vld [vmem:[%s3460_s10 + $0x50] sm:$0xff] }
  0x1b   : > { %287 = vst.msk [vmem:[#allocation3 + $0x11] sm:$0x1] %vm276_vm1, %v3317_v0  ;;  %288 = vst.msk [vmem:[#allocation3 + $0x29] sm:$0x1] %vm276_vm1, %v3317_v0  ;;  %v310_v12 = vld [vmem:[%s3460_s10 + $0x58] sm:$0xff]  ;;  %v311_v13 = vld [vmem:[%s3460_s10 + $0x60] sm:$0xff] }
  0x1c   : > { %289 = vst.msk [vmem:[#allocation3 + $0x41] sm:$0x1] %vm276_vm1, %v3317_v0  ;;  %290 = vst.msk [vmem:[#allocation3 + $0x59] sm:$0x1] %vm276_vm1, %v3317_v0  ;;  %v312_v14 = vld [vmem:[%s3460_s10 + $0x68] sm:$0xff]  ;;  %v313_v15 = vld [vmem:[%s3460_s10 + $0x70] sm:$0xff] }
  0x1d   : > { %291 = vst.msk [vmem:[#allocation3 + $0x71] sm:$0x1] %vm276_vm1, %v3317_v0  ;;  %292 = vst.msk [vmem:[#allocation3 + $0x89] sm:$0x1] %vm276_vm1, %v3317_v0  ;;  %v314_v16 = vld [vmem:[%s3460_s10 + $0x78] sm:$0xff] }
  0x1e   : > { %293 = vst.msk [vmem:[#allocation3 + $0xa1] sm:$0x1] %vm276_vm1, %v3317_v0  ;;  %294 = vst.msk [vmem:[#allocation3 + $0xb9] sm:$0x1] %vm276_vm1, %v3317_v0 }
  0x1f   : > { %295 = vst.msk [vmem:[#allocation3 + $0xd1] sm:$0x1] %vm276_vm1, %v3317_v0  ;;  %296 = vst.msk [vmem:[#allocation3 + $0xe9] sm:$0x1] %vm276_vm1, %v3317_v0 }
  0x20   : > { %317 = vst.msk [vmem:[#allocation2 + $0x31] sm:$0xff] %vm316_vm2, %v299_v1  ;;  %318 = vst.msk [vmem:[#allocation2 + $0x39] sm:$0xff] %vm316_vm2, %v300_v2 }
  0x21   : > { %319 = vst.msk [vmem:[#allocation2 + $0x49] sm:$0xff] %vm316_vm2, %v301_v3  ;;  %320 = vst.msk [vmem:[#allocation2 + $0x51] sm:$0xff] %vm316_vm2, %v302_v4  ;;  %336 = sbr.rel (%p2994_p7) target bundleno = 43 (0x2b), region = 44 }
  0x22   : > { %321 = vst.msk [vmem:[#allocation2 + $0x61] sm:$0xff] %vm316_vm2, %v303_v5  ;;  %322 = vst.msk [vmem:[#allocation2 + $0x69] sm:$0xff] %vm316_vm2, %v304_v6 }
  0x23   : > { %323 = vst.msk [vmem:[#allocation2 + $0x79] sm:$0xff] %vm316_vm2, %v305_v7  ;;  %324 = vst.msk [vmem:[#allocation2 + $0x81] sm:$0xff] %vm316_vm2, %v306_v8 }
  0x24   : > { %325 = vst.msk [vmem:[#allocation2 + $0x91] sm:$0xff] %vm316_vm2, %v307_v9  ;;  %326 = vst.msk [vmem:[#allocation2 + $0x99] sm:$0xff] %vm316_vm2, %v308_v10 }
  0x25   : > { %327 = vst.msk [vmem:[#allocation2 + $0xa9] sm:$0xff] %vm316_vm2, %v309_v11  ;;  %328 = vst.msk [vmem:[#allocation2 + $0xb1] sm:$0xff] %vm316_vm2, %v310_v12 }
  0x26   : > { %329 = vst.msk [vmem:[#allocation2 + $0xc1] sm:$0xff] %vm316_vm2, %v311_v13  ;;  %330 = vst.msk [vmem:[#allocation2 + $0xc9] sm:$0xff] %vm316_vm2, %v312_v14 }
  0x27   : > { %331 = vst.msk [vmem:[#allocation2 + $0xd9] sm:$0xff] %vm316_vm2, %v313_v15  ;;  %332 = vst.msk [vmem:[#allocation2 + $0xe1] sm:$0xff] %vm316_vm2, %v314_v16 }
  0x28   : > { %337 = vst.msk [vmem:[#allocation2] sm:$0xff] %vm316_vm2, %v3318_v17  ;;  %338 = vst.msk [vmem:[#allocation2 + $0x8] sm:$0xff] %vm316_vm2, %v3318_v17 }
  0x29   : > { %341 = vst.msk [vmem:[#allocation2 + $0x18] sm:$0xff] %vm316_vm2, %v3318_v17  ;;  %342 = vst.msk [vmem:[#allocation2 + $0x20] sm:$0xff] %vm316_vm2, %v3318_v17 }
  0x2a   : > { %340 = vst.msk [vmem:[#allocation2 + $0x10] sm:$0x3] %vm339_vm3, %v3318_v17  ;;  %343 = vst.msk [vmem:[#allocation2 + $0x28] sm:$0x3] %vm339_vm3, %v3318_v17 }
  0x2b PF: > { %p2995_p8 = scmp.le.s32.totalorder %s3299_s18, 0 }
  0x2c   : > { %s2996_s15 = sadd.s32 (!%p2995_p8), 4294967294, %s3402_s25 }
  0x2d   : > { %347 = sbr.rel (%p2995_p8) target bundleno = 52 (0x34), region = 48  ;;  %s2997_s16 = sshll.u32 (!%p2995_p8), %s2996_s15, 4 }
  0x2e   : > { %s350_s17 = scalar_lea.vmem (!%p2995_p8), %s3457_s7, %s2997_s16 }
  0x2f   : > { %v351_v18 = vld [vmem:[%s350_s17] sm:$0xff] (!%p2995_p8)  ;;  %v352_v19 = vld [vmem:[%s350_s17 + $0x8] sm:$0xff] (!%p2995_p8)  ;;  %v353_v20 = vld [vmem:[%s350_s17 + $0x10] sm:$0xff] (!%p2995_p8) }
  0x30   : > { %355 = vst.msk [vmem:[#allocation2 + $0x1] sm:$0xff] (!%p2995_p8), %vm316_vm2, %v351_v18  ;;  %356 = vst.msk [vmem:[#allocation2 + $0x9] sm:$0xff] (!%p2995_p8), %vm316_vm2, %v352_v19  ;;  %v354_v21 = vld [vmem:[%s350_s17 + $0x18] sm:$0xff] (!%p2995_p8) }
  0x31   : > { %357 = vst.msk [vmem:[#allocation2 + $0x19] sm:$0xff] (!%p2995_p8), %vm316_vm2, %v353_v20  ;;  %358 = vst.msk [vmem:[#allocation2 + $0x21] sm:$0xff] (!%p2995_p8), %vm316_vm2, %v354_v21 }
  0x34 PF: > { %p2998_p9 = scmp.ne.s32.totalorder %s3299_s18, 1 }
  0x35   : > { %vm366_vm4 = vcmask (!%p2998_p9), 25600   ;;  %v3319_v22 = vmov (!%p2998_p9), 0.0  }
  0x36   : > { %362 = sbr.rel (%p2998_p9) target bundleno = 61 (0x3d), region = 52  ;;  %364 = vst.msk [vmem:[#allocation2 + $0xf0] sm:$0xff] (!%p2998_p9), %vm316_vm2, %v3319_v22  ;;  %365 = vst.msk [vmem:[#allocation2 + $0xf8] sm:$0xff] (!%p2998_p9), %vm316_vm2, %v3319_v22 }
  0x37   : > { %368 = vst.msk [vmem:[#allocation2 + $0x108] sm:$0xff] (!%p2998_p9), %vm316_vm2, %v3319_v22  ;;  %369 = vst.msk [vmem:[#allocation2 + $0x110] sm:$0xff] (!%p2998_p9), %vm316_vm2, %v3319_v22 }
  0x38   : > { %367 = vst.msk [vmem:[#allocation2 + $0x100] sm:$0x3] (!%p2998_p9), %vm366_vm4, %v3319_v22  ;;  %370 = vst.msk [vmem:[#allocation2 + $0x118] sm:$0x3] (!%p2998_p9), %vm366_vm4, %v3319_v22 }
  0x3d PF: > { %p2999_p10 = scmp.ge.s32.totalorder %s3299_s18, 1 }
  0x3e   : > { %v3002_v23 = vld [vmem:[%s3460_s10 + $0x80] sm:$0xff] (!%p2999_p10)  ;;  %v3003_v24 = vld [vmem:[%s3460_s10 + $0x88] sm:$0xff] (!%p2999_p10)  ;;  %v3004_v25 = vld [vmem:[%s3460_s10 + $0x90] sm:$0xff] (!%p2999_p10) }
  0x3f   : > { %374 = sbr.rel (%p2999_p10) target bundleno = 70 (0x46), region = 56  ;;  %383 = vst.msk [vmem:[#allocation2 + $0xf1] sm:$0xff] (!%p2999_p10), %vm316_vm2, %v3002_v23  ;;  %384 = vst.msk [vmem:[#allocation2 + $0xf9] sm:$0xff] (!%p2999_p10), %vm316_vm2, %v3003_v24  ;;  %v3005_v26 = vld [vmem:[%s3460_s10 + $0x98] sm:$0xff] (!%p2999_p10) }
  0x40   : > { %385 = vst.msk [vmem:[#allocation2 + $0x109] sm:$0xff] (!%p2999_p10), %vm316_vm2, %v3004_v25  ;;  %386 = vst.msk [vmem:[#allocation2 + $0x111] sm:$0xff] (!%p2999_p10), %vm316_vm2, %v3005_v26 }
  0x46 PF: > { %v548_v27 = vld [vmem:[#allocation2 + $0x2] sm:$0xff]  ;;  %s3320_s19 = smov 8   ;;  %s3321_s25 = smov 4   ;;  %v670_v30 = vld [vmem:[#allocation2 + $0x18] sm:$0xff]  ;;  %v549_v31 = vld [vmem:[#allocation2 + $0xa] sm:$0xff]  ;;  %vm1489_vm5 = vcmask 1043456  }
  0x47   : > { %v427_v28 = vld [vmem:[#allocation2 + $0x1] sm:$0xff]  ;;  %588 = vrot.lane.b32.xlu1 %v548_v27, %s3320_s19  ;;  %v428_v32 = vld [vmem:[#allocation2 + $0x9] sm:$0xff]  ;;  %409 = vst.msk [vmem:[#allocation4 + $0x10] sm:$0xff] %vm316_vm2, %v670_v30  ;;  %v1034_v34 = vld [vmem:[#allocation2 + $0x38] sm:$0xff]  ;;  %s3322_s26 = smov 12   ;;  %s3323_s27 = smov 16  }
  0x48   : > { %467 = vrot.lane.b32.xlu0 %v427_v28, %s3321_s25  ;;  %v671_v29 = vld [vmem:[#allocation2 + $0x20] sm:$0xff]  ;;  %v1033_v33 = vld [vmem:[#allocation2 + $0x30] sm:$0xff]  ;;  %v3536_v35 = vld [vmem:[#allocation2 + $0x48] sm:$0xff]  ;;  %412 = vst.msk [vmem:[#allocation4 + $0x28] sm:$0xff] %vm316_vm2, %v1034_v34  ;;  %s3324_s28 = smov 20   ;;  %s3325_s29 = smov 24  }
  0x49   : > { %410 = vst.msk [vmem:[#allocation4 + $0x18] sm:$0xff] %vm316_vm2, %v671_v29  ;;  %411 = vst.msk [vmem:[#allocation4 + $0x20] sm:$0xff] %vm316_vm2, %v1033_v33  ;;  %v3539_v36 = vld [vmem:[#allocation2 + $0x50] sm:$0xff]  ;;  %v3543_v37 = vld [vmem:[#allocation2 + $0x60] sm:$0xff]  ;;  %s3326_s9 = smov 28   ;;  %s3327_s16 = smov 32  }
  0x4a   : > { %413 = vst.msk [vmem:[#allocation4 + $0x30] sm:$0xff] %vm316_vm2, %v3536_v35  ;;  %414 = vst.msk [vmem:[#allocation4 + $0x38] sm:$0xff] %vm316_vm2, %v3539_v36  ;;  %v3547_v38 = vld [vmem:[#allocation2 + $0x68] sm:$0xff]  ;;  %v387_v39 = vld [vmem:[#allocation2] sm:$0xff]  ;;  %vm527_vm6 = vcmask 64544   ;;  %vm648_vm7 = vcmask 97344  }
  0x4b   : > { %590 = vrot.lane.b32.xlu1 %v549_v31, %s3320_s19  ;;  %415 = vst.msk [vmem:[#allocation4 + $0x40] sm:$0xff] %vm316_vm2, %v3543_v37  ;;  %v388_v40 = vld [vmem:[#allocation2 + $0x8] sm:$0xff]  ;;  %416 = vst.msk [vmem:[#allocation4 + $0x48] sm:$0xff] %vm316_vm2, %v3547_v38  ;;  %v429_v41 = vld [vmem:[#allocation2 + $0x19] sm:$0xff]  ;;  %vm770_vm8 = vcmask 130144   ;;  %vm891_vm9 = vcmask 162944  }
  0x4c   : > { %469 = vrot.lane.b32.xlu0 %v428_v32, %s3321_s25  ;;  %407 = vst.msk [vmem:[#allocation4] sm:$0xff] %vm316_vm2, %v387_v39  ;;  %408 = vst.msk [vmem:[#allocation4 + $0x8] sm:$0xff] %vm316_vm2, %v388_v40  ;;  %v3557_v42 = vld [vmem:[#allocation2 + $0x78] sm:$0xff]  ;;  %v3559_v43 = vld [vmem:[#allocation2 + $0x80] sm:$0xff]  ;;  %vm1012_vm10 = vcmask 195744   ;;  %vm1133_vm11 = vcmask 228544  }
  0x4d   : > { %417 = vst.msk [vmem:[#allocation4 + $0x50] sm:$0xff] %vm316_vm2, %v3557_v42  ;;  %418 = vst.msk [vmem:[#allocation4 + $0x58] sm:$0xff] %vm316_vm2, %v3559_v43  ;;  %v912_v44 = vld [vmem:[#allocation2 + $0x1a] sm:$0xff]  ;;  %v913_v46 = vld [vmem:[#allocation2 + $0x22] sm:$0xff]  ;;  %vm1254_vm12 = vcmask 261344   ;;  %vm1375_vm13 = vcmask 294144  }
  0x4e   : > { %v792_v45 = vld [vmem:[#allocation2 + $0x21] sm:$0xff]  ;;  %v3571_v47 = vld [vmem:[#allocation2 + $0x90] sm:$0xff]  ;;  %v3585_v51 = vld [vmem:[#allocation2 + $0x98] sm:$0xff]  ;;  %vm1428_vm14 = vcmask 293888   ;;  %vm1678_vm15 = vcmask 64512   ;;  %vm1704_vm0 = vcmask (!%p2994_p7), 58368  }
  0x4f   : > { %712 = vrot.lane.b32.xlu1 %v671_v29, %s3322_s26  ;;  %419 = vst.msk [vmem:[#allocation4 + $0x60] sm:$0xff] %vm316_vm2, %v3571_v47  ;;  %v1154_v48 = vld [vmem:[#allocation2 + $0x31] sm:$0xff]  ;;  %v1416_v49 = vld [vmem:[%s4515_s1] sm:$0xff]  ;;  %v1417_v50 = vld [vmem:[%s4515_s1 + $0x8] sm:$0xff] }
  0x50   : > { %710 = vrot.lane.b32.xlu0 %v670_v30, %s3322_s26  ;;  %v3188_v52 = vpack.c.bf16 %v1417_v50, %v1416_v49  ;;  %420 = vst.msk [vmem:[#allocation4 + $0x68] sm:$0xff] %vm316_vm2, %v3585_v51  ;;  %v1418_v53 = vld [vmem:[%s4515_s1 + $0x10] sm:$0xff]  ;;  %v1419_v54 = vld [vmem:[%s4515_s1 + $0x18] sm:$0xff]  ;;  %v1420_v58 = vld [vmem:[%s4515_s1 + $0x20] sm:$0xf] }
  0x51   : > { %v3192_v55 = vpack.c.bf16 %v1419_v54, %v1418_v53  ;;  %v1275_v56 = vld [vmem:[#allocation2 + $0x32] sm:$0xff]  ;;  %v1276_v59 = vld [vmem:[#allocation2 + $0x3a] sm:$0xff]  ;;  %v3612_v60 = vld [vmem:[#allocation2 + $0xa8] sm:$0xff] }
  0x52   : > { %3189 = vmatprep.subr.bf16.mxu0 %v3188_v52  ;;  %v1155_v57 = vld [vmem:[#allocation2 + $0x39] sm:$0xff]  ;;  %421 = vst.msk [vmem:[#allocation4 + $0x70] sm:$0xff] %vm316_vm2, %v3612_v60  ;;  %v1156_v61 = vld [vmem:[#allocation2 + $0x49] sm:$0xff]  ;;  %v1157_v0 = vld [vmem:[#allocation2 + $0x51] sm:$0xff] }
  0x53   : > { %471 = vrot.lane.b32.xlu1 %v429_v41, %s3321_s25  ;;  %3191 = vmatpush3.bf16.msra.mxu0 %v3188_v52  ;;  %v3622_v62 = vld [vmem:[#allocation2 + $0xb0] sm:$0xff]  ;;  %v3640_v2 = vld [vmem:[#allocation2 + $0xc0] sm:$0xff]  ;;  %v3650_v4 = vld [vmem:[#allocation2 + $0xc8] sm:$0xff] }
  0x54   : > { %831 = vrot.lane.b32.xlu0 %v429_v41, %s3323_s27  ;;  %3193 = vmatprep.subr.bf16.mxu0 %v3192_v55  ;;  %422 = vst.msk [vmem:[#allocation4 + $0x78] sm:$0xff] %vm316_vm2, %v3622_v62  ;;  %v1277_v63 = vld [vmem:[#allocation2 + $0x4a] sm:$0xff]  ;;  %v1278_v1 = vld [vmem:[#allocation2 + $0x52] sm:$0xff]  ;;  %423 = vst.msk [vmem:[#allocation4 + $0x80] sm:$0xff] %vm316_vm2, %v3640_v2 }
  0x55   : > { %v1158_v3 = vld [vmem:[#allocation2 + $0x61] sm:$0xff]  ;;  %424 = vst.msk [vmem:[#allocation4 + $0x88] sm:$0xff] %vm316_vm2, %v3650_v4  ;;  %v1159_v6 = vld [vmem:[#allocation2 + $0x69] sm:$0xff]  ;;  %v3671_v12 = vld [vmem:[#allocation2 + $0xd8] sm:$0xff] }
  0x56   : > { %v1279_v5 = vld [vmem:[#allocation2 + $0x62] sm:$0xff]  ;;  %v1280_v7 = vld [vmem:[#allocation2 + $0x6a] sm:$0xff]  ;;  %425 = vst.msk [vmem:[#allocation4 + $0x90] sm:$0xff] %vm316_vm2, %v3671_v12  ;;  %v1160_v15 = vld [vmem:[#allocation2 + $0x79] sm:$0xff] }
  0x57   : > { %952 = vrot.lane.b32.xlu1 %v912_v44, %s3324_s28  ;;  %3195 = vmatpush3.bf16.msra.mxu0 %v3192_v55  ;;  %v3686_v18 = vld [vmem:[#allocation2 + $0xe0] sm:$0xff] }
  0x58   : > { %833 = vrot.lane.b32.xlu0 %v792_v45, %s3323_s27  ;;  %3112 = vmatprep.subr.msk.mxu0 %vm1489_vm5, %v1420_v58  ;;  %426 = vst.msk [vmem:[#allocation4 + $0x98] sm:$0xff] %vm316_vm2, %v3686_v18  ;;  %v1281_v21 = vld [vmem:[#allocation2 + $0x7a] sm:$0xff]  ;;  %v1282_v27 = vld [vmem:[#allocation2 + $0x82] sm:$0xff] }
  0x59   : > { %v1161_v22 = vld [vmem:[#allocation2 + $0x81] sm:$0xff] }
  0x5a   : > { %v1284_v49 = vld [vmem:[#allocation2 + $0x9a] sm:$0xff] }
  0x5b   : > { %592 = vrot.lane.b32.xlu1 %v912_v44, %s3320_s19  ;;  %3113 = vmatpush3.msk.msra.mxu0 %vm1489_vm5, %v1420_v58  ;;  %v1164_v58 = vld [vmem:[#allocation2 + $0xa9] sm:$0xff] }
  0x5c   : > { %473 = vrot.lane.b32.xlu0 %v792_v45, %s3321_s25 }
  0x5f   : > { %1073 = vrot.lane.b32.xlu1 %v1033_v33, %s3325_s29 }
  0x60   : > { %954 = vrot.lane.b32.xlu0 %v913_v46, %s3324_s28 }
  0x63   : > { %714 = vrot.lane.b32.xlu1 %v1033_v33, %s3322_s26 }
  0x64   : > { %594 = vrot.lane.b32.xlu0 %v913_v46, %s3320_s19 }
  0x67   : > { %1194 = vrot.lane.b32.xlu1 %v1154_v48, %s3326_s9 }
  0x68   : > { %1075 = vrot.lane.b32.xlu0 %v1034_v34, %s3325_s29 }
  0x6b   : > { %835 = vrot.lane.b32.xlu1 %v1154_v48, %s3323_s27 }
  0x6c   : > { %716 = vrot.lane.b32.xlu0 %v1034_v34, %s3322_s26 }
  0x6f   : > { %1315 = vrot.lane.b32.xlu1 %v1275_v56, %s3327_s16 }
  0x70   : > { %1196 = vrot.lane.b32.xlu0 %v1155_v57, %s3326_s9 }
  0x73   : > { %837 = vrot.lane.b32.xlu1 %v1155_v57, %s3323_s27 }
  0x74   : > { %475 = vrot.lane.b32.xlu0 %v1154_v48, %s3321_s25 }
  0x77   : > { %1317 = vrot.lane.b32.xlu1 %v1276_v59, %s3327_s16 }
  0x78   : > { %956 = vrot.lane.b32.xlu0 %v1275_v56, %s3324_s28 }
  0x7b   : > { %596 = vrot.lane.b32.xlu1 %v1275_v56, %s3320_s19 }
  0x7c   : > { %477 = vrot.lane.b32.xlu0 %v1155_v57, %s3321_s25 }
  0x7f   : > { %1077 = vrot.lane.b32.xlu1 %v3536_v35, %s3325_s29 }
  0x80   : > { %958 = vrot.lane.b32.xlu0 %v1276_v59, %s3324_s28 }
  0x83   : > { %718 = vrot.lane.b32.xlu1 %v3536_v35, %s3322_s26 }
  0x84   : > { %598 = vrot.lane.b32.xlu0 %v1276_v59, %s3320_s19 }
  0x87   : > { %1198 = vrot.lane.b32.xlu1 %v1156_v61, %s3326_s9 }
  0x88   : > { %1079 = vrot.lane.b32.xlu0 %v3539_v36, %s3325_s29 }
  0x8b   : > { %839 = vrot.lane.b32.xlu1 %v1156_v61, %s3323_s27 }
  0x8c   : > { %720 = vrot.lane.b32.xlu0 %v3539_v36, %s3322_s26  ;;  %v1162_v36 = vld [vmem:[#allocation2 + $0x91] sm:$0xff] }
  0x8f   : > { %1319 = vrot.lane.b32.xlu1 %v1277_v63, %s3327_s16 }
  0x90   : > { %1200 = vrot.lane.b32.xlu0 %v1157_v0, %s3326_s9 }
  0x93   : > { %841 = vrot.lane.b32.xlu1 %v1157_v0, %s3323_s27 }
  0x94   : > { %479 = vrot.lane.b32.xlu0 %v1156_v61, %s3321_s25 }
  0x97   : > { %1321 = vrot.lane.b32.xlu1 %v1278_v1, %s3327_s16 }
  0x98   : > { %960 = vrot.lane.b32.xlu0 %v1277_v63, %s3324_s28 }
  0x9b   : > { %600 = vrot.lane.b32.xlu1 %v1277_v63, %s3320_s19 }
  0x9c   : > { %481 = vrot.lane.b32.xlu0 %v1157_v0, %s3321_s25 }
  0x9f   : > { %1081 = vrot.lane.b32.xlu1 %v3543_v37, %s3325_s29 }
  0xa0   : > { %962 = vrot.lane.b32.xlu0 %v1278_v1, %s3324_s28 }
  0xa3   : > { %722 = vrot.lane.b32.xlu1 %v3543_v37, %s3322_s26 }
  0xa4   : > { %602 = vrot.lane.b32.xlu0 %v1278_v1, %s3320_s19 }
  0xa7   : > { %1202 = vrot.lane.b32.xlu1 %v1158_v3, %s3326_s9 }
  0xa8   : > { %1083 = vrot.lane.b32.xlu0 %v3547_v38, %s3325_s29 }
  0xab   : > { %843 = vrot.lane.b32.xlu1 %v1158_v3, %s3323_s27 }
  0xac   : > { %724 = vrot.lane.b32.xlu0 %v3547_v38, %s3322_s26 }
  0xaf   : > { %1323 = vrot.lane.b32.xlu1 %v1279_v5, %s3327_s16 }
  0xb0   : > { %1204 = vrot.lane.b32.xlu0 %v1159_v6, %s3326_s9 }
  0xb3   : > { %845 = vrot.lane.b32.xlu1 %v1159_v6, %s3323_s27 }
  0xb4   : > { %483 = vrot.lane.b32.xlu0 %v1158_v3, %s3321_s25  ;;  %v1165_v3 = vld [vmem:[#allocation2 + $0xb1] sm:$0xff] }
  0xb7   : > { %1325 = vrot.lane.b32.xlu1 %v1280_v7, %s3327_s16 }
  0xb8   : > { %964 = vrot.lane.b32.xlu0 %v1279_v5, %s3324_s28 }
  0xb9   : > { %v589_v8 = vpop.permute.xlu1 %588 }
  0xba   : > { %v468_v9 = vpop.permute.xlu0 %467 }
  0xbb   : > { %528 = vst.msk [vmem:[#allocation4] sm:$0xff] %vm527_vm6, %v468_v9  ;;  %604 = vrot.lane.b32.xlu1 %v1279_v5, %s3320_s19 }
  0xbc   : > { %485 = vrot.lane.b32.xlu0 %v1159_v6, %s3321_s25  ;;  %649 = vst.msk [vmem:[#allocation4] sm:$0xff] %vm648_vm7, %v589_v8 }
  0xbd   : > { %v591_v10 = vpop.permute.xlu1 %590 }
  0xbe   : > { %v470_v11 = vpop.permute.xlu0 %469 }
  0xbf   : > { %529 = vst.msk [vmem:[#allocation4 + $0x8] sm:$0xff] %vm527_vm6, %v470_v11  ;;  %1085 = vrot.lane.b32.xlu1 %v3557_v42, %s3325_s29 }
  0xc0   : > { %966 = vrot.lane.b32.xlu0 %v1280_v7, %s3324_s28  ;;  %650 = vst.msk [vmem:[#allocation4 + $0x8] sm:$0xff] %vm648_vm7, %v591_v10 }
  0xc1   : > { %v713_v13 = vpop.permute.xlu1 %712 }
  0xc2   : > { %v711_v14 = vpop.permute.xlu0 %710  ;;  %772 = vst.msk [vmem:[#allocation4 + $0x8] sm:$0xff] %vm770_vm8, %v713_v13 }
  0xc3   : > { %771 = vst.msk [vmem:[#allocation4] sm:$0xff] %vm770_vm8, %v711_v14  ;;  %726 = vrot.lane.b32.xlu1 %v3557_v42, %s3322_s26  ;;  %v1283_v42 = vld [vmem:[#allocation2 + $0x92] sm:$0xff] }
  0xc4   : > { %606 = vrot.lane.b32.xlu0 %v1280_v7, %s3320_s19 }
  0xc5   : > { %v472_v16 = vpop.permute.xlu1 %471 }
  0xc6   : > { %v832_v17 = vpop.permute.xlu0 %831  ;;  %530 = vst.msk [vmem:[#allocation4 + $0x10] sm:$0xff] %vm527_vm6, %v472_v16 }
  0xc7   : > { %892 = vst.msk [vmem:[#allocation4] sm:$0xff] %vm891_vm9, %v832_v17  ;;  %1206 = vrot.lane.b32.xlu1 %v1160_v15, %s3326_s9 }
  0xc8   : > { %1087 = vrot.lane.b32.xlu0 %v3559_v43, %s3325_s29 }
  0xc9   : > { %v953_v19 = vpop.permute.xlu1 %952 }
  0xca   : > { %v834_v20 = vpop.permute.xlu0 %833  ;;  %1013 = vst.msk [vmem:[#allocation4] sm:$0xff] %vm1012_vm10, %v953_v19 }
  0xcb   : > { %893 = vst.msk [vmem:[#allocation4 + $0x8] sm:$0xff] %vm891_vm9, %v834_v20  ;;  %847 = vrot.lane.b32.xlu1 %v1160_v15, %s3323_s27  ;;  %v1166_v20 = vld [vmem:[#allocation2 + $0xc1] sm:$0xff] }
  0xcc   : > { %728 = vrot.lane.b32.xlu0 %v3559_v43, %s3322_s26  ;;  %v1163_v43 = vld [vmem:[#allocation2 + $0x99] sm:$0xff] }
  0xcd   : > { %v593_v23 = vpop.permute.xlu1 %592 }
  0xce   : > { %v474_v24 = vpop.permute.xlu0 %473  ;;  %651 = vst.msk [vmem:[#allocation4 + $0x10] sm:$0xff] %vm648_vm7, %v593_v23 }
  0xcf   : > { %531 = vst.msk [vmem:[#allocation4 + $0x18] sm:$0xff] %vm527_vm6, %v474_v24  ;;  %1327 = vrot.lane.b32.xlu1 %v1281_v21, %s3327_s16 }
  0xd0   : > { %1208 = vrot.lane.b32.xlu0 %v1161_v22, %s3326_s9 }
  0xd1   : > { %v1074_v25 = vpop.permute.xlu1 %1073 }
  0xd2   : > { %v955_v26 = vpop.permute.xlu0 %954  ;;  %1134 = vst.msk [vmem:[#allocation4] sm:$0xff] %vm1133_vm11, %v1074_v25 }
  0xd3   : > { %1014 = vst.msk [vmem:[#allocation4 + $0x8] sm:$0xff] %vm1012_vm10, %v955_v26  ;;  %849 = vrot.lane.b32.xlu1 %v1161_v22, %s3323_s27  ;;  %v1167_v26 = vld [vmem:[#allocation2 + $0xc9] sm:$0xff] }
  0xd4   : > { %487 = vrot.lane.b32.xlu0 %v1160_v15, %s3321_s25 }
  0xd5   : > { %v715_v28 = vpop.permute.xlu1 %714 }
  0xd6   : > { %v595_v29 = vpop.permute.xlu0 %594  ;;  %773 = vst.msk [vmem:[#allocation4 + $0x10] sm:$0xff] %vm770_vm8, %v715_v28 }
  0xd7   : > { %652 = vst.msk [vmem:[#allocation4 + $0x18] sm:$0xff] %vm648_vm7, %v595_v29  ;;  %1329 = vrot.lane.b32.xlu1 %v1282_v27, %s3327_s16 }
  0xd8   : > { %968 = vrot.lane.b32.xlu0 %v1281_v21, %s3324_s28 }
  0xd9   : > { %v1195_v30 = vpop.permute.xlu1 %1194 }
  0xda   : > { %v1076_v31 = vpop.permute.xlu0 %1075  ;;  %1255 = vst.msk [vmem:[#allocation4] sm:$0xff] %vm1254_vm12, %v1195_v30 }
  0xdb   : > { %1135 = vst.msk [vmem:[#allocation4 + $0x8] sm:$0xff] %vm1133_vm11, %v1076_v31  ;;  %608 = vrot.lane.b32.xlu1 %v1281_v21, %s3320_s19 }
  0xdc   : > { %489 = vrot.lane.b32.xlu0 %v1161_v22, %s3321_s25 }
  0xdd   : > { %v836_v32 = vpop.permute.xlu1 %835 }
  0xde   : > { %v717_v33 = vpop.permute.xlu0 %716  ;;  %894 = vst.msk [vmem:[#allocation4 + $0x10] sm:$0xff] %vm891_vm9, %v836_v32 }
  0xdf   : > { %774 = vst.msk [vmem:[#allocation4 + $0x18] sm:$0xff] %vm770_vm8, %v717_v33  ;;  %1089 = vrot.lane.b32.xlu1 %v3571_v47, %s3325_s29 }
  0xe0   : > { %970 = vrot.lane.b32.xlu0 %v1282_v27, %s3324_s28 }
  0xe1   : > { %v1316_v34 = vpop.permute.xlu1 %1315 }
  0xe2   : > { %v1197_v35 = vpop.permute.xlu0 %1196  ;;  %1376 = vst.msk [vmem:[#allocation4] sm:$0xff] %vm1375_vm13, %v1316_v34 }
  0xe3   : > { %1256 = vst.msk [vmem:[#allocation4 + $0x8] sm:$0xff] %vm1254_vm12, %v1197_v35  ;;  %730 = vrot.lane.b32.xlu1 %v3571_v47, %s3322_s26 }
  0xe4   : > { %610 = vrot.lane.b32.xlu0 %v1282_v27, %s3320_s19 }
  0xe5   : > { %v838_v37 = vpop.permute.xlu1 %837 }
  0xe6   : > { %v476_v38 = vpop.permute.xlu0 %475  ;;  %895 = vst.msk [vmem:[#allocation4 + $0x18] sm:$0xff] %vm891_vm9, %v838_v37 }
  0xe7   : > { %532 = vst.msk [vmem:[#allocation4 + $0x20] sm:$0xff] %vm527_vm6, %v476_v38  ;;  %1210 = vrot.lane.b32.xlu1 %v1162_v36, %s3326_s9 }
  0xe8   : > { %1091 = vrot.lane.b32.xlu0 %v3585_v51, %s3325_s29 }
  0xe9   : > { %v1318_v39 = vpop.permute.xlu1 %1317  ;;  %v1396_v41 = vld [vmem:[#allocation4] sm:$0xff] }
  0xea   : > { %v957_v40 = vpop.permute.xlu0 %956  ;;  %1377 = vst.msk [vmem:[#allocation4 + $0x8] sm:$0xff] %vm1375_vm13, %v1318_v39  ;;  %3114 = vmatprep.mubr.msk.f32.mxu0 %vm1428_vm14, %v1396_v41 }
  0xeb   : > { %1015 = vst.msk [vmem:[#allocation4 + $0x10] sm:$0xff] %vm1012_vm10, %v957_v40  ;;  %851 = vrot.lane.b32.xlu1 %v1162_v36, %s3323_s27  ;;  %v1168_v40 = vld [vmem:[#allocation2 + $0xd9] sm:$0xff] }
  0xec   : > { %732 = vrot.lane.b32.xlu0 %v3585_v51, %s3322_s26 }
  0xed   : > { %v597_v44 = vpop.permute.xlu1 %596 }
  0xee   : > { %v478_v45 = vpop.permute.xlu0 %477  ;;  %653 = vst.msk [vmem:[#allocation4 + $0x20] sm:$0xff] %vm648_vm7, %v597_v44 }
  0xef   : > { %533 = vst.msk [vmem:[#allocation4 + $0x28] sm:$0xff] %vm527_vm6, %v478_v45  ;;  %1331 = vrot.lane.b32.xlu1 %v1283_v42, %s3327_s16 }
  0xf0   : > { %1212 = vrot.lane.b32.xlu0 %v1163_v43, %s3326_s9 }
  0xf1   : > { %v1078_v46 = vpop.permute.xlu1 %1077  ;;  %v1397_v48 = vld [vmem:[#allocation4 + $0x8] sm:$0xff] }
  0xf2   : > { %v959_v47 = vpop.permute.xlu0 %958  ;;  %1136 = vst.msk [vmem:[#allocation4 + $0x10] sm:$0xff] %vm1133_vm11, %v1078_v46  ;;  %3115 = vmatmul.mubr.msk.f32.vlgmr.msra.gmra.mrb[0].mxu0 %vm1428_vm14, %v1397_v48  ;;  %v1169_v46 = vld [vmem:[#allocation2 + $0xe1] sm:$0xff] }
  0xf3   : > { %1016 = vst.msk [vmem:[#allocation4 + $0x18] sm:$0xff] %vm1012_vm10, %v959_v47  ;;  %853 = vrot.lane.b32.xlu1 %v1163_v43, %s3323_s27 }
  0xf4   : > { %491 = vrot.lane.b32.xlu0 %v1162_v36, %s3321_s25 }
  0xf5   : > { %v719_v50 = vpop.permute.xlu1 %718 }
  0xf6   : > { %v599_v51 = vpop.permute.xlu0 %598  ;;  %775 = vst.msk [vmem:[#allocation4 + $0x20] sm:$0xff] %vm770_vm8, %v719_v50 }
  0xf7   : > { %654 = vst.msk [vmem:[#allocation4 + $0x28] sm:$0xff] %vm648_vm7, %v599_v51  ;;  %1333 = vrot.lane.b32.xlu1 %v1284_v49, %s3327_s16 }
  0xf8   : > { %972 = vrot.lane.b32.xlu0 %v1283_v42, %s3324_s28 }
  0xf9   : > { %v1199_v52 = vpop.permute.xlu1 %1198 }
  0xfa   : > { %v1080_v53 = vpop.permute.xlu0 %1079  ;;  %1257 = vst.msk [vmem:[#allocation4 + $0x10] sm:$0xff] %vm1254_vm12, %v1199_v52 }
  0xfb   : > { %1137 = vst.msk [vmem:[#allocation4 + $0x18] sm:$0xff] %vm1133_vm11, %v1080_v53  ;;  %612 = vrot.lane.b32.xlu1 %v1283_v42, %s3320_s19 }
  0xfc   : > { %493 = vrot.lane.b32.xlu0 %v1163_v43, %s3321_s25 }
  0xfd   : > { %v840_v54 = vpop.permute.xlu1 %839 }
  0xfe   : > { %v721_v55 = vpop.permute.xlu0 %720  ;;  %896 = vst.msk [vmem:[#allocation4 + $0x20] sm:$0xff] %vm891_vm9, %v840_v54 }
  0xff   : > { %776 = vst.msk [vmem:[#allocation4 + $0x28] sm:$0xff] %vm770_vm8, %v721_v55  ;;  %1093 = vrot.lane.b32.xlu1 %v3612_v60, %s3325_s29 }
 0x100   : > { %974 = vrot.lane.b32.xlu0 %v1284_v49, %s3324_s28 }
 0x101   : > { %v1320_v56 = vpop.permute.xlu1 %1319 }
 0x102   : > { %v1201_v57 = vpop.permute.xlu0 %1200  ;;  %1378 = vst.msk [vmem:[#allocation4 + $0x10] sm:$0xff] %vm1375_vm13, %v1320_v56  ;;  %v1049_v56 = vld [vmem:[#allocation2 + $0xf0] sm:$0xff] }
 0x103   : > { %1258 = vst.msk [vmem:[#allocation4 + $0x18] sm:$0xff] %vm1254_vm12, %v1201_v57  ;;  %734 = vrot.lane.b32.xlu1 %v3612_v60, %s3322_s26  ;;  %v1285_v60 = vld [vmem:[#allocation2 + $0xaa] sm:$0xff] }
 0x104   : > { %614 = vrot.lane.b32.xlu0 %v1284_v49, %s3320_s19 }
 0x105   : > { %v842_v59 = vpop.permute.xlu1 %841 }
 0x106   : > { %v480_v61 = vpop.permute.xlu0 %479  ;;  %897 = vst.msk [vmem:[#allocation4 + $0x28] sm:$0xff] %vm891_vm9, %v842_v59 }
 0x107   : > { %534 = vst.msk [vmem:[#allocation4 + $0x30] sm:$0xff] %vm527_vm6, %v480_v61  ;;  %1214 = vrot.lane.b32.xlu1 %v1164_v58, %s3326_s9 }
 0x108   : > { %1095 = vrot.lane.b32.xlu0 %v3622_v62, %s3325_s29 }
 0x109   : > { %v1322_v63 = vpop.permute.xlu1 %1321  ;;  %v1398_v1 = vld [vmem:[#allocation4 + $0x10] sm:$0xff] }
 0x10a   : > { %v961_v0 = vpop.permute.xlu0 %960  ;;  %1379 = vst.msk [vmem:[#allocation4 + $0x18] sm:$0xff] %vm1375_vm13, %v1322_v63  ;;  %3117 = vmatprep.mubr.msk.f32.mxu0 %vm1428_vm14, %v1398_v1  ;;  %v1050_v63 = vld [vmem:[#allocation2 + $0xf8] sm:$0xff] }
 0x10b   : > { %1017 = vst.msk [vmem:[#allocation4 + $0x20] sm:$0xff] %vm1012_vm10, %v961_v0  ;;  %855 = vrot.lane.b32.xlu1 %v1164_v58, %s3323_s27  ;;  %v1170_v0 = vld [vmem:[#allocation2 + $0xf1] sm:$0xff] }
 0x10c   : > { %736 = vrot.lane.b32.xlu0 %v3622_v62, %s3322_s26  ;;  %v1286_v62 = vld [vmem:[#allocation2 + $0xb2] sm:$0xff] }
 0x10d   : > { %v601_v5 = vpop.permute.xlu1 %600 }
 0x10e   : > { %v482_v6 = vpop.permute.xlu0 %481  ;;  %655 = vst.msk [vmem:[#allocation4 + $0x30] sm:$0xff] %vm648_vm7, %v601_v5 }
 0x10f   : > { %535 = vst.msk [vmem:[#allocation4 + $0x38] sm:$0xff] %vm527_vm6, %v482_v6  ;;  %1335 = vrot.lane.b32.xlu1 %v1285_v60, %s3327_s16 }
 0x110   : > { %1216 = vrot.lane.b32.xlu0 %v1165_v3, %s3326_s9 }
 0x111   : > { %v1082_v7 = vpop.permute.xlu1 %1081  ;;  %v1399_v9 = vld [vmem:[#allocation4 + $0x18] sm:$0xff] }
 0x112   : > { %v963_v8 = vpop.permute.xlu0 %962  ;;  %1138 = vst.msk [vmem:[#allocation4 + $0x20] sm:$0xff] %vm1133_vm11, %v1082_v7  ;;  %3118 = vmatmul.mubr.msk.f32.gmra.mrb[2].mxu0 %vm1428_vm14, %v1399_v9  ;;  %v1171_v7 = vld [vmem:[#allocation2 + $0xf9] sm:$0xff] }
 0x113   : > { %1018 = vst.msk [vmem:[#allocation4 + $0x28] sm:$0xff] %vm1012_vm10, %v963_v8  ;;  %857 = vrot.lane.b32.xlu1 %v1165_v3, %s3323_s27  ;;  %v1291_v8 = vld [vmem:[#allocation2 + $0xf2] sm:$0xff] }
 0x114   : > { %495 = vrot.lane.b32.xlu0 %v1164_v58, %s3321_s25 }
 0x115   : > { %v723_v10 = vpop.permute.xlu1 %722 }
 0x116   : > { %v603_v11 = vpop.permute.xlu0 %602  ;;  %777 = vst.msk [vmem:[#allocation4 + $0x30] sm:$0xff] %vm770_vm8, %v723_v10 }
 0x117   : > { %656 = vst.msk [vmem:[#allocation4 + $0x38] sm:$0xff] %vm648_vm7, %v603_v11  ;;  %1337 = vrot.lane.b32.xlu1 %v1286_v62, %s3327_s16 }
 0x118   : > { %976 = vrot.lane.b32.xlu0 %v1285_v60, %s3324_s28 }
 0x119   : > { %v1203_v13 = vpop.permute.xlu1 %1202 }
 0x11a   : > { %v1084_v14 = vpop.permute.xlu0 %1083  ;;  %1259 = vst.msk [vmem:[#allocation4 + $0x20] sm:$0xff] %vm1254_vm12, %v1203_v13 }
 0x11b   : > { %1139 = vst.msk [vmem:[#allocation4 + $0x28] sm:$0xff] %vm1133_vm11, %v1084_v14  ;;  %616 = vrot.lane.b32.xlu1 %v1285_v60, %s3320_s19  ;;  %v1292_v14 = vld [vmem:[#allocation2 + $0xfa] sm:$0xff] }
 0x11c   : > { %497 = vrot.lane.b32.xlu0 %v1165_v3, %s3321_s25 }
 0x11d   : > { %v844_v15 = vpop.permute.xlu1 %843 }
 0x11e   : > { %v725_v16 = vpop.permute.xlu0 %724  ;;  %898 = vst.msk [vmem:[#allocation4 + $0x30] sm:$0xff] %vm891_vm9, %v844_v15 }
 0x11f   : > { %778 = vst.msk [vmem:[#allocation4 + $0x38] sm:$0xff] %vm770_vm8, %v725_v16  ;;  %1097 = vrot.lane.b32.xlu1 %v3640_v2, %s3325_s29 }
 0x120   : > { %978 = vrot.lane.b32.xlu0 %v1286_v62, %s3324_s28 }
 0x121   : > { %v1324_v17 = vpop.permute.xlu1 %1323 }
 0x122   : > { %v1205_v19 = vpop.permute.xlu0 %1204  ;;  %1380 = vst.msk [vmem:[#allocation4 + $0x20] sm:$0xff] %vm1375_vm13, %v1324_v17  ;;  %v1051_v17 = vld [vmem:[#allocation2 + $0x108] sm:$0xff] }
 0x123   : > { %1260 = vst.msk [vmem:[#allocation4 + $0x28] sm:$0xff] %vm1254_vm12, %v1205_v19  ;;  %738 = vrot.lane.b32.xlu1 %v3640_v2, %s3322_s26  ;;  %v1287_v2 = vld [vmem:[#allocation2 + $0xc2] sm:$0xff]  ;;  %v1052_v19 = vld [vmem:[#allocation2 + $0x110] sm:$0xff] }
 0x124   : > { %618 = vrot.lane.b32.xlu0 %v1286_v62, %s3320_s19 }
 0x125   : > { %v846_v21 = vpop.permute.xlu1 %845 }
 0x126   : > { %v484_v22 = vpop.permute.xlu0 %483  ;;  %899 = vst.msk [vmem:[#allocation4 + $0x38] sm:$0xff] %vm891_vm9, %v846_v21 }
 0x127   : > { %536 = vst.msk [vmem:[#allocation4 + $0x40] sm:$0xff] %vm527_vm6, %v484_v22  ;;  %1218 = vrot.lane.b32.xlu1 %v1166_v20, %s3326_s9  ;;  %v1172_v22 = vld [vmem:[#allocation2 + $0x109] sm:$0xff] }
 0x128   : > { %1099 = vrot.lane.b32.xlu0 %v3650_v4, %s3325_s29 }
 0x129   : > { %v1326_v23 = vpop.permute.xlu1 %1325  ;;  %v1400_v25 = vld [vmem:[#allocation4 + $0x20] sm:$0xff] }
 0x12a   : > { %v965_v24 = vpop.permute.xlu0 %964  ;;  %1381 = vst.msk [vmem:[#allocation4 + $0x28] sm:$0xff] %vm1375_vm13, %v1326_v23  ;;  %3120 = vmatprep.mubr.msk.f32.mxu0 %vm1428_vm14, %v1400_v25  ;;  %v1173_v23 = vld [vmem:[#allocation2 + $0x111] sm:$0xff] }
 0x12b   : > { %1019 = vst.msk [vmem:[#allocation4 + $0x30] sm:$0xff] %vm1012_vm10, %v965_v24  ;;  %859 = vrot.lane.b32.xlu1 %v1166_v20, %s3323_s27 }
 0x12c   : > { %740 = vrot.lane.b32.xlu0 %v3650_v4, %s3322_s26  ;;  %v1288_v4 = vld [vmem:[#allocation2 + $0xca] sm:$0xff] }
 0x12d   : > { %v605_v27 = vpop.permute.xlu1 %604 }
 0x12e   : > { %v486_v28 = vpop.permute.xlu0 %485  ;;  %657 = vst.msk [vmem:[#allocation4 + $0x40] sm:$0xff] %vm648_vm7, %v605_v27 }
 0x12f   : > { %537 = vst.msk [vmem:[#allocation4 + $0x48] sm:$0xff] %vm527_vm6, %v486_v28  ;;  %1339 = vrot.lane.b32.xlu1 %v1287_v2, %s3327_s16 }
 0x130   : > { %1220 = vrot.lane.b32.xlu0 %v1167_v26, %s3326_s9 }
 0x131   : > { %v1086_v29 = vpop.permute.xlu1 %1085  ;;  %v1401_v31 = vld [vmem:[#allocation4 + $0x28] sm:$0xff] }
 0x132   : > { %v967_v30 = vpop.permute.xlu0 %966  ;;  %1140 = vst.msk [vmem:[#allocation4 + $0x30] sm:$0xff] %vm1133_vm11, %v1086_v29  ;;  %3121 = vmatmul.mubr.msk.f32.gmra.mrb[4].mxu0 %vm1428_vm14, %v1401_v31 }
 0x133   : > { %1020 = vst.msk [vmem:[#allocation4 + $0x38] sm:$0xff] %vm1012_vm10, %v967_v30  ;;  %861 = vrot.lane.b32.xlu1 %v1167_v26, %s3323_s27 }
 0x134   : > { %499 = vrot.lane.b32.xlu0 %v1166_v20, %s3321_s25 }
 0x135   : > { %v727_v32 = vpop.permute.xlu1 %726 }
 0x136   : > { %v607_v33 = vpop.permute.xlu0 %606  ;;  %779 = vst.msk [vmem:[#allocation4 + $0x40] sm:$0xff] %vm770_vm8, %v727_v32 }
 0x137   : > { %658 = vst.msk [vmem:[#allocation4 + $0x48] sm:$0xff] %vm648_vm7, %v607_v33  ;;  %1341 = vrot.lane.b32.xlu1 %v1288_v4, %s3327_s16 }
 0x138   : > { %980 = vrot.lane.b32.xlu0 %v1287_v2, %s3324_s28 }
 0x139   : > { %v1207_v34 = vpop.permute.xlu1 %1206 }
 0x13a   : > { %v1088_v35 = vpop.permute.xlu0 %1087  ;;  %1261 = vst.msk [vmem:[#allocation4 + $0x30] sm:$0xff] %vm1254_vm12, %v1207_v34 }
 0x13b   : > { %1141 = vst.msk [vmem:[#allocation4 + $0x38] sm:$0xff] %vm1133_vm11, %v1088_v35  ;;  %620 = vrot.lane.b32.xlu1 %v1287_v2, %s3320_s19  ;;  %v1293_v2 = vld [vmem:[#allocation2 + $0x10a] sm:$0xff] }
 0x13c   : > { %501 = vrot.lane.b32.xlu0 %v1167_v26, %s3321_s25  ;;  %v1294_v26 = vld [vmem:[#allocation2 + $0x112] sm:$0xff] }
 0x13d   : > { %v848_v36 = vpop.permute.xlu1 %847 }
 0x13e   : > { %v729_v37 = vpop.permute.xlu0 %728  ;;  %900 = vst.msk [vmem:[#allocation4 + $0x40] sm:$0xff] %vm891_vm9, %v848_v36 }
 0x13f   : > { %780 = vst.msk [vmem:[#allocation4 + $0x48] sm:$0xff] %vm770_vm8, %v729_v37  ;;  %1101 = vrot.lane.b32.xlu1 %v3671_v12, %s3325_s29 }
 0x140   : > { %982 = vrot.lane.b32.xlu0 %v1288_v4, %s3324_s28 }
 0x141   : > { %v1328_v38 = vpop.permute.xlu1 %1327 }
 0x142   : > { %v1209_v39 = vpop.permute.xlu0 %1208  ;;  %1382 = vst.msk [vmem:[#allocation4 + $0x30] sm:$0xff] %vm1375_vm13, %v1328_v38 }
 0x143   : > { %1262 = vst.msk [vmem:[#allocation4 + $0x38] sm:$0xff] %vm1254_vm12, %v1209_v39  ;;  %742 = vrot.lane.b32.xlu1 %v3671_v12, %s3322_s26  ;;  %v1289_v12 = vld [vmem:[#allocation2 + $0xda] sm:$0xff] }
 0x144   : > { %622 = vrot.lane.b32.xlu0 %v1288_v4, %s3320_s19 }
 0x145   : > { %v850_v41 = vpop.permute.xlu1 %849 }
 0x146   : > { %v488_v42 = vpop.permute.xlu0 %487  ;;  %901 = vst.msk [vmem:[#allocation4 + $0x48] sm:$0xff] %vm891_vm9, %v850_v41 }
 0x147   : > { %538 = vst.msk [vmem:[#allocation4 + $0x50] sm:$0xff] %vm527_vm6, %v488_v42  ;;  %1222 = vrot.lane.b32.xlu1 %v1168_v40, %s3326_s9 }
 0x148   : > { %1103 = vrot.lane.b32.xlu0 %v3686_v18, %s3325_s29 }
 0x149   : > { %v1330_v43 = vpop.permute.xlu1 %1329  ;;  %v1402_v45 = vld [vmem:[#allocation4 + $0x30] sm:$0xff] }
 0x14a   : > { %v969_v44 = vpop.permute.xlu0 %968  ;;  %1383 = vst.msk [vmem:[#allocation4 + $0x38] sm:$0xff] %vm1375_vm13, %v1330_v43  ;;  %3123 = vmatprep.mubr.msk.f32.mxu0 %vm1428_vm14, %v1402_v45 }
 0x14b   : > { %1021 = vst.msk [vmem:[#allocation4 + $0x40] sm:$0xff] %vm1012_vm10, %v969_v44  ;;  %863 = vrot.lane.b32.xlu1 %v1168_v40, %s3323_s27 }
 0x14c   : > { %744 = vrot.lane.b32.xlu0 %v3686_v18, %s3322_s26  ;;  %v1290_v18 = vld [vmem:[#allocation2 + $0xe2] sm:$0xff] }
 0x14d   : > { %v609_v47 = vpop.permute.xlu1 %608 }
 0x14e   : > { %v490_v48 = vpop.permute.xlu0 %489  ;;  %659 = vst.msk [vmem:[#allocation4 + $0x50] sm:$0xff] %vm648_vm7, %v609_v47 }
 0x14f   : > { %539 = vst.msk [vmem:[#allocation4 + $0x58] sm:$0xff] %vm527_vm6, %v490_v48  ;;  %1343 = vrot.lane.b32.xlu1 %v1289_v12, %s3327_s16 }
 0x150   : > { %1224 = vrot.lane.b32.xlu0 %v1169_v46, %s3326_s9 }
 0x151   : > { %v1090_v49 = vpop.permute.xlu1 %1089  ;;  %v1403_v51 = vld [vmem:[#allocation4 + $0x38] sm:$0xff] }
 0x152   : > { %v971_v50 = vpop.permute.xlu0 %970  ;;  %1142 = vst.msk [vmem:[#allocation4 + $0x40] sm:$0xff] %vm1133_vm11, %v1090_v49  ;;  %3124 = vmatmul.mubr.msk.f32.gmra.mrb[6].mxu0 %vm1428_vm14, %v1403_v51 }
 0x153   : > { %1022 = vst.msk [vmem:[#allocation4 + $0x48] sm:$0xff] %vm1012_vm10, %v971_v50  ;;  %865 = vrot.lane.b32.xlu1 %v1169_v46, %s3323_s27 }
 0x154   : > { %503 = vrot.lane.b32.xlu0 %v1168_v40, %s3321_s25 }
 0x155   : > { %v731_v52 = vpop.permute.xlu1 %730 }
 0x156   : > { %v611_v53 = vpop.permute.xlu0 %610  ;;  %781 = vst.msk [vmem:[#allocation4 + $0x50] sm:$0xff] %vm770_vm8, %v731_v52 }
 0x157   : > { %660 = vst.msk [vmem:[#allocation4 + $0x58] sm:$0xff] %vm648_vm7, %v611_v53  ;;  %1345 = vrot.lane.b32.xlu1 %v1290_v18, %s3327_s16 }
 0x158   : > { %984 = vrot.lane.b32.xlu0 %v1289_v12, %s3324_s28 }
 0x159   : > { %v1211_v54 = vpop.permute.xlu1 %1210 }
 0x15a   : > { %v1092_v55 = vpop.permute.xlu0 %1091  ;;  %1263 = vst.msk [vmem:[#allocation4 + $0x40] sm:$0xff] %vm1254_vm12, %v1211_v54 }
 0x15b   : > { %1143 = vst.msk [vmem:[#allocation4 + $0x48] sm:$0xff] %vm1133_vm11, %v1092_v55  ;;  %624 = vrot.lane.b32.xlu1 %v1289_v12, %s3320_s19 }
 0x15c   : > { %505 = vrot.lane.b32.xlu0 %v1169_v46, %s3321_s25 }
 0x15d   : > { %v852_v57 = vpop.permute.xlu1 %851 }
 0x15e   : > { %v733_v58 = vpop.permute.xlu0 %732  ;;  %902 = vst.msk [vmem:[#allocation4 + $0x50] sm:$0xff] %vm891_vm9, %v852_v57 }
 0x15f   : > { %782 = vst.msk [vmem:[#allocation4 + $0x58] sm:$0xff] %vm770_vm8, %v733_v58  ;;  %1105 = vrot.lane.b32.xlu1 %v1049_v56, %s3325_s29 }
 0x160   : > { %986 = vrot.lane.b32.xlu0 %v1290_v18, %s3324_s28 }
 0x161   : > { %v1332_v59 = vpop.permute.xlu1 %1331 }
 0x162   : > { %v1213_v61 = vpop.permute.xlu0 %1212  ;;  %1384 = vst.msk [vmem:[#allocation4 + $0x40] sm:$0xff] %vm1375_vm13, %v1332_v59 }
 0x163   : > { %1264 = vst.msk [vmem:[#allocation4 + $0x48] sm:$0xff] %vm1254_vm12, %v1213_v61  ;;  %746 = vrot.lane.b32.xlu1 %v1049_v56, %s3322_s26 }
 0x164   : > { %626 = vrot.lane.b32.xlu0 %v1290_v18, %s3320_s19 }
 0x165   : > { %v854_v1 = vpop.permute.xlu1 %853 }
 0x166   : > { %v492_v60 = vpop.permute.xlu0 %491  ;;  %903 = vst.msk [vmem:[#allocation4 + $0x58] sm:$0xff] %vm891_vm9, %v854_v1 }
 0x167   : > { %540 = vst.msk [vmem:[#allocation4 + $0x60] sm:$0xff] %vm527_vm6, %v492_v60  ;;  %1226 = vrot.lane.b32.xlu1 %v1170_v0, %s3326_s9 }
 0x168   : > { %1107 = vrot.lane.b32.xlu0 %v1050_v63, %s3325_s29 }
 0x169   : > { %v1334_v3 = vpop.permute.xlu1 %1333  ;;  %v1404_v6 = vld [vmem:[#allocation4 + $0x40] sm:$0xff] }
 0x16a   : > { %v973_v5 = vpop.permute.xlu0 %972  ;;  %1385 = vst.msk [vmem:[#allocation4 + $0x48] sm:$0xff] %vm1375_vm13, %v1334_v3  ;;  %3126 = vmatprep.mubr.msk.f32.mxu0 %vm1428_vm14, %v1404_v6 }
 0x16b   : > { %1023 = vst.msk [vmem:[#allocation4 + $0x50] sm:$0xff] %vm1012_vm10, %v973_v5  ;;  %867 = vrot.lane.b32.xlu1 %v1170_v0, %s3323_s27  ;;  %v3947_v0 = vld [vmem:[%s4516_s2] ss:$0 sm:$0xff] }
 0x16c   : > { %748 = vrot.lane.b32.xlu0 %v1050_v63, %s3322_s26 }
 0x16d   : > { %v613_v9 = vpop.permute.xlu1 %612 }
 0x16e   : > { %v494_v62 = vpop.permute.xlu0 %493  ;;  %661 = vst.msk [vmem:[#allocation4 + $0x60] sm:$0xff] %vm648_vm7, %v613_v9 }
 0x16f   : > { %541 = vst.msk [vmem:[#allocation4 + $0x68] sm:$0xff] %vm527_vm6, %v494_v62  ;;  %1347 = vrot.lane.b32.xlu1 %v1291_v8, %s3327_s16 }
 0x170   : > { %1228 = vrot.lane.b32.xlu0 %v1171_v7, %s3326_s9 }
 0x171   : > { %v1094_v10 = vpop.permute.xlu1 %1093  ;;  %v1405_v13 = vld [vmem:[#allocation4 + $0x48] sm:$0xff] }
 0x172   : > { %v975_v11 = vpop.permute.xlu0 %974  ;;  %1144 = vst.msk [vmem:[#allocation4 + $0x50] sm:$0xff] %vm1133_vm11, %v1094_v10  ;;  %3127 = vmatmul.mubr.msk.f32.gmra.mrb[8].mxu0 %vm1428_vm14, %v1405_v13 }
 0x173   : > { %1024 = vst.msk [vmem:[#allocation4 + $0x58] sm:$0xff] %vm1012_vm10, %v975_v11  ;;  %988 = vrot.lane.b32.xlu1 %v1291_v8, %s3324_s28 }
 0x174   : > { %869 = vrot.lane.b32.xlu0 %v1171_v7, %s3323_s27 }
 0x175   : > { %v735_v15 = vpop.permute.xlu1 %734 }
 0x176   : > { %v615_v16 = vpop.permute.xlu0 %614  ;;  %783 = vst.msk [vmem:[#allocation4 + $0x60] sm:$0xff] %vm770_vm8, %v735_v15 }
 0x177   : > { %662 = vst.msk [vmem:[#allocation4 + $0x68] sm:$0xff] %vm648_vm7, %v615_v16  ;;  %990 = vrot.lane.b32.xlu1 %v1292_v14, %s3324_s28 }
 0x178   : > { %1349 = vrot.lane.b32.xlu0 %v1292_v14, %s3327_s16 }
 0x179   : > { %v1215_v20 = vpop.permute.xlu1 %1214 }
 0x17a   : > { %v1096_v21 = vpop.permute.xlu0 %1095  ;;  %1265 = vst.msk [vmem:[#allocation4 + $0x50] sm:$0xff] %vm1254_vm12, %v1215_v20 }
 0x17b   : > { %1145 = vst.msk [vmem:[#allocation4 + $0x58] sm:$0xff] %vm1133_vm11, %v1096_v21  ;;  %1111 = vrot.lane.b32.xlu1 %v1052_v19, %s3325_s29 }
 0x17c   : > { %1109 = vrot.lane.b32.xlu0 %v1051_v17, %s3325_s29 }
 0x17d   : > { %v856_v24 = vpop.permute.xlu1 %855 }
 0x17e   : > { %v737_v25 = vpop.permute.xlu0 %736  ;;  %904 = vst.msk [vmem:[#allocation4 + $0x60] sm:$0xff] %vm891_vm9, %v856_v24 }
 0x17f   : > { %784 = vst.msk [vmem:[#allocation4 + $0x68] sm:$0xff] %vm770_vm8, %v737_v25  ;;  %1232 = vrot.lane.b32.xlu1 %v1173_v23, %s3326_s9 }
 0x180   : > { %1230 = vrot.lane.b32.xlu0 %v1172_v22, %s3326_s9 }
 0x181   : > { %v1336_v27 = vpop.permute.xlu1 %1335 }
 0x182   : > { %v1217_v28 = vpop.permute.xlu0 %1216  ;;  %1386 = vst.msk [vmem:[#allocation4 + $0x50] sm:$0xff] %vm1375_vm13, %v1336_v27 }
 0x183   : > { %1266 = vst.msk [vmem:[#allocation4 + $0x58] sm:$0xff] %vm1254_vm12, %v1217_v28  ;;  %1353 = vrot.lane.b32.xlu1 %v1294_v26, %s3327_s16 }
 0x184   : > { %1351 = vrot.lane.b32.xlu0 %v1293_v2, %s3327_s16 }
 0x185   : > { %v858_v29 = vpop.permute.xlu1 %857 }
 0x186   : > { %v496_v30 = vpop.permute.xlu0 %495  ;;  %905 = vst.msk [vmem:[#allocation4 + $0x68] sm:$0xff] %vm891_vm9, %v858_v29 }
 0x187   : > { %542 = vst.msk [vmem:[#allocation4 + $0x70] sm:$0xff] %vm527_vm6, %v496_v30 }
 0x189   : > { %v1338_v31 = vpop.permute.xlu1 %1337  ;;  %v1406_v32 = vld [vmem:[#allocation4 + $0x50] sm:$0xff] }
 0x18a   : > { %v977_v4 = vpop.permute.xlu0 %976  ;;  %1387 = vst.msk [vmem:[#allocation4 + $0x58] sm:$0xff] %vm1375_vm13, %v1338_v31  ;;  %3129 = vmatprep.mubr.msk.f32.mxu0 %vm1428_vm14, %v1406_v32 }
 0x18b   : > { %1025 = vst.msk [vmem:[#allocation4 + $0x60] sm:$0xff] %vm1012_vm10, %v977_v4 }
 0x18d   : > { %v617_v33 = vpop.permute.xlu1 %616 }
 0x18e   : > { %v498_v34 = vpop.permute.xlu0 %497  ;;  %663 = vst.msk [vmem:[#allocation4 + $0x70] sm:$0xff] %vm648_vm7, %v617_v33 }
 0x18f   : > { %543 = vst.msk [vmem:[#allocation4 + $0x78] sm:$0xff] %vm527_vm6, %v498_v34 }
 0x191   : > { %v1098_v35 = vpop.permute.xlu1 %1097  ;;  %v1407_v37 = vld [vmem:[#allocation4 + $0x58] sm:$0xff] }
 0x192   : > { %v979_v36 = vpop.permute.xlu0 %978  ;;  %1146 = vst.msk [vmem:[#allocation4 + $0x60] sm:$0xff] %vm1133_vm11, %v1098_v35  ;;  %3130 = vmatmul.mubr.msk.f32.gmra.mrb[10].mxu0 %vm1428_vm14, %v1407_v37 }
 0x193   : > { %1026 = vst.msk [vmem:[#allocation4 + $0x68] sm:$0xff] %vm1012_vm10, %v979_v36 }
 0x195   : > { %v739_v38 = vpop.permute.xlu1 %738 }
 0x196   : > { %v619_v39 = vpop.permute.xlu0 %618  ;;  %785 = vst.msk [vmem:[#allocation4 + $0x70] sm:$0xff] %vm770_vm8, %v739_v38 }
 0x197   : > { %664 = vst.msk [vmem:[#allocation4 + $0x78] sm:$0xff] %vm648_vm7, %v619_v39 }
 0x199   : > { %v1219_v40 = vpop.permute.xlu1 %1218 }
 0x19a   : > { %v1100_v41 = vpop.permute.xlu0 %1099  ;;  %1267 = vst.msk [vmem:[#allocation4 + $0x60] sm:$0xff] %vm1254_vm12, %v1219_v40 }
 0x19b   : > { %1147 = vst.msk [vmem:[#allocation4 + $0x68] sm:$0xff] %vm1133_vm11, %v1100_v41 }
 0x19d   : > { %v860_v42 = vpop.permute.xlu1 %859 }
 0x19e   : > { %v741_v43 = vpop.permute.xlu0 %740  ;;  %906 = vst.msk [vmem:[#allocation4 + $0x70] sm:$0xff] %vm891_vm9, %v860_v42 }
 0x19f   : > { %786 = vst.msk [vmem:[#allocation4 + $0x78] sm:$0xff] %vm770_vm8, %v741_v43 }
 0x1a1   : > { %v1340_v44 = vpop.permute.xlu1 %1339 }
 0x1a2   : > { %v1221_v45 = vpop.permute.xlu0 %1220  ;;  %1388 = vst.msk [vmem:[#allocation4 + $0x60] sm:$0xff] %vm1375_vm13, %v1340_v44 }
 0x1a3   : > { %1268 = vst.msk [vmem:[#allocation4 + $0x68] sm:$0xff] %vm1254_vm12, %v1221_v45 }
 0x1a5   : > { %v862_v12 = vpop.permute.xlu1 %861 }
 0x1a6   : > { %v500_v46 = vpop.permute.xlu0 %499  ;;  %907 = vst.msk [vmem:[#allocation4 + $0x78] sm:$0xff] %vm891_vm9, %v862_v12 }
 0x1a7   : > { %544 = vst.msk [vmem:[#allocation4 + $0x80] sm:$0xff] %vm527_vm6, %v500_v46 }
 0x1a9   : > { %v1342_v47 = vpop.permute.xlu1 %1341  ;;  %v1408_v49 = vld [vmem:[#allocation4 + $0x60] sm:$0xff] }
 0x1aa   : > { %v981_v48 = vpop.permute.xlu0 %980  ;;  %1389 = vst.msk [vmem:[#allocation4 + $0x68] sm:$0xff] %vm1375_vm13, %v1342_v47  ;;  %3132 = vmatprep.mubr.msk.f32.mxu0 %vm1428_vm14, %v1408_v49 }
 0x1ab   : > { %1027 = vst.msk [vmem:[#allocation4 + $0x70] sm:$0xff] %vm1012_vm10, %v981_v48 }
 0x1ad   : > { %v621_v50 = vpop.permute.xlu1 %620 }
 0x1ae   : > { %v502_v51 = vpop.permute.xlu0 %501  ;;  %665 = vst.msk [vmem:[#allocation4 + $0x80] sm:$0xff] %vm648_vm7, %v621_v50 }
 0x1af   : > { %545 = vst.msk [vmem:[#allocation4 + $0x88] sm:$0xff] %vm527_vm6, %v502_v51 }
 0x1b1   : > { %v1102_v18 = vpop.permute.xlu1 %1101  ;;  %v1409_v53 = vld [vmem:[#allocation4 + $0x68] sm:$0xff] }
 0x1b2   : > { %v983_v52 = vpop.permute.xlu0 %982  ;;  %1148 = vst.msk [vmem:[#allocation4 + $0x70] sm:$0xff] %vm1133_vm11, %v1102_v18  ;;  %3133 = vmatmul.mubr.msk.f32.gmra.mrb[12].mxu0 %vm1428_vm14, %v1409_v53 }
 0x1b3   : > { %1028 = vst.msk [vmem:[#allocation4 + $0x78] sm:$0xff] %vm1012_vm10, %v983_v52 }
 0x1b5   : > { %v743_v54 = vpop.permute.xlu1 %742 }
 0x1b6   : > { %v623_v55 = vpop.permute.xlu0 %622  ;;  %787 = vst.msk [vmem:[#allocation4 + $0x80] sm:$0xff] %vm770_vm8, %v743_v54 }
 0x1b7   : > { %666 = vst.msk [vmem:[#allocation4 + $0x88] sm:$0xff] %vm648_vm7, %v623_v55 }
 0x1b9   : > { %v1223_v56 = vpop.permute.xlu1 %1222 }
 0x1ba   : > { %v1104_v57 = vpop.permute.xlu0 %1103  ;;  %1269 = vst.msk [vmem:[#allocation4 + $0x70] sm:$0xff] %vm1254_vm12, %v1223_v56 }
 0x1bb   : > { %1149 = vst.msk [vmem:[#allocation4 + $0x78] sm:$0xff] %vm1133_vm11, %v1104_v57 }
 0x1bd   : > { %v864_v58 = vpop.permute.xlu1 %863 }
 0x1be   : > { %v745_v59 = vpop.permute.xlu0 %744  ;;  %908 = vst.msk [vmem:[#allocation4 + $0x80] sm:$0xff] %vm891_vm9, %v864_v58 }
 0x1bf   : > { %788 = vst.msk [vmem:[#allocation4 + $0x88] sm:$0xff] %vm770_vm8, %v745_v59 }
 0x1c1   : > { %v1344_v61 = vpop.permute.xlu1 %1343 }
 0x1c2   : > { %v1225_v63 = vpop.permute.xlu0 %1224  ;;  %1390 = vst.msk [vmem:[#allocation4 + $0x70] sm:$0xff] %vm1375_vm13, %v1344_v61 }
 0x1c3   : > { %1270 = vst.msk [vmem:[#allocation4 + $0x78] sm:$0xff] %vm1254_vm12, %v1225_v63 }
 0x1c5   : > { %v866_v1 = vpop.permute.xlu1 %865  ;;  %v3116_v3 = vpop.f32.mrb[0].mxu0 }
 0x1c6   : > { %v504_v60 = vpop.permute.xlu0 %503  ;;  %909 = vst.msk [vmem:[#allocation4 + $0x88] sm:$0xff] %vm891_vm9, %v866_v1  ;;  %v1565_v5 = vadd.f32 %v3116_v3, %v3947_v0  ;;  %v1559_v6 = vpop.f32.mrb[1].mxu0 }
 0x1c7   : > { %546 = vst.msk [vmem:[#allocation4 + $0x90] sm:$0xff] %vm527_vm6, %v504_v60  ;;  %v1560_v7 = vadd.f32 %v3947_v0, %v1559_v6 }
 0x1c8   : > { %v1659_v8 = vmax.f32 %v1565_v5, 0.0 }
 0x1c9   : > { %v1346_v9 = vpop.permute.xlu1 %1345  ;;  %v1410_v10 = vld [vmem:[#allocation4 + $0x70] sm:$0xff]  ;;  %v1658_v11 = vmax.f32 %v1560_v7, 0.0 }
 0x1ca   : > { %v985_v62 = vpop.permute.xlu0 %984  ;;  %1391 = vst.msk [vmem:[#allocation4 + $0x78] sm:$0xff] %vm1375_vm13, %v1346_v9  ;;  %3135 = vmatprep.mubr.msk.f32.mxu0 %vm1428_vm14, %v1410_v10 }
 0x1cb   : > { %1029 = vst.msk [vmem:[#allocation4 + $0x80] sm:$0xff] %vm1012_vm10, %v985_v62 }
 0x1cc   : > { %1680 = vst.msk [vmem:[#allocation3 + $0x9] sm:$0xff] %vm1678_vm15, %v1659_v8  ;;  %1679 = vst.msk [vmem:[#allocation3 + $0x1] sm:$0xff] %vm1678_vm15, %v1658_v11 }
 0x1cd   : > { %v625_v14 = vpop.permute.xlu1 %624 }
 0x1ce   : > { %v506_v13 = vpop.permute.xlu0 %505  ;;  %667 = vst.msk [vmem:[#allocation4 + $0x90] sm:$0xff] %vm648_vm7, %v625_v14 }
 0x1cf   : > { %547 = vst.msk [vmem:[#allocation4 + $0x98] sm:$0xff] %vm527_vm6, %v506_v13 }
 0x1d1   : > { %v1106_v16 = vpop.permute.xlu1 %1105  ;;  %v1411_v17 = vld [vmem:[#allocation4 + $0x78] sm:$0xff] }
 0x1d2   : > { %v987_v15 = vpop.permute.xlu0 %986  ;;  %1150 = vst.msk [vmem:[#allocation4 + $0x80] sm:$0xff] %vm1133_vm11, %v1106_v16  ;;  %3136 = vmatmul.mubr.msk.f32.gmra.mrb[14].mxu0 %vm1428_vm14, %v1411_v17 }
 0x1d3   : > { %1030 = vst.msk [vmem:[#allocation4 + $0x88] sm:$0xff] %vm1012_vm10, %v987_v15 }
 0x1d5   : > { %v747_v20 = vpop.permute.xlu1 %746 }
 0x1d6   : > { %v627_v19 = vpop.permute.xlu0 %626  ;;  %789 = vst.msk [vmem:[#allocation4 + $0x90] sm:$0xff] %vm770_vm8, %v747_v20 }
 0x1d7   : > { %668 = vst.msk [vmem:[#allocation4 + $0x98] sm:$0xff] %vm648_vm7, %v627_v19 }
 0x1d9   : > { %v1227_v22 = vpop.permute.xlu1 %1226 }
 0x1da   : > { %v1108_v21 = vpop.permute.xlu0 %1107  ;;  %1271 = vst.msk [vmem:[#allocation4 + $0x80] sm:$0xff] %vm1254_vm12, %v1227_v22 }
 0x1db   : > { %1151 = vst.msk [vmem:[#allocation4 + $0x88] sm:$0xff] %vm1133_vm11, %v1108_v21 }
 0x1dd   : > { %v868_v24 = vpop.permute.xlu1 %867 }
 0x1de   : > { %v749_v23 = vpop.permute.xlu0 %748  ;;  %910 = vst.msk [vmem:[#allocation4 + $0x90] sm:$0xff] %vm891_vm9, %v868_v24 }
 0x1df   : > { %790 = vst.msk [vmem:[#allocation4 + $0x98] sm:$0xff] %vm770_vm8, %v749_v23 }
 0x1e1   : > { %v1348_v2 = vpop.permute.xlu1 %1347 }
 0x1e2   : > { %v1229_v25 = vpop.permute.xlu0 %1228  ;;  %1392 = vst.msk [vmem:[#allocation4 + $0x80] sm:$0xff] %vm1375_vm13, %v1348_v2 }
 0x1e3   : > { %1272 = vst.msk [vmem:[#allocation4 + $0x88] sm:$0xff] %vm1254_vm12, %v1229_v25 }
 0x1e5   : > { %v3119_v27 = vpop.f32.mrb[2].mxu0  ;;  %v989_v29 = vpop.permute.xlu1 %988 }
 0x1e6   : > { %v870_v26 = vpop.permute.xlu0 %869  ;;  %v1575_v28 = vadd.f32 %v3119_v27, %v3947_v0  ;;  %v1569_v30 = vpop.f32.mrb[3].mxu0  ;;  %1031 = vst.msk [vmem:[#allocation4 + $0x90] sm:$0xff] %vm1012_vm10, %v989_v29 }
 0x1e7   : > { %911 = vst.msk [vmem:[#allocation4 + $0x98] sm:$0xff] %vm891_vm9, %v870_v26  ;;  %v1570_v31 = vadd.f32 %v3947_v0, %v1569_v30 }
 0x1e8   : > { %v1661_v4 = vmax.f32 %v1575_v28, 0.0 }
 0x1e9   : > { %v1660_v32 = vmax.f32 %v1570_v31, 0.0  ;;  %v1412_v34 = vld [vmem:[#allocation4 + $0x80] sm:$0xff]  ;;  %v991_v35 = vpop.permute.xlu1 %990  ;;  %v3328_v31 = vmov (!%p2994_p7), 0.0  }
 0x1ea   : > { %v1350_v33 = vpop.permute.xlu0 %1349  ;;  %1682 = vst.msk [vmem:[#allocation3 + $0x21] sm:$0xff] %vm1678_vm15, %v1661_v4  ;;  %3138 = vmatprep.mubr.msk.f32.mxu0 %vm1428_vm14, %v1412_v34  ;;  %1702 = vst.msk [vmem:[#allocation3] sm:$0xff] (!%p2994_p7), %vm1678_vm15, %v3328_v31 }
 0x1eb   : > { %1393 = vst.msk [vmem:[#allocation4 + $0x88] sm:$0xff] %vm1375_vm13, %v1350_v33 }
 0x1ec   : > { %1681 = vst.msk [vmem:[#allocation3 + $0x19] sm:$0xff] %vm1678_vm15, %v1660_v32  ;;  %1703 = vst.msk [vmem:[#allocation3 + $0x8] sm:$0xff] (!%p2994_p7), %vm1678_vm15, %v3328_v31 }
 0x1ed   : > { %1032 = vst.msk [vmem:[#allocation4 + $0x98] sm:$0xff] %vm1012_vm10, %v991_v35  ;;  %v1112_v37 = vpop.permute.xlu1 %1111 }
 0x1ee   : > { %v1110_v36 = vpop.permute.xlu0 %1109  ;;  %1153 = vst.msk [vmem:[#allocation4 + $0x98] sm:$0xff] %vm1133_vm11, %v1112_v37 }
 0x1ef   : > { %1152 = vst.msk [vmem:[#allocation4 + $0x90] sm:$0xff] %vm1133_vm11, %v1110_v36 }
 0x1f0   : > { %1705 = vst.msk [vmem:[#allocation3 + $0x10] sm:$0x3] (!%p2994_p7), %vm1704_vm0, %v3328_v31 }
 0x1f1   : > { %v1233_v40 = vpop.permute.xlu1 %1232 }
 0x1f2   : > { %v1231_v38 = vpop.permute.xlu0 %1230  ;;  %v1413_v39 = vld [vmem:[#allocation4 + $0x88] sm:$0xff]  ;;  %1274 = vst.msk [vmem:[#allocation4 + $0x98] sm:$0xff] %vm1254_vm12, %v1233_v40 }
 0x1f3   : > { %1273 = vst.msk [vmem:[#allocation4 + $0x90] sm:$0xff] %vm1254_vm12, %v1231_v38  ;;  %3139 = vmatmul.mubr.msk.f32.gmra.mrb[16].mxu0 %vm1428_vm14, %v1413_v39 }
 0x1f5   : > { %v1354_v42 = vpop.permute.xlu1 %1353 }
 0x1f6   : > { %v1352_v41 = vpop.permute.xlu0 %1351  ;;  %1395 = vst.msk [vmem:[#allocation4 + $0x98] sm:$0xff] %vm1375_vm13, %v1354_v42 }
 0x1f7   : > { %1394 = vst.msk [vmem:[#allocation4 + $0x90] sm:$0xff] %vm1375_vm13, %v1352_v41 }
 0x1fd   : > { %v1415_v44 = vld [vmem:[#allocation4 + $0x98] sm:$0xff] }
 0x1fe   : > { %v1414_v43 = vld [vmem:[#allocation4 + $0x90] sm:$0xff] }
 0x1ff   : > { %3141 = vmatprep.mubr.msk.f32.mxu0 %vm1428_vm14, %v1414_v43 }
 0x200   : > { %3142 = vmatmul.mubr.msk.f32.gmra.mrb[18].mxu0 %vm1428_vm14, %v1415_v44 }
 0x205   : > { %v3122_v45 = vpop.f32.mrb[4].mxu0 }
 0x206   : > { %v1585_v12 = vadd.f32 %v3122_v45, %v3947_v0  ;;  %v1579_v46 = vpop.f32.mrb[5].mxu0 }
 0x207   : > { %v1580_v47 = vadd.f32 %v3947_v0, %v1579_v46 }
 0x208   : > { %v1663_v48 = vmax.f32 %v1585_v12, 0.0 }
 0x209   : > { %v1662_v49 = vmax.f32 %v1580_v47, 0.0 }
 0x20a   : > { %1684 = vst.msk [vmem:[#allocation3 + $0x39] sm:$0xff] %vm1678_vm15, %v1663_v48 }
 0x20b   : > { %1683 = vst.msk [vmem:[#allocation3 + $0x31] sm:$0xff] %vm1678_vm15, %v1662_v49 }
 0x225   : > { %v3125_v50 = vpop.f32.mrb[6].mxu0 }
 0x226   : > { %v1595_v51 = vadd.f32 %v3125_v50, %v3947_v0  ;;  %v1589_v18 = vpop.f32.mrb[7].mxu0 }
 0x227   : > { %v1590_v52 = vadd.f32 %v3947_v0, %v1589_v18 }
 0x228   : > { %v1665_v53 = vmax.f32 %v1595_v51, 0.0 }
 0x229   : > { %v1664_v54 = vmax.f32 %v1590_v52, 0.0 }
 0x22a   : > { %1686 = vst.msk [vmem:[#allocation3 + $0x51] sm:$0xff] %vm1678_vm15, %v1665_v53 }
 0x22b   : > { %1685 = vst.msk [vmem:[#allocation3 + $0x49] sm:$0xff] %vm1678_vm15, %v1664_v54 }
 0x245   : > { %v3128_v55 = vpop.f32.mrb[8].mxu0 }
 0x246   : > { %v1605_v56 = vadd.f32 %v3128_v55, %v3947_v0  ;;  %v1599_v57 = vpop.f32.mrb[9].mxu0 }
 0x247   : > { %v1600_v58 = vadd.f32 %v3947_v0, %v1599_v57 }
 0x248   : > { %v1667_v59 = vmax.f32 %v1605_v56, 0.0 }
 0x249   : > { %v1666_v61 = vmax.f32 %v1600_v58, 0.0 }
 0x24a   : > { %1688 = vst.msk [vmem:[#allocation3 + $0x69] sm:$0xff] %vm1678_vm15, %v1667_v59 }
 0x24b   : > { %1687 = vst.msk [vmem:[#allocation3 + $0x61] sm:$0xff] %vm1678_vm15, %v1666_v61 }
 0x265   : > { %v3131_v63 = vpop.f32.mrb[10].mxu0 }
 0x266   : > { %v1615_v1 = vadd.f32 %v3131_v63, %v3947_v0  ;;  %v1609_v60 = vpop.f32.mrb[11].mxu0 }
 0x267   : > { %v1610_v3 = vadd.f32 %v3947_v0, %v1609_v60 }
 0x268   : > { %v1669_v5 = vmax.f32 %v1615_v1, 0.0 }
 0x269   : > { %v1668_v6 = vmax.f32 %v1610_v3, 0.0 }
 0x26a   : > { %1690 = vst.msk [vmem:[#allocation3 + $0x81] sm:$0xff] %vm1678_vm15, %v1669_v5 }
 0x26b   : > { %1689 = vst.msk [vmem:[#allocation3 + $0x79] sm:$0xff] %vm1678_vm15, %v1668_v6 }
 0x285   : > { %v3134_v7 = vpop.f32.mrb[12].mxu0 }
 0x286   : > { %v1625_v8 = vadd.f32 %v3134_v7, %v3947_v0  ;;  %v1619_v9 = vpop.f32.mrb[13].mxu0 }
 0x287   : > { %v1620_v62 = vadd.f32 %v3947_v0, %v1619_v9 }
 0x288   : > { %v1671_v10 = vmax.f32 %v1625_v8, 0.0 }
 0x289   : > { %v1670_v11 = vmax.f32 %v1620_v62, 0.0 }
 0x28a   : > { %1692 = vst.msk [vmem:[#allocation3 + $0x99] sm:$0xff] %vm1678_vm15, %v1671_v10 }
 0x28b   : > { %1691 = vst.msk [vmem:[#allocation3 + $0x91] sm:$0xff] %vm1678_vm15, %v1670_v11 }
 0x2a5   : > { %v3137_v13 = vpop.f32.mrb[14].mxu0 }
 0x2a6   : > { %v1635_v14 = vadd.f32 %v3137_v13, %v3947_v0  ;;  %v1629_v15 = vpop.f32.mrb[15].mxu0 }
 0x2a7   : > { %v1630_v16 = vadd.f32 %v3947_v0, %v1629_v15 }
 0x2a8   : > { %v1673_v17 = vmax.f32 %v1635_v14, 0.0 }
 0x2a9   : > { %v1672_v19 = vmax.f32 %v1630_v16, 0.0 }
 0x2aa   : > { %1694 = vst.msk [vmem:[#allocation3 + $0xb1] sm:$0xff] %vm1678_vm15, %v1673_v17 }
 0x2ab   : > { %1693 = vst.msk [vmem:[#allocation3 + $0xa9] sm:$0xff] %vm1678_vm15, %v1672_v19 }
 0x2c6   : > { %v3140_v20 = vpop.f32.mrb[16].mxu0 }
 0x2c7   : > { %v1645_v21 = vadd.f32 %v3140_v20, %v3947_v0  ;;  %v1639_v22 = vpop.f32.mrb[17].mxu0 }
 0x2c8   : > { %v1640_v23 = vadd.f32 %v3947_v0, %v1639_v22 }
 0x2c9   : > { %v1675_v24 = vmax.f32 %v1645_v21, 0.0 }
 0x2ca   : > { %v1674_v25 = vmax.f32 %v1640_v23, 0.0 }
 0x2cb   : > { %1696 = vst.msk [vmem:[#allocation3 + $0xc9] sm:$0xff] %vm1678_vm15, %v1675_v24 }
 0x2cc   : > { %1695 = vst.msk [vmem:[#allocation3 + $0xc1] sm:$0xff] %vm1678_vm15, %v1674_v25 }
 0x2d3   : > { %v3143_v2 = vpop.f32.mrb[18].mxu0  ;;  %1701 = sbr.rel (%p2994_p7) target bundleno = 730 (0x2da), region = 60 }
 0x2d4   : > { %v1655_v26 = vadd.f32 %v3143_v2, %v3947_v0  ;;  %v1649_v27 = vpop.f32.mrb[19].mxu0 }
 0x2d5   : > { %v1650_v28 = vadd.f32 %v3947_v0, %v1649_v27 }
 0x2d6   : > { %v1677_v29 = vmax.f32 %v1655_v26, 0.0 }
 0x2d7   : > { %v1676_v30 = vmax.f32 %v1650_v28, 0.0 }
 0x2d8   : > { %1698 = vst.msk [vmem:[#allocation3 + $0xe1] sm:$0xff] %vm1678_vm15, %v1677_v29 }
 0x2d9   : > { %1697 = vst.msk [vmem:[#allocation3 + $0xd9] sm:$0xff] %vm1678_vm15, %v1676_v30 }
 0x2da PF: > { %1708 = sbr.rel (%p2998_p9) target bundleno = 737 (0x2e1), region = 64  ;;  %vm1712_vm1 = vcmask (!%p2998_p9), 58368   ;;  %v3329_v0 = vmov (!%p2998_p9), 0.0  }
 0x2db   : > { %1710 = vst.msk [vmem:[#allocation3 + $0xd8] sm:$0xff] (!%p2998_p9), %vm1678_vm15, %v3329_v0  ;;  %1711 = vst.msk [vmem:[#allocation3 + $0xe0] sm:$0xff] (!%p2998_p9), %vm1678_vm15, %v3329_v0 }
 0x2dc   : > { %1713 = vst.msk [vmem:[#allocation3 + $0xe8] sm:$0x3] (!%p2998_p9), %vm1712_vm1, %v3329_v0 }
 0x2e1 PF: > { %v1843_v4 = vld [vmem:[#allocation3 + $0x2] sm:$0xff]  ;;  %v1941_v34 = vld [vmem:[#allocation3 + $0x18] sm:$0xff]  ;;  %v1844_v35 = vld [vmem:[#allocation3 + $0xa] sm:$0xff]  ;;  %s3330_s18 = smov 40   ;;  %s3331_s28 = smov 48   ;;  %vm3334_vm2 = vmmov 1  }
 0x2e2   : > { %v1746_v32 = vld [vmem:[#allocation3 + $0x1] sm:$0xff]  ;;  %1875 = vrot.lane.b32.xlu1 %v1843_v4, %s3323_s27  ;;  %v1747_v36 = vld [vmem:[#allocation3 + $0x9] sm:$0xff]  ;;  %1732 = vst.msk [vmem:[#allocation4 + $0x10] sm:$0xff] %vm1678_vm15, %v1941_v34  ;;  %v2234_v38 = vld [vmem:[#allocation3 + $0x38] sm:$0xff]  ;;  %s3332_s6 = smov 56   ;;  %s3333_s30 = smov 64  }
 0x2e3   : > { %1778 = vrot.lane.b32.xlu0 %v1746_v32, %s3320_s19  ;;  %v1942_v33 = vld [vmem:[#allocation3 + $0x20] sm:$0xff]  ;;  %v2233_v37 = vld [vmem:[#allocation3 + $0x30] sm:$0xff]  ;;  %1735 = vst.msk [vmem:[#allocation4 + $0x28] sm:$0xff] %vm1678_vm15, %v2234_v38  ;;  %v4037_v39 = vld [vmem:[#allocation3 + $0x48] sm:$0xff]  ;;  %s3335_s7 = smov 72   ;;  %vm1826_vm4 = vcmask 130112  }
 0x2e4   : > { %1733 = vst.msk [vmem:[#allocation4 + $0x18] sm:$0xff] %vm1678_vm15, %v1942_v33  ;;  %1734 = vst.msk [vmem:[#allocation4 + $0x20] sm:$0xff] %vm1678_vm15, %v2233_v37  ;;  %v4039_v40 = vld [vmem:[#allocation3 + $0x50] sm:$0xff]  ;;  %v4045_v41 = vld [vmem:[#allocation3 + $0x60] sm:$0xff]  ;;  %vm2021_vm6 = vcmask 261312   ;;  %vm2118_vm7 = vcmask 326912  }
 0x2e5   : > { %1736 = vst.msk [vmem:[#allocation4 + $0x30] sm:$0xff] %vm1678_vm15, %v4037_v39  ;;  %1737 = vst.msk [vmem:[#allocation4 + $0x38] sm:$0xff] %vm1678_vm15, %v4039_v40  ;;  %v4049_v42 = vld [vmem:[#allocation3 + $0x68] sm:$0xff]  ;;  %v1748_v43 = vld [vmem:[#allocation3 + $0x19] sm:$0xff]  ;;  %vm2215_vm8 = vcmask 392512   ;;  %vm2313_vm9 = vcmask 458112  }
 0x2e6   : > { %1877 = vrot.lane.b32.xlu1 %v1844_v35, %s3323_s27  ;;  %1738 = vst.msk [vmem:[#allocation4 + $0x40] sm:$0xff] %vm1678_vm15, %v4045_v41  ;;  %v1714_v44 = vld [vmem:[#allocation3] sm:$0xff]  ;;  %v1715_v45 = vld [vmem:[#allocation3 + $0x8] sm:$0xff]  ;;  %1739 = vst.msk [vmem:[#allocation4 + $0x48] sm:$0xff] %vm1678_vm15, %v4049_v42  ;;  %vm2410_vm10 = vcmask 523712   ;;  %vm2507_vm11 = vcmask 589312  }
 0x2e7   : > { %1780 = vrot.lane.b32.xlu0 %v1747_v36, %s3320_s19  ;;  %1730 = vst.msk [vmem:[#allocation4] sm:$0xff] %vm1678_vm15, %v1714_v44  ;;  %1731 = vst.msk [vmem:[#allocation4 + $0x8] sm:$0xff] %vm1678_vm15, %v1715_v45  ;;  %v4057_v12 = vld [vmem:[#allocation3 + $0x78] sm:$0xff]  ;;  %v4059_v46 = vld [vmem:[#allocation3 + $0x80] sm:$0xff]  ;;  %vm2604_vm12 = vcmask 622144   ;;  %vm2654_vm13 = vcmask 621568  }
 0x2e8   : > { %1740 = vst.msk [vmem:[#allocation4 + $0x50] sm:$0xff] %vm1678_vm15, %v4057_v12  ;;  %1741 = vst.msk [vmem:[#allocation4 + $0x58] sm:$0xff] %vm1678_vm15, %v4059_v46  ;;  %v2135_v47 = vld [vmem:[#allocation3 + $0x1a] sm:$0xff]  ;;  %v2136_v49 = vld [vmem:[#allocation3 + $0x22] sm:$0xff] }
 0x2e9   : > { %v2039_v48 = vld [vmem:[#allocation3 + $0x21] sm:$0xff]  ;;  %v2330_v50 = vld [vmem:[#allocation3 + $0x31] sm:$0xff]  ;;  %v2331_v56 = vld [vmem:[#allocation3 + $0x39] sm:$0xff] }
 0x2ea   : > { %1975 = vrot.lane.b32.xlu1 %v1942_v33, %s3325_s29  ;;  %v2637_v51 = vld [vmem:[%s4517_s3] sm:$0xff]  ;;  %v2638_v18 = vld [vmem:[%s4517_s3 + $0x8] sm:$0xff]  ;;  %v2639_v53 = vld [vmem:[%s4517_s3 + $0x10] sm:$0xff] }
 0x2eb   : > { %1973 = vrot.lane.b32.xlu0 %v1941_v34, %s3325_s29  ;;  %v3196_v52 = vpack.c.bf16 %v2638_v18, %v2637_v51  ;;  %v2640_v54 = vld [vmem:[%s4517_s3 + $0x18] sm:$0xff]  ;;  %v4091_v58 = vld [vmem:[#allocation3 + $0x90] sm:$0xff]  ;;  %v2641_v59 = vld [vmem:[%s4517_s3 + $0x20] sm:$0xff] }
 0x2ec   : > { %v2427_v55 = vld [vmem:[#allocation3 + $0x32] sm:$0xff]  ;;  %v3200_v57 = vpack.c.bf16 %v2640_v54, %v2639_v53  ;;  %v2642_v61 = vld [vmem:[%s4517_s3 + $0x28] sm:$0xff]  ;;  %1742 = vst.msk [vmem:[#allocation4 + $0x60] sm:$0xff] %vm1678_vm15, %v4091_v58  ;;  %v2428_v3 = vld [vmem:[#allocation3 + $0x3a] sm:$0xff] }
 0x2ed   : > { %3197 = vmatprep.subr.bf16.mxu1 %v3196_v52  ;;  %v3204_v63 = vpack.c.bf16 %v2642_v61, %v2641_v59  ;;  %v2643_v1 = vld [vmem:[%s4517_s3 + $0x30] sm:$0xff]  ;;  %v2644_v60 = vld [vmem:[%s4517_s3 + $0x38] sm:$0xff]  ;;  %v2645_v7 = vld [vmem:[%s4517_s3 + $0x40] sm:$0xff] }
 0x2ee   : > { %1782 = vrot.lane.b32.xlu1 %v1748_v43, %s3320_s19  ;;  %3199 = vmatpush3.bf16.msra.mxu1 %v3196_v52  ;;  %v3208_v5 = vpack.c.bf16 %v2644_v60, %v2643_v1  ;;  %v4111_v6 = vld [vmem:[#allocation3 + $0x98] sm:$0xff]  ;;  %v2646_v8 = vld [vmem:[%s4517_s3 + $0x48] sm:$0xf]  ;;  %v2524_v9 = vld [vmem:[%s3460_s10] sm:$0xff] }
 0x2ef   : > { %2070 = vrot.lane.b32.xlu0 %v1748_v43, %s3327_s16  ;;  %3201 = vmatprep.subr.bf16.mxu1 %v3200_v57  ;;  %1743 = vst.msk [vmem:[#allocation4 + $0x68] sm:$0xff] %vm1678_vm15, %v4111_v6  ;;  %v3212_v62 = vpack.c.bf16 %v2646_v8, %v2645_v7  ;;  %vm3213_vm3 = vmpackc.low %vm1489_vm5, %vm3334_vm2  ;;  %v2525_v10 = vld [vmem:[%s3460_s10 + $0x8] sm:$0xff]  ;;  %v2333_v14 = vld [vmem:[#allocation3 + $0x51] sm:$0xff]  ;;  %vm1923_vm5 = vcmask 195712  }
 0x2f0   : > { %v2332_v11 = vld [vmem:[#allocation3 + $0x49] sm:$0xff]  ;;  %v2430_v16 = vld [vmem:[#allocation3 + $0x52] sm:$0xff]  ;;  %v2334_v21 = vld [vmem:[#allocation3 + $0x61] sm:$0xff] }
 0x2f1   : > { %v2429_v13 = vld [vmem:[#allocation3 + $0x4a] sm:$0xff]  ;;  %v2527_v20 = vld [vmem:[%s3460_s10 + $0x18] sm:$0xff]  ;;  %v2431_v22 = vld [vmem:[#allocation3 + $0x62] sm:$0xff] }
 0x2f2   : > { %2167 = vrot.lane.b32.xlu1 %v2135_v47, %s3330_s18  ;;  %3203 = vmatpush3.bf16.msra.mxu1 %v3200_v57  ;;  %v4142_v15 = vld [vmem:[#allocation3 + $0xa8] sm:$0xff]  ;;  %v4150_v17 = vld [vmem:[#allocation3 + $0xb0] sm:$0xff]  ;;  %v2528_v28 = vld [vmem:[%s3460_s10 + $0x20] sm:$0xff] }
 0x2f3   : > { %2072 = vrot.lane.b32.xlu0 %v2039_v48, %s3327_s16  ;;  %3205 = vmatprep.subr.bf16.mxu1 %v3204_v63  ;;  %1744 = vst.msk [vmem:[#allocation4 + $0x70] sm:$0xff] %vm1678_vm15, %v4142_v15  ;;  %1745 = vst.msk [vmem:[#allocation4 + $0x78] sm:$0xff] %vm1678_vm15, %v4150_v17  ;;  %v2526_v19 = vld [vmem:[%s3460_s10 + $0x10] sm:$0xff]  ;;  %v2529_v4 = vld [vmem:[%s3460_s10 + $0x28] sm:$0xff] }
 0x2f4   : > { %v2335_v23 = vld [vmem:[#allocation3 + $0x69] sm:$0xff]  ;;  %v2336_v36 = vld [vmem:[#allocation3 + $0x79] sm:$0xff]  ;;  %v2338_v59 = vld [vmem:[#allocation3 + $0x91] sm:$0xff] }
 0x2f5   : > { %v2432_v2 = vld [vmem:[#allocation3 + $0x6a] sm:$0xff]  ;;  %v2531_v53 = vld [vmem:[%s3460_s10 + $0x38] sm:$0xff] }
 0x2f6   : > { %1879 = vrot.lane.b32.xlu1 %v2135_v47, %s3323_s27  ;;  %3207 = vmatpush3.bf16.msra.mxu1 %v3204_v63 }
 0x2f7   : > { %1784 = vrot.lane.b32.xlu0 %v2039_v48, %s3320_s19  ;;  %3209 = vmatprep.subr.bf16.mxu1 %v3208_v5 }
 0x2fa   : > { %2265 = vrot.lane.b32.xlu1 %v2233_v37, %s3331_s28  ;;  %3211 = vmatpush3.bf16.msra.mxu1 %v3208_v5  ;;  %v2339_v5 = vld [vmem:[#allocation3 + $0x99] sm:$0xff] }
 0x2fb   : > { %2169 = vrot.lane.b32.xlu0 %v2136_v49, %s3330_s18  ;;  %3214 = vmatprep.subr.msk.bf16.mxu1 %vm3213_vm3, %v3212_v62 }
 0x2fe   : > { %1977 = vrot.lane.b32.xlu1 %v2233_v37, %s3325_s29  ;;  %3217 = vmatpush3.bf16.msk.msra.mxu1 %vm3213_vm3, %v3212_v62 }
 0x2ff   : > { %1881 = vrot.lane.b32.xlu0 %v2136_v49, %s3323_s27  ;;  %v2530_v49 = vld [vmem:[%s3460_s10 + $0x30] sm:$0xff] }
 0x302   : > { %2362 = vrot.lane.b32.xlu1 %v2330_v50, %s3332_s6 }
 0x303   : > { %2267 = vrot.lane.b32.xlu0 %v2234_v38, %s3331_s28 }
 0x306   : > { %2074 = vrot.lane.b32.xlu1 %v2330_v50, %s3327_s16 }
 0x307   : > { %1979 = vrot.lane.b32.xlu0 %v2234_v38, %s3325_s29 }
 0x30a   : > { %2459 = vrot.lane.b32.xlu1 %v2427_v55, %s3333_s30 }
 0x30b   : > { %2364 = vrot.lane.b32.xlu0 %v2331_v56, %s3332_s6 }
 0x30e   : > { %2076 = vrot.lane.b32.xlu1 %v2331_v56, %s3327_s16 }
 0x30f   : > { %1786 = vrot.lane.b32.xlu0 %v2330_v50, %s3320_s19 }
 0x312   : > { %2461 = vrot.lane.b32.xlu1 %v2428_v3, %s3333_s30 }
 0x313   : > { %2171 = vrot.lane.b32.xlu0 %v2427_v55, %s3330_s18 }
 0x316   : > { %1788 = vrot.lane.b32.xlu1 %v2331_v56, %s3320_s19 }
 0x317   : > { %2556 = vrot.lane.b32.xlu0 %v2524_v9, %s3335_s7 }
 0x31a   : > { %2173 = vrot.lane.b32.xlu1 %v2428_v3, %s3330_s18 }
 0x31b   : > { %1883 = vrot.lane.b32.xlu0 %v2427_v55, %s3323_s27 }
 0x31e   : > { %2558 = vrot.lane.b32.xlu1 %v2525_v10, %s3335_s7 }
 0x31f   : > { %2269 = vrot.lane.b32.xlu0 %v4037_v39, %s3331_s28 }
 0x322   : > { %1981 = vrot.lane.b32.xlu1 %v4037_v39, %s3325_s29 }
 0x323   : > { %1885 = vrot.lane.b32.xlu0 %v2428_v3, %s3323_s27  ;;  %v2435_v3 = vld [vmem:[#allocation3 + $0x92] sm:$0xff] }
 0x326   : > { %2366 = vrot.lane.b32.xlu1 %v2332_v11, %s3332_s6 }
 0x327   : > { %2271 = vrot.lane.b32.xlu0 %v4039_v40, %s3331_s28 }
 0x32a   : > { %2078 = vrot.lane.b32.xlu1 %v2332_v11, %s3327_s16 }
 0x32b   : > { %1983 = vrot.lane.b32.xlu0 %v4039_v40, %s3325_s29 }
 0x32e   : > { %2463 = vrot.lane.b32.xlu1 %v2429_v13, %s3333_s30 }
 0x32f   : > { %2368 = vrot.lane.b32.xlu0 %v2333_v14, %s3332_s6 }
 0x332   : > { %2080 = vrot.lane.b32.xlu1 %v2333_v14, %s3327_s16 }
 0x333   : > { %1790 = vrot.lane.b32.xlu0 %v2332_v11, %s3320_s19 }
 0x336   : > { %2465 = vrot.lane.b32.xlu1 %v2430_v16, %s3333_s30 }
 0x337   : > { %2175 = vrot.lane.b32.xlu0 %v2429_v13, %s3330_s18 }
 0x33a   : > { %1792 = vrot.lane.b32.xlu1 %v2333_v14, %s3320_s19  ;;  %v2532_v14 = vld [vmem:[%s3460_s10 + $0x40] sm:$0xff] }
 0x33b   : > { %2560 = vrot.lane.b32.xlu0 %v2526_v19, %s3335_s7 }
 0x33e   : > { %2177 = vrot.lane.b32.xlu1 %v2430_v16, %s3330_s18 }
 0x33f   : > { %1887 = vrot.lane.b32.xlu0 %v2429_v13, %s3323_s27 }
 0x342   : > { %2562 = vrot.lane.b32.xlu1 %v2527_v20, %s3335_s7 }
 0x343   : > { %2273 = vrot.lane.b32.xlu0 %v4045_v41, %s3331_s28 }
 0x346   : > { %1985 = vrot.lane.b32.xlu1 %v4045_v41, %s3325_s29  ;;  %v2433_v41 = vld [vmem:[#allocation3 + $0x7a] sm:$0xff] }
 0x347   : > { %1889 = vrot.lane.b32.xlu0 %v2430_v16, %s3323_s27 }
 0x34a   : > { %2370 = vrot.lane.b32.xlu1 %v2334_v21, %s3332_s6 }
 0x34b   : > { %2275 = vrot.lane.b32.xlu0 %v4049_v42, %s3331_s28 }
 0x34e   : > { %2082 = vrot.lane.b32.xlu1 %v2334_v21, %s3327_s16 }
 0x34f   : > { %1987 = vrot.lane.b32.xlu0 %v4049_v42, %s3325_s29  ;;  %v2337_v42 = vld [vmem:[#allocation3 + $0x81] sm:$0xff] }
 0x352   : > { %2467 = vrot.lane.b32.xlu1 %v2431_v22, %s3333_s30 }
 0x353   : > { %2372 = vrot.lane.b32.xlu0 %v2335_v23, %s3332_s6 }
 0x354   : > { %v1876_v24 = vpop.permute.xlu1 %1875 }
 0x355   : > { %v1779_v25 = vpop.permute.xlu0 %1778 }
 0x356   : > { %1827 = vst.msk [vmem:[#allocation4] sm:$0xff] %vm1826_vm4, %v1779_v25  ;;  %2084 = vrot.lane.b32.xlu1 %v2335_v23, %s3327_s16 }
 0x357   : > { %1794 = vrot.lane.b32.xlu0 %v2334_v21, %s3320_s19  ;;  %1924 = vst.msk [vmem:[#allocation4] sm:$0xff] %vm1923_vm5, %v1876_v24 }
 0x358   : > { %v1878_v26 = vpop.permute.xlu1 %1877 }
 0x359   : > { %v1781_v27 = vpop.permute.xlu0 %1780 }
 0x35a   : > { %1828 = vst.msk [vmem:[#allocation4 + $0x8] sm:$0xff] %vm1826_vm4, %v1781_v27  ;;  %2469 = vrot.lane.b32.xlu1 %v2432_v2, %s3333_s30 }
 0x35b   : > { %2179 = vrot.lane.b32.xlu0 %v2431_v22, %s3330_s18  ;;  %1925 = vst.msk [vmem:[#allocation4 + $0x8] sm:$0xff] %vm1923_vm5, %v1878_v26  ;;  %v2340_v26 = vld [vmem:[#allocation3 + $0xa9] sm:$0xff] }
 0x35c   : > { %v1976_v29 = vpop.permute.xlu1 %1975 }
 0x35d   : > { %v1974_v30 = vpop.permute.xlu0 %1973  ;;  %2023 = vst.msk [vmem:[#allocation4 + $0x8] sm:$0xff] %vm2021_vm6, %v1976_v29 }
 0x35e   : > { %2022 = vst.msk [vmem:[#allocation4] sm:$0xff] %vm2021_vm6, %v1974_v30  ;;  %1796 = vrot.lane.b32.xlu1 %v2335_v23, %s3320_s19 }
 0x35f   : > { %2564 = vrot.lane.b32.xlu0 %v2528_v28, %s3335_s7 }
 0x360   : > { %v1783_v31 = vpop.permute.xlu1 %1782 }
 0x361   : > { %v2071_v0 = vpop.permute.xlu0 %2070  ;;  %1829 = vst.msk [vmem:[#allocation4 + $0x10] sm:$0xff] %vm1826_vm4, %v1783_v31 }
 0x362   : > { %2119 = vst.msk [vmem:[#allocation4] sm:$0xff] %vm2118_vm7, %v2071_v0  ;;  %2181 = vrot.lane.b32.xlu1 %v2432_v2, %s3330_s18  ;;  %v2341_v0 = vld [vmem:[#allocation3 + $0xb1] sm:$0xff] }
 0x363   : > { %1891 = vrot.lane.b32.xlu0 %v2431_v22, %s3323_s27  ;;  %v2533_v22 = vld [vmem:[%s3460_s10 + $0x48] sm:$0xff] }
 0x364   : > { %v2168_v32 = vpop.permute.xlu1 %2167 }
 0x365   : > { %v2073_v33 = vpop.permute.xlu0 %2072  ;;  %2216 = vst.msk [vmem:[#allocation4] sm:$0xff] %vm2215_vm8, %v2168_v32 }
 0x366   : > { %2120 = vst.msk [vmem:[#allocation4 + $0x8] sm:$0xff] %vm2118_vm7, %v2073_v33  ;;  %2566 = vrot.lane.b32.xlu1 %v2529_v4, %s3335_s7 }
 0x367   : > { %2277 = vrot.lane.b32.xlu0 %v4057_v12, %s3331_s28 }
 0x368   : > { %v1880_v34 = vpop.permute.xlu1 %1879 }
 0x369   : > { %v1785_v35 = vpop.permute.xlu0 %1784  ;;  %1926 = vst.msk [vmem:[#allocation4 + $0x10] sm:$0xff] %vm1923_vm5, %v1880_v34 }
 0x36a   : > { %1830 = vst.msk [vmem:[#allocation4 + $0x18] sm:$0xff] %vm1826_vm4, %v1785_v35  ;;  %1989 = vrot.lane.b32.xlu1 %v4057_v12, %s3325_s29 }
 0x36b   : > { %1893 = vrot.lane.b32.xlu0 %v2432_v2, %s3323_s27 }
 0x36c   : > { %v2266_v37 = vpop.permute.xlu1 %2265 }
 0x36d   : > { %v2170_v38 = vpop.permute.xlu0 %2169  ;;  %2314 = vst.msk [vmem:[#allocation4] sm:$0xff] %vm2313_vm9, %v2266_v37 }
 0x36e   : > { %2217 = vst.msk [vmem:[#allocation4 + $0x8] sm:$0xff] %vm2215_vm8, %v2170_v38  ;;  %2374 = vrot.lane.b32.xlu1 %v2336_v36, %s3332_s6  ;;  %v2534_v38 = vld [vmem:[%s3460_s10 + $0x50] sm:$0xff] }
 0x36f   : > { %2279 = vrot.lane.b32.xlu0 %v4059_v46, %s3331_s28 }
 0x370   : > { %v1978_v39 = vpop.permute.xlu1 %1977 }
 0x371   : > { %v1882_v40 = vpop.permute.xlu0 %1881  ;;  %2024 = vst.msk [vmem:[#allocation4 + $0x10] sm:$0xff] %vm2021_vm6, %v1978_v39 }
 0x372   : > { %1927 = vst.msk [vmem:[#allocation4 + $0x18] sm:$0xff] %vm1923_vm5, %v1882_v40  ;;  %2086 = vrot.lane.b32.xlu1 %v2336_v36, %s3327_s16 }
 0x373   : > { %1991 = vrot.lane.b32.xlu0 %v4059_v46, %s3325_s29  ;;  %v2434_v46 = vld [vmem:[#allocation3 + $0x82] sm:$0xff] }
 0x374   : > { %v2363_v43 = vpop.permute.xlu1 %2362 }
 0x375   : > { %v2268_v44 = vpop.permute.xlu0 %2267  ;;  %2411 = vst.msk [vmem:[#allocation4] sm:$0xff] %vm2410_vm10, %v2363_v43  ;;  %v2535_v43 = vld [vmem:[%s3460_s10 + $0x58] sm:$0xff] }
 0x376   : > { %2315 = vst.msk [vmem:[#allocation4 + $0x8] sm:$0xff] %vm2313_vm9, %v2268_v44  ;;  %2471 = vrot.lane.b32.xlu1 %v2433_v41, %s3333_s30  ;;  %v2245_v44 = vld [vmem:[#allocation3 + $0xc0] sm:$0xff] }
 0x377   : > { %2376 = vrot.lane.b32.xlu0 %v2337_v42, %s3332_s6 }
 0x378   : > { %v2075_v45 = vpop.permute.xlu1 %2074 }
 0x379   : > { %v1980_v12 = vpop.permute.xlu0 %1979  ;;  %2121 = vst.msk [vmem:[#allocation4 + $0x10] sm:$0xff] %vm2118_vm7, %v2075_v45 }
 0x37a   : > { %2025 = vst.msk [vmem:[#allocation4 + $0x18] sm:$0xff] %vm2021_vm6, %v1980_v12  ;;  %2088 = vrot.lane.b32.xlu1 %v2337_v42, %s3327_s16 }
 0x37b   : > { %1798 = vrot.lane.b32.xlu0 %v2336_v36, %s3320_s19 }
 0x37c   : > { %v2460_v47 = vpop.permute.xlu1 %2459 }
 0x37d   : > { %v2365_v48 = vpop.permute.xlu0 %2364  ;;  %2508 = vst.msk [vmem:[#allocation4] sm:$0xff] %vm2507_vm11, %v2460_v47 }
 0x37e   : > { %2412 = vst.msk [vmem:[#allocation4 + $0x8] sm:$0xff] %vm2410_vm10, %v2365_v48  ;;  %2473 = vrot.lane.b32.xlu1 %v2434_v46, %s3333_s30  ;;  %v2246_v48 = vld [vmem:[#allocation3 + $0xc8] sm:$0xff] }
 0x37f   : > { %2183 = vrot.lane.b32.xlu0 %v2433_v41, %s3330_s18 }
 0x380   : > { %v2077_v50 = vpop.permute.xlu1 %2076 }
 0x381   : > { %v1787_v51 = vpop.permute.xlu0 %1786  ;;  %2122 = vst.msk [vmem:[#allocation4 + $0x18] sm:$0xff] %vm2118_vm7, %v2077_v50 }
 0x382   : > { %1831 = vst.msk [vmem:[#allocation4 + $0x20] sm:$0xff] %vm1826_vm4, %v1787_v51  ;;  %1800 = vrot.lane.b32.xlu1 %v2337_v42, %s3320_s19 }
 0x383   : > { %2568 = vrot.lane.b32.xlu0 %v2530_v49, %s3335_s7  ;;  %v2342_v49 = vld [vmem:[#allocation3 + $0xc1] sm:$0xff] }
 0x384   : > { %v2462_v18 = vpop.permute.xlu1 %2461 }
 0x385   : > { %v2172_v52 = vpop.permute.xlu0 %2171  ;;  %2509 = vst.msk [vmem:[#allocation4 + $0x8] sm:$0xff] %vm2507_vm11, %v2462_v18 }
 0x386   : > { %2218 = vst.msk [vmem:[#allocation4 + $0x10] sm:$0xff] %vm2215_vm8, %v2172_v52  ;;  %2185 = vrot.lane.b32.xlu1 %v2434_v46, %s3330_s18 }
 0x387   : > { %1895 = vrot.lane.b32.xlu0 %v2433_v41, %s3323_s27 }
 0x388   : > { %v1789_v54 = vpop.permute.xlu1 %1788 }
 0x389   : > { %v2557_v55 = vpop.permute.xlu0 %2556  ;;  %1832 = vst.msk [vmem:[#allocation4 + $0x28] sm:$0xff] %vm1826_vm4, %v1789_v54  ;;  %v2343_v54 = vld [vmem:[#allocation3 + $0xc9] sm:$0xff] }
 0x38a   : > { %2605 = vst.msk [vmem:[#allocation4] sm:$0xff] %vm2604_vm12, %v2557_v55  ;;  %2570 = vrot.lane.b32.xlu1 %v2531_v53, %s3335_s7  ;;  %v2439_v55 = vld [vmem:[#allocation3 + $0xc2] sm:$0xff] }
 0x38b   : > { %2281 = vrot.lane.b32.xlu0 %v4091_v58, %s3331_s28 }
 0x38c   : > { %v2174_v56 = vpop.permute.xlu1 %2173 }
 0x38d   : > { %v1884_v57 = vpop.permute.xlu0 %1883  ;;  %2219 = vst.msk [vmem:[#allocation4 + $0x18] sm:$0xff] %vm2215_vm8, %v2174_v56 }
 0x38e   : > { %1928 = vst.msk [vmem:[#allocation4 + $0x20] sm:$0xff] %vm1923_vm5, %v1884_v57  ;;  %1993 = vrot.lane.b32.xlu1 %v4091_v58, %s3325_s29 }
 0x38f   : > { %1897 = vrot.lane.b32.xlu0 %v2434_v46, %s3323_s27 }
 0x390   : > { %v2559_v61 = vpop.permute.xlu1 %2558 }
 0x391   : > { %v2270_v63 = vpop.permute.xlu0 %2269  ;;  %v2621_v1 = vld [vmem:[#allocation4] sm:$0xff]  ;;  %2606 = vst.msk [vmem:[#allocation4 + $0x8] sm:$0xff] %vm2604_vm12, %v2559_v61 }
 0x392   : > { %2316 = vst.msk [vmem:[#allocation4 + $0x10] sm:$0xff] %vm2313_vm9, %v2270_v63  ;;  %3164 = vmatprep.mubr.msk.f32.mxu1 %vm2654_vm13, %v2621_v1  ;;  %2378 = vrot.lane.b32.xlu1 %v2338_v59, %s3332_s6  ;;  %v2440_v1 = vld [vmem:[#allocation3 + $0xca] sm:$0xff] }
 0x393   : > { %2283 = vrot.lane.b32.xlu0 %v4111_v6, %s3331_s28 }
 0x394   : > { %v1982_v60 = vpop.permute.xlu1 %1981 }
 0x395   : > { %v1886_v58 = vpop.permute.xlu0 %1885  ;;  %2026 = vst.msk [vmem:[#allocation4 + $0x20] sm:$0xff] %vm2021_vm6, %v1982_v60  ;;  %v2536_v60 = vld [vmem:[%s3460_s10 + $0x60] sm:$0xff] }
 0x396   : > { %1929 = vst.msk [vmem:[#allocation4 + $0x28] sm:$0xff] %vm1923_vm5, %v1886_v58  ;;  %2090 = vrot.lane.b32.xlu1 %v2338_v59, %s3327_s16 }
 0x397   : > { %1995 = vrot.lane.b32.xlu0 %v4111_v6, %s3325_s29  ;;  %v2436_v6 = vld [vmem:[#allocation3 + $0x9a] sm:$0xff] }
 0x398   : > { %v2367_v7 = vpop.permute.xlu1 %2366  ;;  %v2622_v9 = vld [vmem:[#allocation4 + $0x8] sm:$0xff] }
 0x399   : > { %v2272_v8 = vpop.permute.xlu0 %2271  ;;  %2413 = vst.msk [vmem:[#allocation4 + $0x10] sm:$0xff] %vm2410_vm10, %v2367_v7  ;;  %3165 = vmatmul.mubr.msk.f32.vlgmr.msra.gmra.mrb[0].mxu1 %vm2654_vm13, %v2622_v9  ;;  %v2537_v9 = vld [vmem:[%s3460_s10 + $0x68] sm:$0xff] }
 0x39a   : > { %2317 = vst.msk [vmem:[#allocation4 + $0x18] sm:$0xff] %vm2313_vm9, %v2272_v8  ;;  %2475 = vrot.lane.b32.xlu1 %v2435_v3, %s3333_s30 }
 0x39b   : > { %2380 = vrot.lane.b32.xlu0 %v2339_v5, %s3332_s6 }
 0x39c   : > { %v2079_v62 = vpop.permute.xlu1 %2078 }
 0x39d   : > { %v1984_v10 = vpop.permute.xlu0 %1983  ;;  %2123 = vst.msk [vmem:[#allocation4 + $0x20] sm:$0xff] %vm2118_vm7, %v2079_v62  ;;  %v2248_v62 = vld [vmem:[#allocation3 + $0xe0] sm:$0xff] }
 0x39e   : > { %2027 = vst.msk [vmem:[#allocation4 + $0x28] sm:$0xff] %vm2021_vm6, %v1984_v10  ;;  %2092 = vrot.lane.b32.xlu1 %v2339_v5, %s3327_s16 }
 0x39f   : > { %1802 = vrot.lane.b32.xlu0 %v2338_v59, %s3320_s19 }
 0x3a0   : > { %v2464_v11 = vpop.permute.xlu1 %2463 }
 0x3a1   : > { %v2369_v13 = vpop.permute.xlu0 %2368  ;;  %2510 = vst.msk [vmem:[#allocation4 + $0x10] sm:$0xff] %vm2507_vm11, %v2464_v11  ;;  %v2344_v11 = vld [vmem:[#allocation3 + $0xd9] sm:$0xff] }
 0x3a2   : > { %2414 = vst.msk [vmem:[#allocation4 + $0x18] sm:$0xff] %vm2410_vm10, %v2369_v13  ;;  %2477 = vrot.lane.b32.xlu1 %v2436_v6, %s3333_s30  ;;  %v2345_v13 = vld [vmem:[#allocation3 + $0xe1] sm:$0xff] }
 0x3a3   : > { %2187 = vrot.lane.b32.xlu0 %v2435_v3, %s3330_s18 }
 0x3a4   : > { %v2081_v16 = vpop.permute.xlu1 %2080 }
 0x3a5   : > { %v1791_v19 = vpop.permute.xlu0 %1790  ;;  %2124 = vst.msk [vmem:[#allocation4 + $0x28] sm:$0xff] %vm2118_vm7, %v2081_v16 }
 0x3a6   : > { %1833 = vst.msk [vmem:[#allocation4 + $0x30] sm:$0xff] %vm1826_vm4, %v1791_v19  ;;  %1804 = vrot.lane.b32.xlu1 %v2339_v5, %s3320_s19  ;;  %v2247_v5 = vld [vmem:[#allocation3 + $0xd8] sm:$0xff] }
 0x3a7   : > { %2572 = vrot.lane.b32.xlu0 %v2532_v14, %s3335_s7  ;;  %v2441_v19 = vld [vmem:[#allocation3 + $0xda] sm:$0xff] }
 0x3a8   : > { %v2466_v20 = vpop.permute.xlu1 %2465 }
 0x3a9   : > { %v2176_v21 = vpop.permute.xlu0 %2175  ;;  %2511 = vst.msk [vmem:[#allocation4 + $0x18] sm:$0xff] %vm2507_vm11, %v2466_v20  ;;  %v2442_v20 = vld [vmem:[#allocation3 + $0xe2] sm:$0xff] }
 0x3aa   : > { %2220 = vst.msk [vmem:[#allocation4 + $0x20] sm:$0xff] %vm2215_vm8, %v2176_v21  ;;  %2189 = vrot.lane.b32.xlu1 %v2436_v6, %s3330_s18 }
 0x3ab   : > { %1899 = vrot.lane.b32.xlu0 %v2435_v3, %s3323_s27 }
 0x3ac   : > { %v1793_v23 = vpop.permute.xlu1 %1792 }
 0x3ad   : > { %v2561_v24 = vpop.permute.xlu0 %2560  ;;  %1834 = vst.msk [vmem:[#allocation4 + $0x38] sm:$0xff] %vm1826_vm4, %v1793_v23  ;;  %v2538_v23 = vld [vmem:[%s3460_s10 + $0x70] sm:$0xff] }
 0x3ae   : > { %2607 = vst.msk [vmem:[#allocation4 + $0x10] sm:$0xff] %vm2604_vm12, %v2561_v24  ;;  %2574 = vrot.lane.b32.xlu1 %v2533_v22, %s3335_s7  ;;  %v2539_v24 = vld [vmem:[%s3460_s10 + $0x78] sm:$0xff] }
 0x3af   : > { %2285 = vrot.lane.b32.xlu0 %v4142_v15, %s3331_s28 }
 0x3b0   : > { %v2178_v25 = vpop.permute.xlu1 %2177 }
 0x3b1   : > { %v1888_v2 = vpop.permute.xlu0 %1887  ;;  %2221 = vst.msk [vmem:[#allocation4 + $0x28] sm:$0xff] %vm2215_vm8, %v2178_v25 }
 0x3b2   : > { %1930 = vst.msk [vmem:[#allocation4 + $0x30] sm:$0xff] %vm1923_vm5, %v1888_v2  ;;  %1997 = vrot.lane.b32.xlu1 %v4142_v15, %s3325_s29  ;;  %v2437_v15 = vld [vmem:[#allocation3 + $0xaa] sm:$0xff] }
 0x3b3   : > { %1901 = vrot.lane.b32.xlu0 %v2436_v6, %s3323_s27 }
 0x3b4   : > { %v2563_v27 = vpop.permute.xlu1 %2562 }
 0x3b5   : > { %v2274_v28 = vpop.permute.xlu0 %2273  ;;  %v2623_v29 = vld [vmem:[#allocation4 + $0x10] sm:$0xff]  ;;  %2608 = vst.msk [vmem:[#allocation4 + $0x18] sm:$0xff] %vm2604_vm12, %v2563_v27 }
 0x3b6   : > { %2318 = vst.msk [vmem:[#allocation4 + $0x20] sm:$0xff] %vm2313_vm9, %v2274_v28  ;;  %3167 = vmatprep.mubr.msk.f32.mxu1 %vm2654_vm13, %v2623_v29  ;;  %2382 = vrot.lane.b32.xlu1 %v2340_v26, %s3332_s6 }
 0x3b7   : > { %2287 = vrot.lane.b32.xlu0 %v4150_v17, %s3331_s28 }
 0x3b8   : > { %v1986_v30 = vpop.permute.xlu1 %1985 }
 0x3b9   : > { %v1890_v31 = vpop.permute.xlu0 %1889  ;;  %2028 = vst.msk [vmem:[#allocation4 + $0x30] sm:$0xff] %vm2021_vm6, %v1986_v30 }
 0x3ba   : > { %1931 = vst.msk [vmem:[#allocation4 + $0x38] sm:$0xff] %vm1923_vm5, %v1890_v31  ;;  %2094 = vrot.lane.b32.xlu1 %v2340_v26, %s3327_s16 }
 0x3bb   : > { %1999 = vrot.lane.b32.xlu0 %v4150_v17, %s3325_s29  ;;  %v2438_v17 = vld [vmem:[#allocation3 + $0xb2] sm:$0xff] }
 0x3bc   : > { %v2371_v4 = vpop.permute.xlu1 %2370  ;;  %v2624_v33 = vld [vmem:[#allocation4 + $0x18] sm:$0xff] }
 0x3bd   : > { %v2276_v32 = vpop.permute.xlu0 %2275  ;;  %2415 = vst.msk [vmem:[#allocation4 + $0x20] sm:$0xff] %vm2410_vm10, %v2371_v4  ;;  %3168 = vmatmul.mubr.msk.f32.gmra.mrb[2].mxu1 %vm2654_vm13, %v2624_v33 }
 0x3be   : > { %2319 = vst.msk [vmem:[#allocation4 + $0x28] sm:$0xff] %vm2313_vm9, %v2276_v32  ;;  %2479 = vrot.lane.b32.xlu1 %v2437_v15, %s3333_s30 }
 0x3bf   : > { %2384 = vrot.lane.b32.xlu0 %v2341_v0, %s3332_s6 }
 0x3c0   : > { %v2083_v34 = vpop.permute.xlu1 %2082 }
 0x3c1   : > { %v1988_v35 = vpop.permute.xlu0 %1987  ;;  %2125 = vst.msk [vmem:[#allocation4 + $0x30] sm:$0xff] %vm2118_vm7, %v2083_v34 }
 0x3c2   : > { %2029 = vst.msk [vmem:[#allocation4 + $0x38] sm:$0xff] %vm2021_vm6, %v1988_v35  ;;  %2096 = vrot.lane.b32.xlu1 %v2341_v0, %s3327_s16 }
 0x3c3   : > { %1806 = vrot.lane.b32.xlu0 %v2340_v26, %s3320_s19 }
 0x3c4   : > { %v2468_v36 = vpop.permute.xlu1 %2467 }
 0x3c5   : > { %v2373_v37 = vpop.permute.xlu0 %2372  ;;  %2512 = vst.msk [vmem:[#allocation4 + $0x20] sm:$0xff] %vm2507_vm11, %v2468_v36 }
 0x3c6   : > { %2416 = vst.msk [vmem:[#allocation4 + $0x28] sm:$0xff] %vm2410_vm10, %v2373_v37  ;;  %2481 = vrot.lane.b32.xlu1 %v2438_v17, %s3333_s30 }
 0x3c7   : > { %2191 = vrot.lane.b32.xlu0 %v2437_v15, %s3330_s18 }
 0x3c8   : > { %v2085_v39 = vpop.permute.xlu1 %2084 }
 0x3c9   : > { %v1795_v40 = vpop.permute.xlu0 %1794  ;;  %2126 = vst.msk [vmem:[#allocation4 + $0x38] sm:$0xff] %vm2118_vm7, %v2085_v39 }
 0x3ca   : > { %1835 = vst.msk [vmem:[#allocation4 + $0x40] sm:$0xff] %vm1826_vm4, %v1795_v40  ;;  %1808 = vrot.lane.b32.xlu1 %v2341_v0, %s3320_s19 }
 0x3cb   : > { %2576 = vrot.lane.b32.xlu0 %v2534_v38, %s3335_s7 }
 0x3cc   : > { %v2470_v41 = vpop.permute.xlu1 %2469 }
 0x3cd   : > { %v2180_v42 = vpop.permute.xlu0 %2179  ;;  %2513 = vst.msk [vmem:[#allocation4 + $0x28] sm:$0xff] %vm2507_vm11, %v2470_v41 }
 0x3ce   : > { %2222 = vst.msk [vmem:[#allocation4 + $0x30] sm:$0xff] %vm2215_vm8, %v2180_v42  ;;  %2193 = vrot.lane.b32.xlu1 %v2438_v17, %s3330_s18 }
 0x3cf   : > { %1903 = vrot.lane.b32.xlu0 %v2437_v15, %s3323_s27 }
 0x3d0   : > { %v1797_v45 = vpop.permute.xlu1 %1796 }
 0x3d1   : > { %v2565_v12 = vpop.permute.xlu0 %2564  ;;  %1836 = vst.msk [vmem:[#allocation4 + $0x48] sm:$0xff] %vm1826_vm4, %v1797_v45 }
 0x3d2   : > { %2609 = vst.msk [vmem:[#allocation4 + $0x20] sm:$0xff] %vm2604_vm12, %v2565_v12  ;;  %2578 = vrot.lane.b32.xlu1 %v2535_v43, %s3335_s7 }
 0x3d3   : > { %2289 = vrot.lane.b32.xlu0 %v2245_v44, %s3331_s28 }
 0x3d4   : > { %v2182_v46 = vpop.permute.xlu1 %2181 }
 0x3d5   : > { %v1892_v47 = vpop.permute.xlu0 %1891  ;;  %2223 = vst.msk [vmem:[#allocation4 + $0x38] sm:$0xff] %vm2215_vm8, %v2182_v46 }
 0x3d6   : > { %1932 = vst.msk [vmem:[#allocation4 + $0x40] sm:$0xff] %vm1923_vm5, %v1892_v47  ;;  %2001 = vrot.lane.b32.xlu1 %v2245_v44, %s3325_s29 }
 0x3d7   : > { %1905 = vrot.lane.b32.xlu0 %v2438_v17, %s3323_s27 }
 0x3d8   : > { %v2567_v50 = vpop.permute.xlu1 %2566 }
 0x3d9   : > { %v2278_v51 = vpop.permute.xlu0 %2277  ;;  %v2625_v18 = vld [vmem:[#allocation4 + $0x20] sm:$0xff]  ;;  %2610 = vst.msk [vmem:[#allocation4 + $0x28] sm:$0xff] %vm2604_vm12, %v2567_v50 }
 0x3da   : > { %2320 = vst.msk [vmem:[#allocation4 + $0x30] sm:$0xff] %vm2313_vm9, %v2278_v51  ;;  %3170 = vmatprep.mubr.msk.f32.mxu1 %vm2654_vm13, %v2625_v18  ;;  %2386 = vrot.lane.b32.xlu1 %v2342_v49, %s3332_s6 }
 0x3db   : > { %2291 = vrot.lane.b32.xlu0 %v2246_v48, %s3331_s28 }
 0x3dc   : > { %v1990_v52 = vpop.permute.xlu1 %1989 }
 0x3dd   : > { %v1894_v53 = vpop.permute.xlu0 %1893  ;;  %2030 = vst.msk [vmem:[#allocation4 + $0x40] sm:$0xff] %vm2021_vm6, %v1990_v52 }
 0x3de   : > { %1933 = vst.msk [vmem:[#allocation4 + $0x48] sm:$0xff] %vm1923_vm5, %v1894_v53  ;;  %2098 = vrot.lane.b32.xlu1 %v2342_v49, %s3327_s16 }
 0x3df   : > { %2003 = vrot.lane.b32.xlu0 %v2246_v48, %s3325_s29 }
 0x3e0   : > { %v2375_v56 = vpop.permute.xlu1 %2374  ;;  %v2626_v59 = vld [vmem:[#allocation4 + $0x28] sm:$0xff] }
 0x3e1   : > { %v2280_v57 = vpop.permute.xlu0 %2279  ;;  %2417 = vst.msk [vmem:[#allocation4 + $0x30] sm:$0xff] %vm2410_vm10, %v2375_v56  ;;  %3171 = vmatmul.mubr.msk.f32.gmra.mrb[4].mxu1 %vm2654_vm13, %v2626_v59 }
 0x3e2   : > { %2321 = vst.msk [vmem:[#allocation4 + $0x38] sm:$0xff] %vm2313_vm9, %v2280_v57  ;;  %2483 = vrot.lane.b32.xlu1 %v2439_v55, %s3333_s30 }
 0x3e3   : > { %2388 = vrot.lane.b32.xlu0 %v2343_v54, %s3332_s6 }
 0x3e4   : > { %v2087_v61 = vpop.permute.xlu1 %2086 }
 0x3e5   : > { %v1992_v63 = vpop.permute.xlu0 %1991  ;;  %2127 = vst.msk [vmem:[#allocation4 + $0x40] sm:$0xff] %vm2118_vm7, %v2087_v61 }
 0x3e6   : > { %2031 = vst.msk [vmem:[#allocation4 + $0x48] sm:$0xff] %vm2021_vm6, %v1992_v63  ;;  %2195 = vrot.lane.b32.xlu1 %v2439_v55, %s3330_s18 }
 0x3e7   : > { %2100 = vrot.lane.b32.xlu0 %v2343_v54, %s3327_s16 }
 0x3e8   : > { %v2472_v58 = vpop.permute.xlu1 %2471 }
 0x3e9   : > { %v2377_v3 = vpop.permute.xlu0 %2376  ;;  %2514 = vst.msk [vmem:[#allocation4 + $0x30] sm:$0xff] %vm2507_vm11, %v2472_v58 }
 0x3ea   : > { %2418 = vst.msk [vmem:[#allocation4 + $0x38] sm:$0xff] %vm2410_vm10, %v2377_v3  ;;  %2580 = vrot.lane.b32.xlu1 %v2536_v60, %s3335_s7 }
 0x3eb   : > { %2485 = vrot.lane.b32.xlu0 %v2440_v1, %s3333_s30 }
 0x3ec   : > { %v2089_v7 = vpop.permute.xlu1 %2088 }
 0x3ed   : > { %v1799_v8 = vpop.permute.xlu0 %1798  ;;  %2128 = vst.msk [vmem:[#allocation4 + $0x48] sm:$0xff] %vm2118_vm7, %v2089_v7 }
 0x3ee   : > { %1837 = vst.msk [vmem:[#allocation4 + $0x50] sm:$0xff] %vm1826_vm4, %v1799_v8  ;;  %2293 = vrot.lane.b32.xlu1 %v2247_v5, %s3331_s28 }
 0x3ef   : > { %2197 = vrot.lane.b32.xlu0 %v2440_v1, %s3330_s18 }
 0x3f0   : > { %v2474_v10 = vpop.permute.xlu1 %2473 }
 0x3f1   : > { %v2184_v6 = vpop.permute.xlu0 %2183  ;;  %2515 = vst.msk [vmem:[#allocation4 + $0x38] sm:$0xff] %vm2507_vm11, %v2474_v10 }
 0x3f2   : > { %2224 = vst.msk [vmem:[#allocation4 + $0x40] sm:$0xff] %vm2215_vm8, %v2184_v6  ;;  %2295 = vrot.lane.b32.xlu1 %v2248_v62, %s3331_s28 }
 0x3f3   : > { %2582 = vrot.lane.b32.xlu0 %v2537_v9, %s3335_s7 }
 0x3f4   : > { %v1801_v14 = vpop.permute.xlu1 %1800 }
 0x3f5   : > { %v2569_v16 = vpop.permute.xlu0 %2568  ;;  %1838 = vst.msk [vmem:[#allocation4 + $0x58] sm:$0xff] %vm1826_vm4, %v1801_v14 }
 0x3f6   : > { %2611 = vst.msk [vmem:[#allocation4 + $0x30] sm:$0xff] %vm2604_vm12, %v2569_v16  ;;  %2392 = vrot.lane.b32.xlu1 %v2345_v13, %s3332_s6 }
 0x3f7   : > { %2390 = vrot.lane.b32.xlu0 %v2344_v11, %s3332_s6 }
 0x3f8   : > { %v2186_v21 = vpop.permute.xlu1 %2185 }
 0x3f9   : > { %v1896_v22 = vpop.permute.xlu0 %1895  ;;  %2225 = vst.msk [vmem:[#allocation4 + $0x48] sm:$0xff] %vm2215_vm8, %v2186_v21 }
 0x3fa   : > { %1934 = vst.msk [vmem:[#allocation4 + $0x50] sm:$0xff] %vm1923_vm5, %v1896_v22  ;;  %2489 = vrot.lane.b32.xlu1 %v2442_v20, %s3333_s30 }
 0x3fb   : > { %2487 = vrot.lane.b32.xlu0 %v2441_v19, %s3333_s30 }
 0x3fc   : > { %v2571_v25 = vpop.permute.xlu1 %2570 }
 0x3fd   : > { %v2282_v2 = vpop.permute.xlu0 %2281  ;;  %v2627_v26 = vld [vmem:[#allocation4 + $0x30] sm:$0xff]  ;;  %2612 = vst.msk [vmem:[#allocation4 + $0x38] sm:$0xff] %vm2604_vm12, %v2571_v25 }
 0x3fe   : > { %2322 = vst.msk [vmem:[#allocation4 + $0x40] sm:$0xff] %vm2313_vm9, %v2282_v2  ;;  %3173 = vmatprep.mubr.msk.f32.mxu1 %vm2654_vm13, %v2627_v26  ;;  %2586 = vrot.lane.b32.xlu1 %v2539_v24, %s3335_s7  ;;  %v4442_v24 = vld [vmem:[%s4518_s4] ss:$0 sm:$0xff] }
 0x3ff   : > { %2584 = vrot.lane.b32.xlu0 %v2538_v23, %s3335_s7 }
 0x400   : > { %v1994_v27 = vpop.permute.xlu1 %1993 }
 0x401   : > { %v1898_v28 = vpop.permute.xlu0 %1897  ;;  %2032 = vst.msk [vmem:[#allocation4 + $0x50] sm:$0xff] %vm2021_vm6, %v1994_v27 }
 0x402   : > { %1935 = vst.msk [vmem:[#allocation4 + $0x58] sm:$0xff] %vm1923_vm5, %v1898_v28 }
 0x404   : > { %v2379_v29 = vpop.permute.xlu1 %2378  ;;  %v2628_v31 = vld [vmem:[#allocation4 + $0x38] sm:$0xff] }
 0x405   : > { %v2284_v30 = vpop.permute.xlu0 %2283  ;;  %2419 = vst.msk [vmem:[#allocation4 + $0x40] sm:$0xff] %vm2410_vm10, %v2379_v29  ;;  %3174 = vmatmul.mubr.msk.f32.gmra.mrb[6].mxu1 %vm2654_vm13, %v2628_v31 }
 0x406   : > { %2323 = vst.msk [vmem:[#allocation4 + $0x48] sm:$0xff] %vm2313_vm9, %v2284_v30 }
 0x408   : > { %v2091_v15 = vpop.permute.xlu1 %2090 }
 0x409   : > { %v1996_v0 = vpop.permute.xlu0 %1995  ;;  %2129 = vst.msk [vmem:[#allocation4 + $0x50] sm:$0xff] %vm2118_vm7, %v2091_v15 }
 0x40a   : > { %2033 = vst.msk [vmem:[#allocation4 + $0x58] sm:$0xff] %vm2021_vm6, %v1996_v0 }
 0x40c   : > { %v2476_v4 = vpop.permute.xlu1 %2475 }
 0x40d   : > { %v2381_v32 = vpop.permute.xlu0 %2380  ;;  %2516 = vst.msk [vmem:[#allocation4 + $0x40] sm:$0xff] %vm2507_vm11, %v2476_v4 }
 0x40e   : > { %2420 = vst.msk [vmem:[#allocation4 + $0x48] sm:$0xff] %vm2410_vm10, %v2381_v32 }
 0x410   : > { %v2093_v33 = vpop.permute.xlu1 %2092 }
 0x411   : > { %v1803_v34 = vpop.permute.xlu0 %1802  ;;  %2130 = vst.msk [vmem:[#allocation4 + $0x58] sm:$0xff] %vm2118_vm7, %v2093_v33 }
 0x412   : > { %1839 = vst.msk [vmem:[#allocation4 + $0x60] sm:$0xff] %vm1826_vm4, %v1803_v34 }
 0x414   : > { %v2478_v35 = vpop.permute.xlu1 %2477 }
 0x415   : > { %v2188_v17 = vpop.permute.xlu0 %2187  ;;  %2517 = vst.msk [vmem:[#allocation4 + $0x48] sm:$0xff] %vm2507_vm11, %v2478_v35 }
 0x416   : > { %2226 = vst.msk [vmem:[#allocation4 + $0x50] sm:$0xff] %vm2215_vm8, %v2188_v17 }
 0x418   : > { %v1805_v36 = vpop.permute.xlu1 %1804 }
 0x419   : > { %v2573_v37 = vpop.permute.xlu0 %2572  ;;  %1840 = vst.msk [vmem:[#allocation4 + $0x68] sm:$0xff] %vm1826_vm4, %v1805_v36 }
 0x41a   : > { %2613 = vst.msk [vmem:[#allocation4 + $0x40] sm:$0xff] %vm2604_vm12, %v2573_v37 }
 0x41c   : > { %v2190_v38 = vpop.permute.xlu1 %2189 }
 0x41d   : > { %v1900_v39 = vpop.permute.xlu0 %1899  ;;  %2227 = vst.msk [vmem:[#allocation4 + $0x58] sm:$0xff] %vm2215_vm8, %v2190_v38 }
 0x41e   : > { %1936 = vst.msk [vmem:[#allocation4 + $0x60] sm:$0xff] %vm1923_vm5, %v1900_v39 }
 0x420   : > { %v2575_v40 = vpop.permute.xlu1 %2574 }
 0x421   : > { %v2286_v41 = vpop.permute.xlu0 %2285  ;;  %v2629_v42 = vld [vmem:[#allocation4 + $0x40] sm:$0xff]  ;;  %2614 = vst.msk [vmem:[#allocation4 + $0x48] sm:$0xff] %vm2604_vm12, %v2575_v40 }
 0x422   : > { %2324 = vst.msk [vmem:[#allocation4 + $0x50] sm:$0xff] %vm2313_vm9, %v2286_v41  ;;  %3176 = vmatprep.mubr.msk.f32.mxu1 %vm2654_vm13, %v2629_v42 }
 0x424   : > { %v1998_v43 = vpop.permute.xlu1 %1997 }
 0x425   : > { %v1902_v44 = vpop.permute.xlu0 %1901  ;;  %2034 = vst.msk [vmem:[#allocation4 + $0x60] sm:$0xff] %vm2021_vm6, %v1998_v43 }
 0x426   : > { %1937 = vst.msk [vmem:[#allocation4 + $0x68] sm:$0xff] %vm1923_vm5, %v1902_v44 }
 0x428   : > { %v2383_v45 = vpop.permute.xlu1 %2382  ;;  %v2630_v46 = vld [vmem:[#allocation4 + $0x48] sm:$0xff] }
 0x429   : > { %v2288_v12 = vpop.permute.xlu0 %2287  ;;  %2421 = vst.msk [vmem:[#allocation4 + $0x50] sm:$0xff] %vm2410_vm10, %v2383_v45  ;;  %3177 = vmatmul.mubr.msk.f32.gmra.mrb[8].mxu1 %vm2654_vm13, %v2630_v46 }
 0x42a   : > { %2325 = vst.msk [vmem:[#allocation4 + $0x58] sm:$0xff] %vm2313_vm9, %v2288_v12 }
 0x42c   : > { %v2095_v47 = vpop.permute.xlu1 %2094 }
 0x42d   : > { %v2000_v48 = vpop.permute.xlu0 %1999  ;;  %2131 = vst.msk [vmem:[#allocation4 + $0x60] sm:$0xff] %vm2118_vm7, %v2095_v47 }
 0x42e   : > { %2035 = vst.msk [vmem:[#allocation4 + $0x68] sm:$0xff] %vm2021_vm6, %v2000_v48 }
 0x430   : > { %v2480_v49 = vpop.permute.xlu1 %2479 }
 0x431   : > { %v2385_v50 = vpop.permute.xlu0 %2384  ;;  %2518 = vst.msk [vmem:[#allocation4 + $0x50] sm:$0xff] %vm2507_vm11, %v2480_v49 }
 0x432   : > { %2422 = vst.msk [vmem:[#allocation4 + $0x58] sm:$0xff] %vm2410_vm10, %v2385_v50 }
 0x434   : > { %v2097_v51 = vpop.permute.xlu1 %2096 }
 0x435   : > { %v1807_v18 = vpop.permute.xlu0 %1806  ;;  %2132 = vst.msk [vmem:[#allocation4 + $0x68] sm:$0xff] %vm2118_vm7, %v2097_v51 }
 0x436   : > { %1841 = vst.msk [vmem:[#allocation4 + $0x70] sm:$0xff] %vm1826_vm4, %v1807_v18 }
 0x438   : > { %v2482_v52 = vpop.permute.xlu1 %2481 }
 0x439   : > { %v2192_v53 = vpop.permute.xlu0 %2191  ;;  %2519 = vst.msk [vmem:[#allocation4 + $0x58] sm:$0xff] %vm2507_vm11, %v2482_v52 }
 0x43a   : > { %2228 = vst.msk [vmem:[#allocation4 + $0x60] sm:$0xff] %vm2215_vm8, %v2192_v53 }
 0x43c   : > { %v1809_v54 = vpop.permute.xlu1 %1808 }
 0x43d   : > { %v2577_v55 = vpop.permute.xlu0 %2576  ;;  %1842 = vst.msk [vmem:[#allocation4 + $0x78] sm:$0xff] %vm1826_vm4, %v1809_v54 }
 0x43e   : > { %2615 = vst.msk [vmem:[#allocation4 + $0x50] sm:$0xff] %vm2604_vm12, %v2577_v55 }
 0x440   : > { %v2194_v56 = vpop.permute.xlu1 %2193 }
 0x441   : > { %v1904_v57 = vpop.permute.xlu0 %1903  ;;  %2229 = vst.msk [vmem:[#allocation4 + $0x68] sm:$0xff] %vm2215_vm8, %v2194_v56 }
 0x442   : > { %1938 = vst.msk [vmem:[#allocation4 + $0x70] sm:$0xff] %vm1923_vm5, %v1904_v57 }
 0x444   : > { %v2579_v59 = vpop.permute.xlu1 %2578 }
 0x445   : > { %v2290_v61 = vpop.permute.xlu0 %2289  ;;  %v2631_v63 = vld [vmem:[#allocation4 + $0x50] sm:$0xff]  ;;  %2616 = vst.msk [vmem:[#allocation4 + $0x58] sm:$0xff] %vm2604_vm12, %v2579_v59 }
 0x446   : > { %2326 = vst.msk [vmem:[#allocation4 + $0x60] sm:$0xff] %vm2313_vm9, %v2290_v61  ;;  %3179 = vmatprep.mubr.msk.f32.mxu1 %vm2654_vm13, %v2631_v63 }
 0x448   : > { %v2002_v60 = vpop.permute.xlu1 %2001 }
 0x449   : > { %v1906_v1 = vpop.permute.xlu0 %1905  ;;  %2036 = vst.msk [vmem:[#allocation4 + $0x70] sm:$0xff] %vm2021_vm6, %v2002_v60 }
 0x44a   : > { %1939 = vst.msk [vmem:[#allocation4 + $0x78] sm:$0xff] %vm1923_vm5, %v1906_v1 }
 0x44c   : > { %v2387_v3 = vpop.permute.xlu1 %2386  ;;  %v2632_v5 = vld [vmem:[#allocation4 + $0x58] sm:$0xff] }
 0x44d   : > { %v2292_v58 = vpop.permute.xlu0 %2291  ;;  %2423 = vst.msk [vmem:[#allocation4 + $0x60] sm:$0xff] %vm2410_vm10, %v2387_v3  ;;  %3180 = vmatmul.mubr.msk.f32.gmra.mrb[10].mxu1 %vm2654_vm13, %v2632_v5 }
 0x44e   : > { %2327 = vst.msk [vmem:[#allocation4 + $0x68] sm:$0xff] %vm2313_vm9, %v2292_v58 }
 0x450   : > { %v2099_v8 = vpop.permute.xlu1 %2098 }
 0x451   : > { %v2004_v7 = vpop.permute.xlu0 %2003  ;;  %2133 = vst.msk [vmem:[#allocation4 + $0x70] sm:$0xff] %vm2118_vm7, %v2099_v8 }
 0x452   : > { %2037 = vst.msk [vmem:[#allocation4 + $0x78] sm:$0xff] %vm2021_vm6, %v2004_v7 }
 0x454   : > { %v2484_v62 = vpop.permute.xlu1 %2483 }
 0x455   : > { %v2389_v9 = vpop.permute.xlu0 %2388  ;;  %2520 = vst.msk [vmem:[#allocation4 + $0x60] sm:$0xff] %vm2507_vm11, %v2484_v62 }
 0x456   : > { %2424 = vst.msk [vmem:[#allocation4 + $0x68] sm:$0xff] %vm2410_vm10, %v2389_v9 }
 0x458   : > { %v2196_v6 = vpop.permute.xlu1 %2195 }
 0x459   : > { %v2101_v10 = vpop.permute.xlu0 %2100  ;;  %2230 = vst.msk [vmem:[#allocation4 + $0x70] sm:$0xff] %vm2215_vm8, %v2196_v6 }
 0x45a   : > { %2134 = vst.msk [vmem:[#allocation4 + $0x78] sm:$0xff] %vm2118_vm7, %v2101_v10 }
 0x45c   : > { %v2581_v13 = vpop.permute.xlu1 %2580 }
 0x45d   : > { %v2486_v11 = vpop.permute.xlu0 %2485  ;;  %2617 = vst.msk [vmem:[#allocation4 + $0x60] sm:$0xff] %vm2604_vm12, %v2581_v13 }
 0x45e   : > { %2521 = vst.msk [vmem:[#allocation4 + $0x68] sm:$0xff] %vm2507_vm11, %v2486_v11 }
 0x460   : > { %v2294_v16 = vpop.permute.xlu1 %2293 }
 0x461   : > { %v2198_v14 = vpop.permute.xlu0 %2197  ;;  %2328 = vst.msk [vmem:[#allocation4 + $0x70] sm:$0xff] %vm2313_vm9, %v2294_v16 }
 0x462   : > { %2231 = vst.msk [vmem:[#allocation4 + $0x78] sm:$0xff] %vm2215_vm8, %v2198_v14 }
 0x464   : > { %v2296_v20 = vpop.permute.xlu1 %2295  ;;  %v2633_v21 = vld [vmem:[#allocation4 + $0x60] sm:$0xff] }
 0x465   : > { %v2583_v19 = vpop.permute.xlu0 %2582  ;;  %2329 = vst.msk [vmem:[#allocation4 + $0x78] sm:$0xff] %vm2313_vm9, %v2296_v20  ;;  %3182 = vmatprep.mubr.msk.f32.mxu1 %vm2654_vm13, %v2633_v21 }
 0x466   : > { %2618 = vst.msk [vmem:[#allocation4 + $0x68] sm:$0xff] %vm2604_vm12, %v2583_v19 }
 0x468   : > { %v2393_v23 = vpop.permute.xlu1 %2392 }
 0x469   : > { %v2391_v22 = vpop.permute.xlu0 %2390  ;;  %2426 = vst.msk [vmem:[#allocation4 + $0x78] sm:$0xff] %vm2410_vm10, %v2393_v23 }
 0x46a   : > { %2425 = vst.msk [vmem:[#allocation4 + $0x70] sm:$0xff] %vm2410_vm10, %v2391_v22 }
 0x46c   : > { %v3166_v2 = vpop.f32.mrb[0].mxu1  ;;  %v2490_v28 = vpop.permute.xlu1 %2489 }
 0x46d   : > { %v2488_v25 = vpop.permute.xlu0 %2487  ;;  %v2634_v26 = vld [vmem:[#allocation4 + $0x68] sm:$0xff]  ;;  %v2778_v27 = vadd.f32 %v3166_v2, %v4442_v24  ;;  %v2772_v29 = vpop.f32.mrb[1].mxu1  ;;  %2523 = vst.msk [vmem:[#allocation4 + $0x78] sm:$0xff] %vm2507_vm11, %v2490_v28 }
 0x46e   : > { %2522 = vst.msk [vmem:[#allocation4 + $0x70] sm:$0xff] %vm2507_vm11, %v2488_v25  ;;  %3183 = vmatmul.mubr.msk.f32.gmra.mrb[12].mxu1 %vm2654_vm13, %v2634_v26  ;;  %v2773_v30 = vadd.f32 %v4442_v24, %v2772_v29 }
 0x46f   : > { %v2852_v31 = vmax.f32 %v2778_v27, 0.0 }
 0x470   : > { %v2851_v15 = vmax.f32 %v2773_v30, 0.0  ;;  %v2587_v4 = vpop.permute.xlu1 %2586 }
 0x471   : > { %v2585_v0 = vpop.permute.xlu0 %2584  ;;  %2868 = vst.msk [vmem:[%s3468_s14 + $0x8] sm:$0xff] %vm1678_vm15, %v2852_v31 }
 0x472   : > { %2619 = vst.msk [vmem:[#allocation4 + $0x70] sm:$0xff] %vm2604_vm12, %v2585_v0  ;;  %2620 = vst.msk [vmem:[#allocation4 + $0x78] sm:$0xff] %vm2604_vm12, %v2587_v4 }
 0x473   : > { %2867 = vst.msk [vmem:[%s3468_s14] sm:$0xff] %vm1678_vm15, %v2851_v15 }
 0x479   : > { %v2635_v32 = vld [vmem:[#allocation4 + $0x70] sm:$0xff]  ;;  %v2636_v33 = vld [vmem:[#allocation4 + $0x78] sm:$0xff] }
 0x47a   : > { %3185 = vmatprep.mubr.msk.f32.mxu1 %vm2654_vm13, %v2635_v32 }
 0x47b   : > { %3186 = vmatmul.mubr.msk.f32.gmra.mrb[14].mxu1 %vm2654_vm13, %v2636_v33 }
 0x490   : > { %v3169_v34 = vpop.f32.mrb[2].mxu1 }
 0x491   : > { %v2788_v35 = vadd.f32 %v3169_v34, %v4442_v24  ;;  %v2782_v17 = vpop.f32.mrb[3].mxu1 }
 0x492   : > { %v2783_v36 = vadd.f32 %v4442_v24, %v2782_v17 }
 0x493   : > { %v2854_v37 = vmax.f32 %v2788_v35, 0.0 }
 0x494   : > { %v2853_v38 = vmax.f32 %v2783_v36, 0.0 }
 0x495   : > { %2870 = vst.msk [vmem:[%s3468_s14 + $0x18] sm:$0xff] %vm1678_vm15, %v2854_v37 }
 0x496   : > { %2869 = vst.msk [vmem:[%s3468_s14 + $0x10] sm:$0xff] %vm1678_vm15, %v2853_v38 }
 0x4b4   : > { %v3172_v39 = vpop.f32.mrb[4].mxu1 }
 0x4b5   : > { %v2798_v40 = vadd.f32 %v3172_v39, %v4442_v24  ;;  %v2792_v41 = vpop.f32.mrb[5].mxu1 }
 0x4b6   : > { %v2793_v42 = vadd.f32 %v4442_v24, %v2792_v41 }
 0x4b7   : > { %v2856_v43 = vmax.f32 %v2798_v40, 0.0 }
 0x4b8   : > { %v2855_v44 = vmax.f32 %v2793_v42, 0.0 }
 0x4b9   : > { %2872 = vst.msk [vmem:[%s3468_s14 + $0x28] sm:$0xff] %vm1678_vm15, %v2856_v43 }
 0x4ba   : > { %2871 = vst.msk [vmem:[%s3468_s14 + $0x20] sm:$0xff] %vm1678_vm15, %v2855_v44 }
 0x4d8   : > { %v3175_v45 = vpop.f32.mrb[6].mxu1 }
 0x4d9   : > { %v2808_v12 = vadd.f32 %v3175_v45, %v4442_v24  ;;  %v2802_v46 = vpop.f32.mrb[7].mxu1 }
 0x4da   : > { %v2803_v47 = vadd.f32 %v4442_v24, %v2802_v46 }
 0x4db   : > { %v2858_v48 = vmax.f32 %v2808_v12, 0.0 }
 0x4dc   : > { %v2857_v49 = vmax.f32 %v2803_v47, 0.0 }
 0x4dd   : > { %2874 = vst.msk [vmem:[%s3468_s14 + $0x38] sm:$0xff] %vm1678_vm15, %v2858_v48 }
 0x4de   : > { %2873 = vst.msk [vmem:[%s3468_s14 + $0x30] sm:$0xff] %vm1678_vm15, %v2857_v49 }
 0x4fc   : > { %v3178_v50 = vpop.f32.mrb[8].mxu1 }
 0x4fd   : > { %v2818_v51 = vadd.f32 %v3178_v50, %v4442_v24  ;;  %v2812_v18 = vpop.f32.mrb[9].mxu1 }
 0x4fe   : > { %v2813_v52 = vadd.f32 %v4442_v24, %v2812_v18 }
 0x4ff   : > { %v2860_v53 = vmax.f32 %v2818_v51, 0.0 }
 0x500   : > { %v2859_v54 = vmax.f32 %v2813_v52, 0.0 }
 0x501   : > { %2876 = vst.msk [vmem:[%s3468_s14 + $0x48] sm:$0xff] %vm1678_vm15, %v2860_v53 }
 0x502   : > { %2875 = vst.msk [vmem:[%s3468_s14 + $0x40] sm:$0xff] %vm1678_vm15, %v2859_v54 }
 0x520   : > { %v3181_v55 = vpop.f32.mrb[10].mxu1 }
 0x521   : > { %v2828_v56 = vadd.f32 %v3181_v55, %v4442_v24  ;;  %v2822_v57 = vpop.f32.mrb[11].mxu1 }
 0x522   : > { %v2823_v59 = vadd.f32 %v4442_v24, %v2822_v57 }
 0x523   : > { %v2862_v61 = vmax.f32 %v2828_v56, 0.0 }
 0x524   : > { %v2861_v63 = vmax.f32 %v2823_v59, 0.0 }
 0x525   : > { %2878 = vst.msk [vmem:[%s3468_s14 + $0x58] sm:$0xff] %vm1678_vm15, %v2862_v61 }
 0x526   : > { %2877 = vst.msk [vmem:[%s3468_s14 + $0x50] sm:$0xff] %vm1678_vm15, %v2861_v63 }
 0x541   : > { %v3184_v1 = vpop.f32.mrb[12].mxu1 }
 0x542   : > { %v2838_v60 = vadd.f32 %v3184_v1, %v4442_v24  ;;  %v2832_v58 = vpop.f32.mrb[13].mxu1 }
 0x543   : > { %v2833_v3 = vadd.f32 %v4442_v24, %v2832_v58 }
 0x544   : > { %v2864_v5 = vmax.f32 %v2838_v60, 0.0 }
 0x545   : > { %v2863_v7 = vmax.f32 %v2833_v3, 0.0 }
 0x546   : > { %2880 = vst.msk [vmem:[%s3468_s14 + $0x68] sm:$0xff] %vm1678_vm15, %v2864_v5 }
 0x547   : > { %2879 = vst.msk [vmem:[%s3468_s14 + $0x60] sm:$0xff] %vm1678_vm15, %v2863_v7 }
 0x54e   : > { %v3187_v8 = vpop.f32.mrb[14].mxu1 }
 0x54f   : > { %v2848_v9 = vadd.f32 %v3187_v8, %v4442_v24  ;;  %v2842_v62 = vpop.f32.mrb[15].mxu1 }
 0x550   : > { %v2843_v10 = vadd.f32 %v4442_v24, %v2842_v62 }
 0x551   : > { %v2866_v6 = vmax.f32 %v2848_v9, 0.0 }
 0x552   : > { %v2865_v11 = vmax.f32 %v2843_v10, 0.0 }
 0x553   : > { %2882 = vst.msk [vmem:[%s3468_s14 + $0x78] sm:$0xff] %vm1678_vm15, %v2866_v6 }
 0x554   : > { %2881 = vst.msk [vmem:[%s3468_s14 + $0x70] sm:$0xff] %vm1678_vm15, %v2865_v11 }
 0x555 PF: > { %s15_s22 = sadd.s32 1, %s3315_s22   ;;  %s4520_s18 = smov %s3307_s20 }
 0x556   : > { %p12_p11 = scmp.ge.s32.totalorder %s15_s22, 6   ;;  %s4521_s19 = smov %s3311_s21 }
 0x557   : > { %s4522_s20 = smov %s4525_s23  ;;  %s4523_s21 = smov %s4529_s24 }
 0x558   :  { %14 = sbr.rel (!%p12_p11) target bundleno = 3 (0x3), region = 104 }

</bundles_post_ra>
